<compile_context>
chip_gen: v5e
topology: v5e:2x2
jax: 0.10.0
libtpu: 0.0.40
codegen_flags: <defaults>
</compile_context>

<pallas_src>
import numpy as np
import jax
import jax.numpy as jnp
from jax.experimental import pallas as pl
from jax.experimental.pallas import tpu as pltpu

# ---- module parameters (torch defaults) ----
N_FFT = 400
HOP = 160
N_MELS = 80
SR = 16000
F_MIN = 0.0
F_MAX = SR / 2
N_FREQS = N_FFT // 2 + 1            # 201

# ---- padded / tiled sizes (lane & MXU friendly) ----
N_FREQS_PAD = 256                   # per-component (re / im) width
N_MELS_PAD = 128                    # lane-dense width of the mel matmul
MAX_TILE_F = 512                    # max frames (matmul M rows) per grid step
HALO = 16                           # halo rows (>= 2 needed; 16 keeps bf16 sublane tiling)
N_BLK = 3                           # hop blocks spanned by one frame (ceil(400/160))
assert N_FFT <= N_BLK * HOP


# ---------------- parameter / buffer construction (plain numpy glue) ----------------
def _hz_to_mel_htk(f):
    return 2595.0 * np.log10(1.0 + np.asarray(f, np.float64) / 700.0)


def _mel_to_hz_htk(m):
    return 700.0 * (10.0 ** (np.asarray(m, np.float64) / 2595.0) - 1.0)


def melscale_fbanks_htk(n_freqs, n_mels, sr, f_min, f_max):
    """Re-implementation of torchaudio.functional.melscale_fbanks (htk, norm=None)."""
    all_freqs = np.linspace(0.0, sr / 2, n_freqs)
    m_min, m_max = _hz_to_mel_htk(f_min), _hz_to_mel_htk(f_max)
    m_pts = np.linspace(m_min, m_max, n_mels + 2)
    f_pts = _mel_to_hz_htk(m_pts)
    f_diff = f_pts[1:] - f_pts[:-1]                       # (n_mels+1,)
    slopes = f_pts[None, :] - all_freqs[:, None]          # (n_freqs, n_mels+2)
    down = (-1.0 * slopes[:, :-2]) / f_diff[:-1]
    up = slopes[:, 2:] / f_diff[1:]
    fb = np.maximum(0.0, np.minimum(down, up))
    return fb.astype(np.float32)                          # (n_freqs, n_mels)


def hann_window_periodic(n_fft):
    """torch.hann_window default (periodic=True)."""
    n = np.arange(n_fft).astype(np.float64)
    return 0.5 * (1.0 - np.cos(2.0 * np.pi * n / n_fft))


def build_block_dft_basis():
    """Hop-block split of the Hann-windowed DFT basis: (3, HOP, 2*N_FREQS_PAD) f32.

    Columns 0..200 hold win*cos, columns 256..456 hold win*(-sin); rows 400..479
    (third block, beyond the frame) and the padded freq columns are zero, so the
    padded lanes / tail blocks contribute exact zeros.
    """
    window = hann_window_periodic(N_FFT)                  # (400,)
    n = np.arange(N_FFT)[:, None].astype(np.float64)
    k = np.arange(N_FREQS)[None, :].astype(np.float64)
    ang = 2.0 * np.pi * n * k / N_FFT
    cos_b = np.cos(ang) * window[:, None]                 # (400, 201)
    sin_b = -np.sin(ang) * window[:, None]                # sign irrelevant after |.|^2
    full = np.zeros((N_BLK * HOP, 2 * N_FREQS_PAD), np.float64)
    full[:N_FFT, :N_FREQS] = cos_b
    full[:N_FFT, N_FREQS_PAD:N_FREQS_PAD + N_FREQS] = sin_b
    return full.reshape(N_BLK, HOP, 2 * N_FREQS_PAD).astype(np.float32)


def build_padded_fbanks():
    fb = melscale_fbanks_htk(N_FREQS, N_MELS, SR, F_MIN, F_MAX)   # (201, 80)
    fb_pad = np.zeros((N_FREQS_PAD, N_MELS_PAD), np.float32)      # (256, 128)
    fb_pad[:N_FREQS, :N_MELS] = fb
    return fb_pad


# ---------------- tiling choice ----------------
def _round_up(x, m):
    return -(-x // m) * m


def _choose_tiling(n_frames, batch):
    """Return (n_frames_pad, tile_f): tile_f is a multiple of 128 dividing n_frames_pad."""
    nfp = _round_up(max(n_frames, 1), 128)
    if nfp <= 384:
        tile = nfp                                        # single tile per batch item
    elif nfp % MAX_TILE_F == 0 or nfp > 3 * MAX_TILE_F:
        tile = MAX_TILE_F
        nfp = _round_up(nfp, tile)
    else:
        tile = 256                                        # limit frame padding waste
        nfp = _round_up(nfp, tile)
    # v7x megacore: make sure there are >= 2 grid steps when cheaply possible.
    if batch * (nfp // tile) < 2 and tile % 256 == 0:
        tile //= 2
    return nfp, tile


# ---------------- Pallas kernel: block-DFT + power + mel matmul + log + transpose ----
def logmel_kernel(xb_ref, halo_ref, basis_ref, fb_ref, out_ref):
    # xb_ref:    (1, TILE_F, HOP)          bf16  hop blocks [t*TILE_F, (t+1)*TILE_F)
    # halo_ref:  (1, HALO, HOP)            bf16  hop blocks [(t+1)*TILE_F, +HALO)
    # basis_ref: (3, HOP, 2*N_FREQS_PAD)   bf16  windowed DFT, hop-block split
    # fb_ref:    (N_FREQS_PAD, N_MELS_PAD) f32   mel filterbanks (zero padded)
    # out_ref:   (1, N_MELS, TILE_F)       f32
    x0 = xb_ref[0]                                        # blocks f       (TILE_F, 160)
    halo = halo_ref[0]                                    # next-tile halo (HALO, 160)
    x1 = jnp.concatenate([x0[1:], halo[:1]], axis=0)      # blocks f + 1
    x2 = jnp.concatenate([x0[2:], halo[:2]], axis=0)      # blocks f + 2

    # Z[f] = sum_j xb[f+j] @ B_j  ->  [re | im], bf16 operands, f32 MXU accumulation.
    z = jnp.dot(x0, basis_ref[0], preferred_element_type=jnp.float32)
    z = z + jnp.dot(x1, basis_ref[1], preferred_element_type=jnp.float32)
    z = z + jnp.dot(x2, basis_ref[2], preferred_element_type=jnp.float32)

    re = z[:, :N_FREQS_PAD]
    im = z[:, N_FREQS_PAD:]
    power = re * re + im * im                             # (TILE_F, 256) f32

    mel = jnp.dot(power, fb_ref[...],
                  preferred_element_type=jnp.float32)     # (TILE_F, 128) f32
    # In-kernel transpose of the smallest tensor -> lane-dense (80, TILE_F) store.
    out_ref[0] = jnp.log(mel + 1e-6).T[:N_MELS]


def log_mel_filterbanks(x):
    """x: (B, T) float -> (B, n_mels, n_frames) float32 (== torch module forward)."""
    x = x.astype(jnp.float32)
    B, T = x.shape
    pad = N_FFT // 2
    assert T > pad, "torch.stft(center=True) reflect padding needs T > n_fft//2"
    n_frames = 1 + T // HOP

    n_frames_pad, tile_f = _choose_tiling(n_frames, B)
    n_tiles = n_frames_pad // tile_f
    n_blocks = n_frames_pad + HALO                        # hop blocks incl. halo room

    # center=True reflect pad (torch.stft), then zero tail so every hop block exists.
    xp = jnp.pad(x, ((0, 0), (pad, pad)), mode="reflect")
    xp = jnp.pad(xp, ((0, 0), (0, n_blocks * HOP - (T + 2 * pad))))
    # 1x-traffic framing: non-overlapping hop blocks, bf16 feed for the MXU.
    xb = xp.reshape(B, n_blocks, HOP).astype(jnp.bfloat16)

    basis = jnp.asarray(build_block_dft_basis(), dtype=jnp.bfloat16)  # (3, 160, 512)
    fb_pad = jnp.asarray(build_padded_fbanks())                       # (256, 128) f32

    halo_blk = tile_f // HALO     # halo block-index stride along the frames axis

    out = pl.pallas_call(
        logmel_kernel,
        out_shape=jax.ShapeDtypeStruct((B, N_MELS, n_frames_pad), jnp.float32),
        grid_spec=pltpu.PrefetchScalarGridSpec(
            num_scalar_prefetch=0,
            grid=(B, n_tiles),
            in_specs=[
                # main hop-block tile
                pl.BlockSpec((1, tile_f, HOP), lambda b, t: (b, t, 0)),
                # 16-row halo from the start of the next tile (same array)
                pl.BlockSpec((1, HALO, HOP), lambda b, t: (b, (t + 1) * halo_blk, 0)),
                # grid-invariant constants: fetched once by the pipeline
                pl.BlockSpec((N_BLK, HOP, 2 * N_FREQS_PAD), lambda b, t: (0, 0, 0)),
                pl.BlockSpec((N_FREQS_PAD, N_MELS_PAD), lambda b, t: (0, 0)),
            ],
            out_specs=pl.BlockSpec((1, N_MELS, tile_f), lambda b, t: (b, 0, t)),
        ),
        compiler_params=pltpu.CompilerParams(
            dimension_semantics=("parallel", "parallel"),
        ),
    )(xb, xb, basis, fb_pad)

    # only the padded frames remain to slice away; layout is already (B, n_mels, F).
    return out[:, :, :n_frames]


# ---------------- plain-jnp reference (same math + same bf16 quantization) ----------
def reference_logmel(x):
    x = x.astype(jnp.float32)
    B, T = x.shape
    pad = N_FFT // 2
    n_frames = 1 + T // HOP
    n_blocks = n_frames + 3
    xp = jnp.pad(x, ((0, 0), (pad, pad)), mode="reflect")
    xp = jnp.pad(xp, ((0, 0), (0, n_blocks * HOP - (T + 2 * pad))))
    xb = xp.reshape(B, n_blocks, HOP).astype(jnp.bfloat16).astype(jnp.float32)
    bs = jnp.asarray(build_block_dft_basis(), jnp.bfloat16).astype(jnp.float32)
    fb = jnp.asarray(build_padded_fbanks())
    f = n_frames
    z = (jnp.einsum("bfh,hk->bfk", xb[:, 0:f], bs[0])
         + jnp.einsum("bfh,hk->bfk", xb[:, 1:f + 1], bs[1])
         + jnp.einsum("bfh,hk->bfk", xb[:, 2:f + 2], bs[2]))
    power = z[..., :N_FREQS_PAD] ** 2 + z[..., N_FREQS_PAD:] ** 2
    mel = jnp.einsum("bfk,km->bfm", power, fb)
    return jnp.transpose(jnp.log(mel + 1e-6), (0, 2, 1))[:, :N_MELS]


if __name__ == "__main__":
    key = jax.random.PRNGKey(0)
    B, T = 2, 800                     # n_frames = 1 + 800 // 160 = 6
    x = jax.random.normal(key, (B, T), dtype=jnp.float32)

    y = jax.block_until_ready(log_mel_filterbanks(x))
    assert y.shape == (B, N_MELS, 1 + T // HOP), y.shape
    assert y.dtype == jnp.float32
    assert bool(jnp.all(jnp.isfinite(y)))

    y_ref = jax.block_until_ready(reference_logmel(x))
    err = float(jnp.max(jnp.abs(y - y_ref)))
    assert err < 1e-1, f"log-mel mismatch vs jnp reference: max abs err = {err}"

    print("KERNEL_OK")
</pallas_src>

<mosaic_0001>
module attributes {stable_mosaic.version = 11 : i64} {
  func.func @logmel_kernel(%arg0: i32, %arg1: i32, %arg2: memref<1x128x160xbf16, #tpu.memory_space<vmem>>, %arg3: memref<1x16x160xbf16, #tpu.memory_space<vmem>>, %arg4: memref<3x160x512xbf16, #tpu.memory_space<vmem>>, %arg5: memref<256x128xf32, #tpu.memory_space<vmem>>, %arg6: memref<1x80x128xf32, #tpu.memory_space<vmem>>) attributes {dimension_semantics = [#tpu.dimension_semantics<parallel>, #tpu.dimension_semantics<parallel>], iteration_bounds = array<i64: 2, 1>, scalar_prefetch = 0 : i64, scratch_operands = 0 : i64, tpu.core_type = #tpu.core_type<tc>, window_params = [{transform_indices = @transform_0, window_bounds = array<i64: 1, 128, 160>}, {transform_indices = @transform_1, window_bounds = array<i64: 1, 16, 160>}, {pipeline_mode = #tpu.pipeline_mode<synchronous>, transform_indices = @transform_2, window_bounds = array<i64: 3, 160, 512>}, {pipeline_mode = #tpu.pipeline_mode<synchronous>, transform_indices = @transform_3, window_bounds = array<i64: 256, 128>}, {transform_indices = @transform_4, window_bounds = array<i64: 1, 80, 128>}]} {
    %c0 = arith.constant 0 : index
    %c0_0 = arith.constant 0 : index
    %c0_1 = arith.constant 0 : index
    %0 = vector.load %arg2[%c0, %c0_0, %c0_1] : memref<1x128x160xbf16, #tpu.memory_space<vmem>>, vector<1x128x160xbf16>
    %1 = vector.shape_cast %0 : vector<1x128x160xbf16> to vector<128x160xbf16>
    %c0_2 = arith.constant 0 : index
    %c0_3 = arith.constant 0 : index
    %c0_4 = arith.constant 0 : index
    %2 = vector.load %arg3[%c0_2, %c0_3, %c0_4] : memref<1x16x160xbf16, #tpu.memory_space<vmem>>, vector<1x16x160xbf16>
    %3 = vector.shape_cast %2 : vector<1x16x160xbf16> to vector<16x160xbf16>
    %4 = vector.extract_strided_slice %1 {offsets = [1, 0], sizes = [127, 160], strides = [1, 1]} : vector<128x160xbf16> to vector<127x160xbf16>
    %5 = vector.extract_strided_slice %3 {offsets = [0, 0], sizes = [1, 160], strides = [1, 1]} : vector<16x160xbf16> to vector<1x160xbf16>
    %6 = tpu.concatenate %4, %5 in 0 : vector<127x160xbf16>, vector<1x160xbf16> -> vector<128x160xbf16>
    %7 = vector.extract_strided_slice %1 {offsets = [2, 0], sizes = [126, 160], strides = [1, 1]} : vector<128x160xbf16> to vector<126x160xbf16>
    %8 = vector.extract_strided_slice %3 {offsets = [0, 0], sizes = [2, 160], strides = [1, 1]} : vector<16x160xbf16> to vector<2x160xbf16>
    %9 = tpu.concatenate %7, %8 in 0 : vector<126x160xbf16>, vector<2x160xbf16> -> vector<128x160xbf16>
    %c0_5 = arith.constant 0 : index
    %c0_6 = arith.constant 0 : index
    %c0_7 = arith.constant 0 : index
    %10 = vector.load %arg4[%c0_5, %c0_6, %c0_7] : memref<3x160x512xbf16, #tpu.memory_space<vmem>>, vector<1x160x512xbf16>
    %11 = vector.shape_cast %10 : vector<1x160x512xbf16> to vector<160x512xbf16>
    %cst = arith.constant dense<0.000000e+00> : vector<128x512xf32>
    %12 = tpu.matmul %1, %11, %cst {dimension_numbers = #tpu.dot_dimension_numbers<[1], [0], [0], [1], [0, 0, 1, 1], [], []>} : vector<128x160xbf16>, vector<160x512xbf16>, vector<128x512xf32> -> vector<128x512xf32>
    %c1 = arith.constant 1 : index
    %c0_8 = arith.constant 0 : index
    %c0_9 = arith.constant 0 : index
    %13 = vector.load %arg4[%c1, %c0_8, %c0_9] : memref<3x160x512xbf16, #tpu.memory_space<vmem>>, vector<1x160x512xbf16>
    %14 = vector.shape_cast %13 : vector<1x160x512xbf16> to vector<160x512xbf16>
    %cst_10 = arith.constant dense<0.000000e+00> : vector<128x512xf32>
    %15 = tpu.matmul %6, %14, %cst_10 {dimension_numbers = #tpu.dot_dimension_numbers<[1], [0], [0], [1], [0, 0, 1, 1], [], []>} : vector<128x160xbf16>, vector<160x512xbf16>, vector<128x512xf32> -> vector<128x512xf32>
    %16 = arith.addf %12, %15 : vector<128x512xf32>
    %c2 = arith.constant 2 : index
    %c0_11 = arith.constant 0 : index
    %c0_12 = arith.constant 0 : index
    %17 = vector.load %arg4[%c2, %c0_11, %c0_12] : memref<3x160x512xbf16, #tpu.memory_space<vmem>>, vector<1x160x512xbf16>
    %18 = vector.shape_cast %17 : vector<1x160x512xbf16> to vector<160x512xbf16>
    %cst_13 = arith.constant dense<0.000000e+00> : vector<128x512xf32>
    %19 = tpu.matmul %9, %18, %cst_13 {dimension_numbers = #tpu.dot_dimension_numbers<[1], [0], [0], [1], [0, 0, 1, 1], [], []>} : vector<128x160xbf16>, vector<160x512xbf16>, vector<128x512xf32> -> vector<128x512xf32>
    %20 = arith.addf %16, %19 : vector<128x512xf32>
    %21 = vector.extract_strided_slice %20 {offsets = [0, 0], sizes = [128, 256], strides = [1, 1]} : vector<128x512xf32> to vector<128x256xf32>
    %22 = vector.extract_strided_slice %20 {offsets = [0, 256], sizes = [128, 256], strides = [1, 1]} : vector<128x512xf32> to vector<128x256xf32>
    %23 = arith.mulf %21, %21 : vector<128x256xf32>
    %24 = arith.mulf %22, %22 : vector<128x256xf32>
    %25 = arith.addf %23, %24 : vector<128x256xf32>
    %c0_14 = arith.constant 0 : index
    %c0_15 = arith.constant 0 : index
    %26 = vector.load %arg5[%c0_14, %c0_15] : memref<256x128xf32, #tpu.memory_space<vmem>>, vector<256x128xf32>
    %cst_16 = arith.constant dense<0.000000e+00> : vector<128x128xf32>
    %27 = tpu.matmul %25, %26, %cst_16 {dimension_numbers = #tpu.dot_dimension_numbers<[1], [0], [0], [1], [0, 0, 1, 1], [], []>} : vector<128x256xf32>, vector<256x128xf32>, vector<128x128xf32> -> vector<128x128xf32>
    %cst_17 = arith.constant 9.99999997E-7 : f32
    %28 = vector.broadcast %cst_17 : f32 to vector<128x128xf32>
    %29 = arith.addf %27, %28 : vector<128x128xf32>
    %30 = math.log %29 : vector<128x128xf32>
    %31 = tpu.transpose %30, [1, 0] : vector<128x128xf32> -> vector<128x128xf32>
    %32 = vector.extract_strided_slice %31 {offsets = [0, 0], sizes = [80, 128], strides = [1, 1]} : vector<128x128xf32> to vector<80x128xf32>
    %c0_18 = arith.constant 0 : index
    %c0_19 = arith.constant 0 : index
    %c0_20 = arith.constant 0 : index
    %33 = vector.load %arg6[%c0_18, %c0_19, %c0_20] : memref<1x80x128xf32, #tpu.memory_space<vmem>>, vector<1x80x128xf32>
    %34 = vector.shape_cast %33 : vector<1x80x128xf32> to vector<80x128xf32>
    %35 = vector.shape_cast %32 : vector<80x128xf32> to vector<1x80x128xf32>
    tpu.vector_store %arg6[%c0_18, %c0_19, %c0_20], %35 {strides = array<i32>} : memref<1x80x128xf32, #tpu.memory_space<vmem>>, vector<1x80x128xf32>,
    return
  }
  func.func @transform_0(%arg0: i32, %arg1: i32) -> (i32, i32, i32) {
    %c0_i32 = arith.constant 0 : i32
    %c0_i32_0 = arith.constant 0 : i32
    return %arg0, %arg1, %c0_i32 : i32, i32, i32
  }
  func.func @transform_1(%arg0: i32, %arg1: i32) -> (i32, i32, i32) {
    %c1_i32 = arith.constant 1 : i32
    %0 = arith.addi %arg1, %c1_i32 : i32
    %c8_i32 = arith.constant 8 : i32
    %1 = arith.muli %0, %c8_i32 : i32
    %c0_i32 = arith.constant 0 : i32
    %c0_i32_0 = arith.constant 0 : i32
    return %arg0, %1, %c0_i32 : i32, i32, i32
  }
  func.func @transform_2(%arg0: i32, %arg1: i32) -> (i32, i32, i32) {
    %c0_i32 = arith.constant 0 : i32
    %c0_i32_0 = arith.constant 0 : i32
    %c0_i32_1 = arith.constant 0 : i32
    %c0_i32_2 = arith.constant 0 : i32
    return %c0_i32, %c0_i32_0, %c0_i32_1 : i32, i32, i32
  }
  func.func @transform_3(%arg0: i32, %arg1: i32) -> (i32, i32) {
    %c0_i32 = arith.constant 0 : i32
    %c0_i32_0 = arith.constant 0 : i32
    %c0_i32_1 = arith.constant 0 : i32
    return %c0_i32, %c0_i32_0 : i32, i32
  }
  func.func @transform_4(%arg0: i32, %arg1: i32) -> (i32, i32, i32) {
    %c0_i32 = arith.constant 0 : i32
    %c0_i32_0 = arith.constant 0 : i32
    return %arg0, %c0_i32, %arg1 : i32, i32, i32
  }
}

</mosaic_0001>

<bundles_post_ra>
// kernel: tpu_custom_call.1
= control target key start
LH: loop header
LB: loop body
LE: loop exit
PB: predicated region body
PF: predicated region fallthrough
CT: control target
= control target key end

     0   :  { %s5662_s0 = inlined_call_operand.hbm [shape: bf16[2,144,160], index: 0, kind: input, shape index: {}]   ;;  %s5663_s1 = inlined_call_operand.hbm [shape: bf16[2,144,160], index: 1, kind: input, shape index: {}]   ;;  %s5664_s2 = inlined_call_operand.hbm [shape: bf16[3,160,512], index: 2, kind: input, shape index: {}]   ;;  %s5665_s3 = inlined_call_operand.hbm [shape: f32[256,128], index: 3, kind: input, shape index: {}]   ;;  %s5666_s4 = inlined_call_operand.hbm [shape: f32[2,80,128], index: 4, kind: output, shape index: {}]  }
   0x1   :  { %5677 = sst [smem:[#allocation62_spill]] %s5664_s2 }
   0x2   :  { %5678 = sst [smem:[#allocation63_spill]] %s5665_s3 }
   0x3   :  { %9 = vsyncpa [#allocation3], 0 }
   0x4   :  { %11 = vsyncpa [#allocation3 + $0x1], 0 }
   0x5   :  { %12 = vsyncpa [#allocation6], 0 }
   0x6   :  { %14 = vsyncpa [#allocation6 + $0x1], 0 }
   0x7   :  { %15 = vsyncpa [#allocation9], 0 }
   0x8   :  { %16 = vsyncpa [#allocation4], 0 }
   0x9   :  { %18 = vsyncpa [#allocation4 + $0x1], 0  ;;  %s4316_s15 = smov 0   ;;  %s4318_s16 = smov 0  }
   0xa   :  { %s4320_s17 = smov 0   ;;  %s4322_s18 = smov 0  }
   0xb   :  { %s4324_s19 = smov 0   ;;  %s4326_s20 = smov 0  }
   0xc LB: > { %5679 = sst [smem:[#allocation16_spill]] %s4277_s19  ;;  %s4347_s21 = sadd.s32 4294967295, %s4281_s20   ;;  %s4281_s20 = sphi %s4326_s20, %s24_s20   ;;  %s4277_s19 = sphi %s4324_s19, %s5861_s19   ;;  %s4273_s18 = sphi %s4322_s18, %s5860_s18   ;;  %s4269_s17 = sphi %s4320_s17, %s5864_s17   ;;  %s4265_s16 = sphi %s4318_s16, %s5863_s16   ;;  %s4261_s15 = sphi %s4316_s15, %s5862_s15  }
   0xd   : > { %s3141_s22 = sadd.s32 4294967294, %s4281_s20   ;;  %p58_p0 = scmp.ne.s32.totalorder %s4265_s16, %s4261_s15 }
   0xe   : > { %p59_p1 = scmp.eq.s32.totalorder %s4347_s21, 0  ;;  %p158_p2 = scmp.eq.s32.totalorder %s4347_s21, 1 }
   0xf   : > { %p164_p3 = scmp.eq.s32.totalorder %s3141_s22, 1  ;;  %p3142_p5 = scmp.ge.s32.totalorder %s4281_s20, 1 }
  0x10   : > { %p4356_p4 = por %p59_p1, %p58_p0  ;;  %p171_p7 = scmp.lt.s32.totalorder %s4281_s20, 3 }
  0x11   : > { %p4361_p6 = por %p164_p3, %p58_p0  ;;  %s5682_s2 = sld [smem:[#allocation62_spill]] }
  0x12   : > { %p4369_p8 = pnand %p3142_p5, %p171_p7  ;;  %s4283_s29 = smov [#allocation7]  }
  0x13   : > { %s184_s30 = sshll.u32 %s4283_s29, 4  ;;  %p3145_p11 = scmp.ge.s32.totalorder %s4281_s20, 2  ;;  %s185_s30 = int_to_ptr.vmem [resolvable:$true] %s184_s30 }
  0x14   : > { %p3955_p9 = pneg %p4369_p8  ;;  %s5684_s3 = sld [smem:[#allocation63_spill]] }
  0x15   : > { %s4284_s8 = smov 256   ;;  %s4285_s9 = smov 16  }
  0x16   : > { %p3956_p10 = pnand %p3955_p9, %p59_p1  ;;  %s4286_s10 = smov [#allocation8]  }
  0x17   : > { %s182_s27 = sshll.u32 %s5682_s2, 4  ;;  %s198_s11 = sshll.u32 %s4286_s10, 4  ;;  %s183_s27 = int_to_ptr.hbm [resolvable:$true] %s182_s27  ;;  %s199_s11 = int_to_ptr.vmem [resolvable:$true] %s198_s11 }
  0x18   : > { %3958 = dma.hbm_to_vmem [thread:$0]  (!%p3956_p10), %s183_s27, 15360, %s185_s30, [#allocation6], %s4284_s8, %s4284_s8, %s4285_s9  }
  0x19   : > { %s5667_s12 = smov 128   ;;  %s5669_s13 = smov 8  }
  0x1a   : > { %s196_s7 = sshll.u32 %s5684_s3, 4  ;;  %s36_s14 = sadd.s32 1, %s4277_s19  ;;  %s197_s7 = int_to_ptr.hbm [resolvable:$true] %s196_s7 }
  0x1b   : > { %3961 = dma.hbm_to_vmem [thread:$0]  (!%p3956_p10), %s197_s7, 4096, %s199_s11, [#allocation9], %s5667_s12, %s5667_s12, %s5669_s13  }
  0x1c   : > { %s45_s22 = sadd.s32 1, %s4269_s17  ;;  %p38_p12 = scmp.ge.s32.totalorder %s36_s14, 2 }
  0x1d   : > { %p52_p13 = scmp.ne.s32.totalorder %s4269_s17, %s4265_s16  ;;  %p53_p0 = scmp.eq.s32.totalorder %s4281_s20, 0 }
  0x1e   : > { %p3975_p3 = scmp.lt.s32.totalorder %s4281_s20, 2  ;;  %s5866_s14 = smov (%p38_p12, %s36_s14), 0 }
  0x1f   : > { %5685 = sst [smem:[#allocation17_spill]] %s5866_s14  ;;  %p4392_p5 = por %p53_p0, %p52_p13 }
  0x20   : > { %p4398_p7 = por %p158_p2, %p52_p13  ;;  %s40_s27 = ssub.s32 %s4277_s19, %s5866_s14 }
  0x21   : > { %s212_s29 = sand.u32 1, %s4269_s17   ;;  %p43_p9 = scmp.eq.s32.totalorder %s40_s27, 0 }
  0x22   : > { %s3146_s30 = sshll.u32 %s212_s29, 7  ;;  %s3938_s5 = smul.u32 144, %s4277_s19 }
  0x23   : > { %s4407_s6 = scalar_select %p43_p9, %s4269_s17, %s45_s22  }
  0x24   : > { %s231_s9 = scalar_lea.hbm %s5662_s0, %s3938_s5  ;;  %s216_s11 = scalar_lea.vmem [#allocation2], %s3146_s30 }
  0x25   : > { %s233_s10 = sshll.u32 %s231_s9, 4  ;;  %s235_s12 = sshll.u32 %s216_s11, 4  ;;  %s234_s10 = int_to_ptr.hbm [resolvable:$true] %s233_s10  ;;  %s236_s12 = int_to_ptr.vmem [resolvable:$true] %s235_s12 }
  0x26   : > { %p3963_p2 = pnand %p3975_p3, %p4392_p5  ;;  %s245_s13 = sand.u32 1, %s4281_s20  }
  0x27   : > { %s3148_s2 = sshll.u32 %s212_s29, 4  ;;  %s213_s3 = scalar_lea.sflag [#allocation3], %s212_s29 }
  0x28   : > { %s5688_s27 = smov 8   ;;  %s5689_s14 = smov 128  }
  0x29   : > { %3965 = dma.hbm_to_vmem [thread:$0]  (!%p3963_p2), %s234_s10, 2048, %s236_s12, %s213_s3, %s5689_s14, %s5689_s14, %s5688_s27  }
  0x2a   : > { %s3054_s7 = scalar_lea.hbm %s5663_s1, %s3938_s5  ;;  %s249_s8 = scalar_lea.vmem [#allocation5], %s3148_s2 }
  0x2b   : > { %s262_s9 = sshll.u32 %s249_s8, 4  ;;  %s3055_s30 = scalar_lea.hbm %s3054_s7, 128  ;;  %s263_s9 = int_to_ptr.vmem [resolvable:$true] %s262_s9 }
  0x2c   : > { %s260_s11 = sshll.u32 %s3055_s30, 4  ;;  %s246_s25 = scalar_lea.sflag [#allocation6], %s245_s13  ;;  %s261_s11 = int_to_ptr.hbm [resolvable:$true] %s260_s11 }
  0x2d   : > { %3968 = dma.hbm_to_vmem [thread:$0]  (!%p3963_p2), %s261_s11, 256, %s263_s9, %s246_s25, %s5689_s14, %s5689_s14, %s5688_s27  }
  0x2e   : > { %274 = sbr.rel (%p4369_p8) target bundleno = 1310 (0x51e), region = 36 }
  0x33   : > { %s4429_s3 = sand.u32 1, %s4265_s16  }
  0x34   : > { %s3151_s2 = sshll.u32 %s4429_s3, 7  ;;  %s277_s19 = scalar_lea.sflag [#allocation3], %s4429_s3 }
  0x35   : > { %s4433_s12 = scalar_lea.vmem [#allocation2], %s3151_s2 }
  0x36   : > { %4240 = dma.done.wait (%p4356_p4), %s277_s19, 2048  }
  0x37   : > { %4242 = vsyncadd (%p4356_p4), %s277_s19, 4294965248  ;;  %s286_s28 = sand.u32 1, %s4347_s21   ;;  %s3152_s13 = sshll.u32 %s4429_s3, 4 }
  0x38   : > { %s287_s14 = scalar_lea.sflag [#allocation6], %s286_s28  ;;  %s4441_s29 = scalar_lea.vmem [#allocation5], %s3152_s13 }
  0x39   : > { %4244 = dma.done.wait (%p4356_p4), %s287_s14, 256  }
  0x3a   : > { %4246 = vsyncadd (%p4356_p4), %s287_s14, 4294967040 }
  0x3b   : > { %4248 = dma.done.wait (%p59_p1), [#allocation6], 15360  }
  0x3c   : > { %4250 = vsyncadd (%p59_p1), [#allocation6], 4294951936 }
  0x3d   : > { %4252 = dma.done.wait (%p59_p1), [#allocation9], 4096  }
  0x3e   : > { %4254 = vsyncadd (%p59_p1), [#allocation9], 4294963200  ;;  %v3333_v0 = vld [vmem:[#allocation7 + $0x220] sm:$0xf]  ;;  %v3884_v1 = vld [vmem:[#allocation7 + $0x22c] sm:$0xf0] }
  0x3f   : > { %v3365_v2 = vld [vmem:[#allocation7 + $0x260] sm:$0xf]  ;;  %v3334_v3 = vor.u32 %v3884_v1, %v3333_v0  ;;  %v3892_v4 = vld [vmem:[#allocation7 + $0x26c] sm:$0xf0]  ;;  %v3882_v5 = vld [vmem:[#allocation7 + $0x224] sm:$0xf] }
  0x40   : > { %v3335_v6 = vld [vmem:[#allocation7 + $0x230] sm:$0xf0]  ;;  %v4455_v7 = vor.u32 %v3892_v4, %v3365_v2  ;;  %v3890_v9 = vld [vmem:[#allocation7 + $0x264] sm:$0xf]  ;;  %v3317_v11 = vld [vmem:[#allocation7 + $0x200] sm:$0xf] }
  0x41   : > { %v3338_v8 = vor.u32 %v3882_v5, %v3335_v6  ;;  %v3367_v10 = vld [vmem:[#allocation7 + $0x270] sm:$0xf0]  ;;  %931 = vmatpush.bf16.msra.mxu0 %v3334_v3  ;;  %v3880_v13 = vld [vmem:[#allocation7 + $0x20c] sm:$0xf0]  ;;  %v3349_v14 = vld [vmem:[#allocation7 + $0x240] sm:$0xf] }
  0x42   : > { %v4457_v12 = vor.u32 %v3890_v9, %v3367_v10  ;;  %v3888_v15 = vld [vmem:[#allocation7 + $0x24c] sm:$0xf0]  ;;  %3934 = vmatpush.bf16.msra.mxu1 %v4455_v7  ;;  %v3318_v16 = vor.u32 %v3880_v13, %v3317_v11  ;;  %v3878_v18 = vld [vmem:[#allocation7 + $0x204] sm:$0xf]  ;;  %v3319_v19 = vld [vmem:[#allocation7 + $0x210] sm:$0xf0] }
  0x43   : > { %1029 = vmatpush.bf16.msra.mxu2 %v3338_v8  ;;  %v4460_v17 = vor.u32 %v3888_v15, %v3349_v14  ;;  %v3886_v20 = vld [vmem:[#allocation7 + $0x244] sm:$0xf]  ;;  %v3322_v21 = vor.u32 %v3878_v18, %v3319_v19  ;;  %v3351_v22 = vld [vmem:[#allocation7 + $0x250] sm:$0xf0]  ;;  %v3183_v24 = vld [vmem:[%s4433_s12 + $0x38] sm:$0xf0] }
  0x44   : > { %3936 = vmatpush.bf16.msra.mxu3 %v4457_v12  ;;  %v3804_v23 = vld [vmem:[%s4433_s12 + $0x34] sm:$0xf]  ;;  %v4465_v25 = vor.u32 %v3886_v20, %v3351_v22  ;;  %v3806_v26 = vld [vmem:[%s4433_s12 + $0x44] sm:$0xf]  ;;  %v3191_v27 = vld [vmem:[%s4433_s12 + $0x48] sm:$0xf0] }
  0x45   : > { %v4469_v28 = vor.u32 %v3804_v23, %v3183_v24  ;;  %v3301_v29 = vld [vmem:[#allocation7 + $0x1e0] sm:$0xf]  ;;  %932 = vmatpush.bf16.msra.mxu0 %v3318_v16  ;;  %v4471_v30 = vor.u32 %v3806_v26, %v3191_v27  ;;  %v3876_v31 = vld [vmem:[#allocation7 + $0x1ec] sm:$0xf0]  ;;  %v3874_v32 = vld [vmem:[#allocation7 + $0x1e4] sm:$0xf] }
  0x46   : > { %v3303_v33 = vld [vmem:[#allocation7 + $0x1f0] sm:$0xf0]  ;;  %3935 = vmatpush.bf16.msra.mxu1 %v4460_v17  ;;  %v3302_v36 = vor.u32 %v3876_v31, %v3301_v29  ;;  %v3285_v38 = vld [vmem:[#allocation7 + $0x1c0] sm:$0xf]  ;;  %v3872_v39 = vld [vmem:[#allocation7 + $0x1cc] sm:$0xf0] }
  0x47   : > { %1030 = vmatpush.bf16.msra.mxu2 %v3322_v21  ;;  %v475_v34 = vshll.u32 %v4469_v28, 16  ;;  %v487_v35 = vshrl.u32 %v4469_v28, 16  ;;  %v3306_v37 = vor.u32 %v3874_v32, %v3303_v33  ;;  %v491_v40 = vshll.u32 %v4471_v30, 16  ;;  %v3870_v41 = vld [vmem:[#allocation7 + $0x1c4] sm:$0xf]  ;;  %s3939_s21 = smul.u32 80, %s4429_s3 }
  0x48   : > { %3937 = vmatpush.bf16.msra.mxu3 %v4465_v25  ;;  %v3287_v42 = vld [vmem:[#allocation7 + $0x1d0] sm:$0xf0]  ;;  %vm422_vm0 = vsmask.f32 7424  ;;  %vm906_vm1 = vcmask 261120   ;;  %v3286_v46 = vor.u32 %v3872_v39, %v3285_v38  ;;  %v503_v4 = vshrl.u32 %v4471_v30, 16 }
  0x49   : > { %v4478_v43 = vrot.slane %v475_v34, 1  ;;  %v493_v44 = vrot.slane %v491_v40, 1  ;;  %933 = vmatpush.bf16.msra.mxu0 %v3302_v36  ;;  %v3290_v47 = vor.u32 %v3870_v41, %v3287_v42  ;;  %v3269_v48 = vld [vmem:[#allocation7 + $0x1a0] sm:$0xf]  ;;  %v3868_v49 = vld [vmem:[#allocation7 + $0x1ac] sm:$0xf0] }
  0x4a   : > { %v3866_v50 = vld [vmem:[#allocation7 + $0x1a4] sm:$0xf]  ;;  %v3271_v51 = vld [vmem:[#allocation7 + $0x1b0] sm:$0xf0]  ;;  %v3199_v53 = vld [vmem:[%s4433_s12 + $0x58] sm:$0xf0]  ;;  %v3270_v56 = vor.u32 %v3868_v49, %v3269_v48 }
  0x4b   : > { %v489_v45 = vor.u32 %v487_v35, %v4478_v43  ;;  %1031 = vmatpush.bf16.msra.mxu2 %v3306_v37  ;;  %v3808_v52 = vld [vmem:[%s4433_s12 + $0x54] sm:$0xf]  ;;  %v3253_v55 = vld [vmem:[#allocation7 + $0x180] sm:$0xf]  ;;  %v3274_v57 = vor.u32 %v3866_v50, %v3271_v51  ;;  %v3864_v58 = vld [vmem:[#allocation7 + $0x18c] sm:$0xf0]  ;;  %v505_v15 = vor.u32 %v503_v4, %v493_v44 }
  0x4c   : > { %v3862_v59 = vld [vmem:[#allocation7 + $0x184] sm:$0xf]  ;;  %v3255_v60 = vld [vmem:[#allocation7 + $0x190] sm:$0xf0]  ;;  %v4490_v61 = vor.u32 %v3808_v52, %v3199_v53  ;;  %v3157_v62 = vld [vmem:[%s4433_s12] sm:$0xf]  ;;  %v3254_v3 = vor.u32 %v3864_v58, %v3253_v55 }
  0x4d   : > { %v4484_v54 = vsel %vm422_vm0, %v489_v45, %v493_v44  ;;  %934 = vmatpush.bf16.msra.mxu0 %v3286_v46  ;;  %v3799_v63 = vld [vmem:[%s4433_s12 + $0x4] sm:$0xf0]  ;;  %v3165_v0 = vld [vmem:[%s4433_s12 + $0x10] sm:$0xf]  ;;  %v3801_v1 = vld [vmem:[%s4433_s12 + $0x14] sm:$0xf0]  ;;  %v3258_v8 = vor.u32 %v3862_v59, %v3255_v60 }
  0x4e   : > { %3382 = vmatmul.msk.bf16.vlgmr.msra.gmra.mxu1 %vm906_vm1, %v4484_v54  ;;  %3390 = vmatmul.msk.bf16.vlgmr.msra.gmra.mxu3 %vm906_vm1, %v4484_v54  ;;  %v4496_v2 = vor.u32 %v3799_v63, %v3157_v62  ;;  %v3237_v5 = vld [vmem:[#allocation7 + $0x160] sm:$0xf]  ;;  %v3860_v6 = vld [vmem:[#allocation7 + $0x16c] sm:$0xf0]  ;;  %v507_v9 = vshll.u32 %v4490_v61, 16  ;;  %v4500_v13 = vor.u32 %v3801_v1, %v3165_v0  ;;  %v519_v50 = vshrl.u32 %v4490_v61, 16 }
  0x4f   : > { %1032 = vmatpush.bf16.msra.mxu2 %v3290_v47  ;;  %v3858_v10 = vld [vmem:[#allocation7 + $0x164] sm:$0xf]  ;;  %v3239_v11 = vld [vmem:[#allocation7 + $0x170] sm:$0xf0]  ;;  %v3238_v16 = vor.u32 %v3860_v6, %v3237_v5  ;;  %v3221_v19 = vld [vmem:[#allocation7 + $0x140] sm:$0xf] }
  0x50   : > { %v426_v14 = vshll.u32 %v4496_v2, 16  ;;  %v3242_v18 = vor.u32 %v3858_v10, %v3239_v11  ;;  %v509_v20 = vrot.slane %v507_v9, 1  ;;  %v3856_v21 = vld [vmem:[#allocation7 + $0x14c] sm:$0xf0]  ;;  %v424_v22 = vshrl.u32 %v4496_v2, 16  ;;  %s330_s23 = scalar_lea.vmem [#allocation10], %s3939_s21 }
  0x51   : > { %935 = vmatpush.bf16.msra.mxu0 %v3270_v56  ;;  %v431_v24 = vshll.u32 %v4500_v13, 16  ;;  %v3854_v26 = vld [vmem:[#allocation7 + $0x144] sm:$0xf]  ;;  %v3223_v27 = vld [vmem:[#allocation7 + $0x150] sm:$0xf0]  ;;  %v3222_v29 = vor.u32 %v3856_v21, %v3221_v19  ;;  %vm573_vm2 = vcmask 1047552  }
  0x52   : > { %v428_v23 = vrot.slane %v426_v14, 1  ;;  %v4506_v31 = vsel %vm422_vm0, %v505_v15, %v509_v20  ;;  %v3226_v32 = vor.u32 %v3854_v26, %v3223_v27  ;;  %v3810_v35 = vld [vmem:[%s4433_s12 + $0x64] sm:$0xf]  ;;  %v3207_v36 = vld [vmem:[%s4433_s12 + $0x68] sm:$0xf0]  ;;  %v521_v55 = vor.u32 %v519_v50, %v509_v20  ;;  %vm4584_vm3 = vmand %vm573_vm2, %vm422_vm0  ;;  %s3940_s5 = smul.u32 80, %s4273_s18 }
  0x53   : > { %1033 = vmatpush.bf16.msra.mxu2 %v3274_v57  ;;  %v433_v34 = vrot.slane %v431_v24, 1  ;;  %v3341_v37 = vld [vmem:[#allocation7 + $0x228] sm:$0xf]  ;;  %v3885_v38 = vld [vmem:[#allocation7 + $0x234] sm:$0xf0]  ;;  %v4517_v44 = vor.u32 %v3810_v35, %v3207_v36  ;;  %v447_v57 = vshrl.u32 %v4500_v13, 16 }
  0x54   : > { %v429_v33 = vor.u32 %v428_v23, %v424_v22  ;;  %v3342_v39 = vor.u32 %v3885_v38, %v3341_v37  ;;  %v3325_v40 = vld [vmem:[#allocation7 + $0x208] sm:$0xf]  ;;  %v3881_v41 = vld [vmem:[#allocation7 + $0x214] sm:$0xf0]  ;;  %v3173_v45 = vld [vmem:[%s4433_s12 + $0x20] sm:$0xf]  ;;  %s3004_s22 = scalar_lea.hbm %s5666_s4, %s3940_s5 }
  0x55   : > { %936 = vmatpush.bf16.msra.mxu0 %v3254_v3  ;;  %v3803_v46 = vld [vmem:[%s4433_s12 + $0x24] sm:$0xf0]  ;;  %v3326_v47 = vor.u32 %v3881_v41, %v3325_v40  ;;  %v3877_v49 = vld [vmem:[#allocation7 + $0x1f4] sm:$0xf0]  ;;  %v523_v51 = vshll.u32 %v4517_v44, 16  ;;  %v4558_v37 = vld [vmem:[%s4441_s29] sm:$0xff] }
  0x56   : > { %v4515_v42 = vsel %vm422_vm0, %v429_v33, %v433_v34  ;;  %1127 = vmatpush.bf16.msrb.mxu1 %v3342_v39  ;;  %v3309_v48 = vld [vmem:[#allocation7 + $0x1e8] sm:$0xf]  ;;  %v4527_v52 = vor.u32 %v3803_v46, %v3173_v45  ;;  %v3873_v53 = vld [vmem:[#allocation7 + $0x1d4] sm:$0xf0]  ;;  %v3215_v63 = vld [vmem:[%s4433_s12 + $0x78] sm:$0xf0]  ;;  %v560_v45 = vunpack.c.h.b16 %v4558_v37 }
  0x57   : > { %1034 = vmatpush.bf16.msra.mxu2 %v3258_v8  ;;  %v525_v56 = vrot.slane %v523_v51, 1  ;;  %v3277_v0 = vld [vmem:[#allocation7 + $0x1a8] sm:$0xf]  ;;  %v3869_v1 = vld [vmem:[#allocation7 + $0x1b4] sm:$0xf0]  ;;  %vm577_vm4 = vcmask 1046528  }
  0x58   : > { %v451_v58 = vshll.u32 %v4527_v52, 16  ;;  %v3278_v3 = vor.u32 %v3869_v1, %v3277_v0  ;;  %v3261_v4 = vld [vmem:[#allocation7 + $0x188] sm:$0xf]  ;;  %v3865_v5 = vld [vmem:[#allocation7 + $0x194] sm:$0xf0]  ;;  %v463_v35 = vshrl.u32 %v4527_v52, 16 }
  0x59   : > { %937 = vmatpush.bf16.msra.mxu0 %v3238_v16  ;;  %v4534_v60 = vsel %vm422_vm0, %v521_v55, %v525_v56  ;;  %v3181_v9 = vld [vmem:[%s4433_s12 + $0x30] sm:$0xf]  ;;  %v3805_v10 = vld [vmem:[%s4433_s12 + $0x34] sm:$0xf0]  ;;  %v3262_v11 = vor.u32 %v3865_v5, %v3261_v4  ;;  %v3245_v14 = vld [vmem:[#allocation7 + $0x168] sm:$0xf] }
  0x5a   : > { %1128 = vmatpush.bf16.msrb.mxu1 %v3326_v47  ;;  %v453_v62 = vrot.slane %v451_v58, 1  ;;  %v3861_v15 = vld [vmem:[#allocation7 + $0x174] sm:$0xf0]  ;;  %v535_v16 = vshrl.u32 %v4517_v44, 16  ;;  %v4553_v19 = vor.u32 %v3805_v10, %v3181_v9  ;;  %v3373_v20 = vld [vmem:[#allocation7 + $0x268] sm:$0xf]  ;;  %v4571_v47 = vpack.c.b16 %v560_v45, %v560_v45 }
  0x5b   : > { %1035 = vmatpush.bf16.msra.mxu2 %v3242_v18  ;;  %v3893_v21 = vld [vmem:[#allocation7 + $0x274] sm:$0xf0]  ;;  %v3357_v23 = vld [vmem:[#allocation7 + $0x248] sm:$0xf]  ;;  %v3246_v24 = vor.u32 %v3861_v15, %v3245_v14  ;;  %v3798_v58 = vld [vmem:[%s4433_s12 + $0x4] sm:$0xf] }
  0x5c   : > { %v3374_v22 = vor.u32 %v3893_v21, %v3373_v20  ;;  %v3889_v26 = vld [vmem:[#allocation7 + $0x254] sm:$0xf0]  ;;  %v3229_v27 = vld [vmem:[#allocation7 + $0x148] sm:$0xf]  ;;  %v537_v33 = vor.u32 %v535_v16, %v525_v56  ;;  %v467_v36 = vshll.u32 %v4553_v19, 16  ;;  %v465_v40 = vor.u32 %v463_v35, %v453_v62  ;;  %5690 = vst [vmem:[#allocation18_spill] sm:$0xff] %v4571_v47 }
  0x5d   : > { %938 = vmatpush.bf16.msra.mxu0 %v3222_v29  ;;  %v3857_v29 = vld [vmem:[#allocation7 + $0x154] sm:$0xf0]  ;;  %v568_v51 = vshll.u32 %v4571_v47, 16  ;;  %v479_v55 = vshrl.u32 %v4553_v19, 16  ;;  %v3800_v0 = vld [vmem:[%s4433_s12 + $0x14] sm:$0xf] }
  0x5e   : > { %3383 = vmatmul.msk.bf16.gmra.mxu1 %vm906_vm1, %v4506_v31  ;;  %3391 = vmatmul.msk.bf16.gmra.mxu3 %vm906_vm1, %v4506_v31  ;;  %v3230_v38 = vor.u32 %v3857_v29, %v3229_v27  ;;  %v469_v41 = vrot.slane %v467_v36, 1  ;;  %v3167_v1 = vld [vmem:[%s4433_s12 + $0x18] sm:$0xf0]  ;;  %v3197_v9 = vld [vmem:[%s4433_s12 + $0x50] sm:$0xf]  ;;  %s3005_s7 = sshll.u32 %s330_s23, 4  ;;  %s3006_s7 = int_to_ptr.vmem [resolvable:$true] %s3005_s7 }
  0x5f   : > { %1036 = vmatpush.bf16.msra.mxu2 %v3226_v32  ;;  %1182 = vmatpush.bf16.msrb.mxu3 %v3374_v22  ;;  %v3358_v32 = vor.u32 %v3889_v26, %v3357_v23  ;;  %v4605_v4 = vor.u32 %v3800_v0, %v3167_v1  ;;  %v3809_v10 = vld [vmem:[%s4433_s12 + $0x54] sm:$0xf0]  ;;  %v3802_v27 = vld [vmem:[%s4433_s12 + $0x24] sm:$0xf]  ;;  %v3175_v29 = vld [vmem:[%s4433_s12 + $0x28] sm:$0xf0] }
  0x60   : > { %939 = vmatmul.bf16.vlgmr.msra.gmra.mxu0 %v4515_v42  ;;  %v4569_v46 = vsel %vm422_vm0, %v465_v40, %v469_v41  ;;  %v4614_v16 = vor.u32 %v3809_v10, %v3197_v9  ;;  %v3811_v35 = vld [vmem:[%s4433_s12 + $0x64] sm:$0xf0]  ;;  %s3007_s8 = sshll.u32 %s3004_s22, 4  ;;  %s2992_s9 = scalar_lea.sflag [#allocation4], %s4429_s3  ;;  %s3008_s8 = int_to_ptr.hbm [resolvable:$true] %s3007_s8 }
  0x61   : > { %986 = vmatpush.bf16.msrb.mxu0 %v4455_v7  ;;  %v3310_v7 = vor.u32 %v3877_v49, %v3309_v48  ;;  %v3189_v48 = vld [vmem:[%s4433_s12 + $0x40] sm:$0xf]  ;;  %v3807_v49 = vld [vmem:[%s4433_s12 + $0x44] sm:$0xf0]  ;;  %v443_v15 = vshll.u32 %v4605_v4, 16  ;;  %v455_v36 = vshrl.u32 %v4605_v4, 16 }
  0x62   : > { %1037 = vmatmul.bf16.vlgmr.msra.gmra.mxu2 %v4515_v42  ;;  %v499_v22 = vshll.u32 %v4614_v16, 16  ;;  %s4201_s30 = sshra.s32 %s3008_s8, 4  ;;  %s4207_s2 = scalar_lea.hbm %s5666_s4, 160  ;;  %s4202_s30 = int_to_ptr.hbm [resolvable:$true] %s4201_s30 }
  0x63   : > { %1084 = vmatpush.bf16.msrb.mxu2 %v4457_v12  ;;  %v3293_v12 = vld [vmem:[#allocation7 + $0x1c8] sm:$0xf]  ;;  %1129 = vmatpush.bf16.msrb.mxu1 %v3310_v7  ;;  %v4579_v7 = vor.u32 %v3807_v49, %v3189_v48  ;;  %v445_v20 = vrot.slane %v443_v15, 1  ;;  %v511_v48 = vshrl.u32 %v4614_v16, 16  ;;  %v3375_v15 = vld [vmem:[#allocation7 + $0x278] sm:$0xf0]  ;;  %p4208_p10 = scmp.lt.s32.totalorder %s4202_s30, %s5666_s4 }
  0x64   : > { %v3294_v59 = vor.u32 %v3873_v53, %v3293_v12  ;;  %1183 = vmatpush.bf16.msrb.mxu3 %v3358_v32  ;;  %v570_v53 = vrot.slane %v568_v51, 1  ;;  %v501_v26 = vrot.slane %v499_v22, 1  ;;  %s4203_s11 = scalar_lea.hbm %s4202_s30, 80 }
  0x65   : > { %987 = vmatpush.bf16.msrb.mxu0 %v4460_v17  ;;  %v3812_v17 = vld [vmem:[%s4433_s12 + $0x74] sm:$0xf]  ;;  %v483_v56 = vshll.u32 %v4579_v7, 16  ;;  %v495_v21 = vshrl.u32 %v4579_v7, 16  ;;  %p4204_p1 = scmp.ne.s32.totalorder %s4202_s30, %s4203_s11  ;;  %p4209_p12 = scmp.lt.s32.totalorder %s4207_s2, %s4203_s11 }
  0x66   : > { %v4545_v8 = vor.u32 %v3812_v17, %v3215_v63  ;;  %v513_v51 = vor.u32 %v511_v48, %v501_v26  ;;  %v3875_v48 = vld [vmem:[#allocation7 + $0x1ec] sm:$0xf] }
  0x67   : > { %1085 = vmatpush.bf16.msrb.mxu2 %v4465_v25  ;;  %v449_v25 = vor.u32 %v447_v57, %v433_v34  ;;  %1130 = vmatpush.bf16.msrb.mxu1 %v3294_v59  ;;  %v3159_v59 = vld [vmem:[%s4433_s12 + $0x8] sm:$0xf0]  ;;  %v485_v17 = vrot.slane %v483_v56, 1  ;;  %v3813_v56 = vld [vmem:[%s4433_s12 + $0x74] sm:$0xf0]  ;;  %p4205_p4 = pnand %p4204_p1, %p4398_p7  ;;  %p4210_p13 = por %p4209_p12, %p4208_p10 }
  0x68   : > { %v539_v18 = vshll.u32 %v4545_v8, 16  ;;  %v546_v50 = vshrl.u32 %v4545_v8, 16  ;;  %v4594_v63 = vor.u32 %v3798_v58, %v3159_v59 }
  0x69   : > { %v4543_v6 = vsel %vm422_vm0, %v449_v25, %v453_v62  ;;  %v481_v62 = vor.u32 %v479_v55, %v469_v41  ;;  %v457_v41 = vor.u32 %v455_v36, %v445_v20  ;;  %v3213_v55 = vld [vmem:[%s4433_s12 + $0x70] sm:$0xf]  ;;  %v3879_v36 = vld [vmem:[#allocation7 + $0x20c] sm:$0xf]  ;;  %p4206_p8 = pneg %p4205_p4 }
  0x6a   : > { %v541_v34 = vrot.slane %v539_v18, 1  ;;  %v438_v5 = vshll.u32 %v4594_v63, 16  ;;  %v4655_v59 = vor.u32 %v3813_v56, %v3213_v55  ;;  %v3525_v55 = vld [vmem:[#allocation7 + $0xe0] sm:$0xf]  ;;  %v3844_v56 = vld [vmem:[#allocation7 + $0xec] sm:$0xf0] }
  0x6b   : > { %1131 = vmatpush.bf16.msrb.mxu1 %v3278_v3  ;;  %v4603_v3 = vsel %vm422_vm0, %v481_v62, %v485_v17  ;;  %p4211_p0 = pnand %p4210_p13, %p4206_p8 }
  0x6c   : > { %v4561_v39 = vsel %vm422_vm0, %v537_v33, %v541_v34  ;;  %v548_v12 = vor.u32 %v546_v50, %v541_v34  ;;  %v440_v14 = vrot.slane %v438_v5, 1  ;;  %v4629_v33 = vor.u32 %v3802_v27, %v3175_v29  ;;  %v3205_v34 = vld [vmem:[%s4433_s12 + $0x60] sm:$0xf]  ;;  %v3883_v27 = vld [vmem:[#allocation7 + $0x22c] sm:$0xf] }
  0x6d   : > { %v4637_v40 = vor.u32 %v3811_v35, %v3205_v34  ;;  %v531_v0 = vshll.u32 %v4655_v59, 16 }
  0x6e   : > { %3384 = vmatmul.msk.bf16.gmra.mxu1 %vm906_vm1, %v4534_v60  ;;  %3392 = vmatmul.msk.bf16.gmra.mxu3 %vm906_vm1, %v4534_v60  ;;  %v4592_v25 = vsel %vm4584_vm3, %v548_v12, %v570_v53  ;;  %v471_v58 = vshrl.u32 %v4629_v33, 16 }
  0x6f   : > { %1132 = vmatpush.bf16.msrb.mxu1 %v3262_v11  ;;  %v436_v11 = vshrl.u32 %v4594_v63, 16  ;;  %v515_v49 = vshll.u32 %v4637_v40, 16  ;;  %v533_v9 = vrot.slane %v531_v0, 1  ;;  %v3887_v0 = vld [vmem:[#allocation7 + $0x24c] sm:$0xf] }
  0x70   : > { %944 = vmatmul.bf16.gmra.mxu0 %v4543_v6 }
  0x71   : > { %v441_v18 = vor.u32 %v440_v14, %v436_v11  ;;  %v517_v12 = vrot.slane %v515_v49, 1  ;;  %v559_v11 = vunpack.c.l.b16 %v4558_v37  ;;  %v3343_v37 = vld [vmem:[#allocation7 + $0x238] sm:$0xf0] }
  0x72   : > { %1042 = vmatmul.bf16.gmra.mxu2 %v4543_v6  ;;  %v3346_v29 = vor.u32 %v3883_v27, %v3343_v37  ;;  %v3311_v49 = vld [vmem:[#allocation7 + $0x1f8] sm:$0xf0]  ;;  %v3493_v37 = vld [vmem:[#allocation7 + $0xa0] sm:$0xf] }
  0x73   : > { %1133 = vmatpush.bf16.msrb.mxu1 %v3246_v24  ;;  %v4619_v23 = vsel %vm422_vm0, %v441_v18, %v445_v20  ;;  %v497_v24 = vor.u32 %v495_v21, %v485_v17  ;;  %v4648_v53 = vsel %vm422_vm0, %v513_v51, %v517_v12  ;;  %v527_v17 = vshrl.u32 %v4637_v40, 16  ;;  %v3279_v27 = vld [vmem:[#allocation7 + $0x1b8] sm:$0xf0] }
  0x74   : > { %v4672_v14 = vpack.c.b16 %v559_v11, %v559_v11  ;;  %v543_v20 = vshrl.u32 %v4655_v59, 16  ;;  %1225 = vmatpush.bf16.msra.mxu0 %v3346_v29  ;;  %v3314_v51 = vor.u32 %v3875_v48, %v3311_v49  ;;  %v3359_v11 = vld [vmem:[#allocation7 + $0x258] sm:$0xf0]  ;;  %v3863_v49 = vld [vmem:[#allocation7 + $0x18c] sm:$0xf] }
  0x75   : > { %v4627_v32 = vsel %vm422_vm0, %v497_v24, %v501_v26  ;;  %v529_v5 = vor.u32 %v527_v17, %v517_v12  ;;  %v3295_v17 = vld [vmem:[#allocation7 + $0x1d8] sm:$0xf0] }
  0x76   : > { %5693 = vst [vmem:[#allocation19_spill] sm:$0xff] %v4672_v14  ;;  %v564_v21 = vshll.u32 %v4672_v14, 16  ;;  %v545_v24 = vor.u32 %v543_v20, %v533_v9 }
  0x77   : > { %1134 = vmatpush.bf16.msrb.mxu1 %v3230_v38  ;;  %v459_v38 = vshll.u32 %v4629_v33, 16  ;;  %v4667_v10 = vsel %vm422_vm0, %v529_v5, %v533_v9 }
  0x78   : > { %v566_v26 = vrot.slane %v564_v21, 1 }
  0x79   : > { %v461_v45 = vrot.slane %v459_v38, 1  ;;  %v3327_v38 = vld [vmem:[#allocation7 + $0x218] sm:$0xf0] }
  0x7a   : > { %v4683_v34 = vsel %vm4584_vm3, %v545_v24, %v566_v26  ;;  %v3867_v26 = vld [vmem:[#allocation7 + $0x1ac] sm:$0xf] }
  0x7b   : > { %v4642_v50 = vsel %vm422_vm0, %v457_v41, %v461_v45  ;;  %v473_v62 = vor.u32 %v471_v58, %v461_v45  ;;  %v3330_v41 = vor.u32 %v3879_v36, %v3327_v38  ;;  %v3526_v58 = vor.u32 %v3844_v56, %v3525_v55  ;;  %v3836_v36 = vld [vmem:[#allocation7 + $0xac] sm:$0xf0]  ;;  %v3477_v55 = vld [vmem:[#allocation7 + $0x80] sm:$0xf] }
  0x7c   : > { %v3282_v29 = vor.u32 %v3867_v26, %v3279_v27 }
  0x7d   : > { %v4661_v1 = vsel %vm422_vm0, %v473_v62, %v4478_v43  ;;  %v3891_v43 = vld [vmem:[#allocation7 + $0x26c] sm:$0xf]  ;;  %1226 = vmatpush.bf16.msra.mxu0 %v3330_v41  ;;  %1547 = vmatpush.bf16.msra.mxu1 %v3526_v58  ;;  %v3494_v41 = vor.u32 %v3836_v36, %v3493_v37  ;;  %v3445_v36 = vld [vmem:[#allocation7 + $0x40] sm:$0xf] }
  0x7e   : > { %3385 = vmatmul.msk.bf16.gmra.mxu1 %vm906_vm1, %v4561_v39  ;;  %3393 = vmatmul.msk.bf16.gmra.mxu3 %vm906_vm1, %v4561_v39  ;;  %v3378_v18 = vor.u32 %v3891_v43, %v3375_v15  ;;  %v3871_v62 = vld [vmem:[#allocation7 + $0x1cc] sm:$0xf]  ;;  %v3362_v43 = vor.u32 %v3887_v0, %v3359_v11  ;;  %v3509_v15 = vld [vmem:[#allocation7 + $0xc0] sm:$0xf]  ;;  %v3247_v11 = vld [vmem:[#allocation7 + $0x178] sm:$0xf0] }
  0x7f   : > { %v3298_v9 = vor.u32 %v3871_v62, %v3295_v17  ;;  %v3832_v62 = vld [vmem:[#allocation7 + $0x8c] sm:$0xf0]  ;;  %v3855_v37 = vld [vmem:[#allocation7 + $0x14c] sm:$0xf] }
  0x80   : > { %949 = vmatmul.bf16.gmra.mxu0 %v4569_v46  ;;  %1280 = vmatpush.bf16.msra.mxu2 %v3378_v18  ;;  %v3840_v18 = vld [vmem:[#allocation7 + $0xcc] sm:$0xf0]  ;;  %v3478_v17 = vor.u32 %v3832_v62, %v3477_v55  ;;  %v3850_v62 = vld [vmem:[#allocation7 + $0x124] sm:$0xf] }
  0x81   : > { %1227 = vmatpush.bf16.msra.mxu0 %v3314_v51  ;;  %v3510_v21 = vor.u32 %v3840_v18, %v3509_v15  ;;  %v3263_v51 = vld [vmem:[#allocation7 + $0x198] sm:$0xf0] }
  0x82   : > { %1047 = vmatmul.bf16.gmra.mxu2 %v4569_v46  ;;  %v3266_v58 = vor.u32 %v3863_v49, %v3263_v51  ;;  %v3824_v51 = vld [vmem:[#allocation7 + $0x4c] sm:$0xf0] }
  0x83   : > { %1548 = vmatpush.bf16.msra.mxu1 %v3510_v21  ;;  %v3828_v21 = vld [vmem:[#allocation7 + $0x6c] sm:$0xf0]  ;;  %v3446_v55 = vor.u32 %v3824_v51, %v3445_v36  ;;  %v3413_v36 = vld [vmem:[#allocation7] sm:$0xf] }
  0x84   : > { %1281 = vmatpush.bf16.msra.mxu2 %v3362_v43  ;;  %v3461_v43 = vld [vmem:[#allocation7 + $0x60] sm:$0xf]  ;;  %v3816_v51 = vld [vmem:[#allocation7 + $0xc] sm:$0xf0] }
  0x85   : > { %1228 = vmatpush.bf16.msra.mxu0 %v3298_v9  ;;  %v3859_v9 = vld [vmem:[#allocation7 + $0x16c] sm:$0xf]  ;;  %v3462_v26 = vor.u32 %v3828_v21, %v3461_v43  ;;  %v3820_v43 = vld [vmem:[#allocation7 + $0x2c] sm:$0xf0] }
  0x86   : > { %v3250_v18 = vor.u32 %v3859_v9, %v3247_v11  ;;  %v3429_v9 = vld [vmem:[#allocation7 + $0x20] sm:$0xf]  ;;  %v3852_v21 = vld [vmem:[#allocation7 + $0x12c] sm:$0xf0] }
  0x87   : > { %1549 = vmatpush.bf16.msra.mxu1 %v3494_v41 }
  0x89   : > { %1229 = vmatpush.bf16.msra.mxu0 %v3282_v29  ;;  %v3231_v29 = vld [vmem:[#allocation7 + $0x158] sm:$0xf0] }
  0x8a   : > { %v3234_v49 = vor.u32 %v3855_v37, %v3231_v29  ;;  %v3430_v37 = vor.u32 %v3820_v43, %v3429_v9 }
  0x8b   : > { %1550 = vmatpush.bf16.msra.mxu1 %v3478_v17  ;;  %v3559_v17 = vld [vmem:[#allocation7 + $0x130] sm:$0xf0] }
  0x8c   : > { %v3562_v11 = vor.u32 %v3850_v62, %v3559_v17 }
  0x8d   : > { %1230 = vmatpush.bf16.msra.mxu0 %v3266_v58 }
  0x8e   : > { %3386 = vmatmul.msk.bf16.gmra.mxu1 %vm906_vm1, %v4592_v25  ;;  %3394 = vmatmul.msk.bf16.gmra.mxu3 %vm906_vm1, %v4592_v25 }
  0x8f   : > { %1551 = vmatpush.bf16.msra.mxu1 %v3462_v26 }
  0x90   : > { %954 = vmatmul.bf16.gmra.mxu0 %v4603_v3 }
  0x91   : > { %1231 = vmatpush.bf16.msra.mxu0 %v3250_v18  ;;  %v3557_v18 = vld [vmem:[#allocation7 + $0x120] sm:$0xf] }
  0x92   : > { %1052 = vmatmul.bf16.gmra.mxu2 %v4603_v3  ;;  %v3558_v29 = vor.u32 %v3852_v21, %v3557_v18 }
  0x93   : > { %1552 = vmatpush.bf16.msra.mxu1 %v3446_v55  ;;  %v3848_v55 = vld [vmem:[#allocation7 + $0x10c] sm:$0xf0] }
  0x94   : > { %1602 = vmatpush.bf16.msra.mxu3 %v3558_v29  ;;  %v3838_v29 = vld [vmem:[#allocation7 + $0xc4] sm:$0xf] }
  0x95   : > { %1232 = vmatpush.bf16.msra.mxu0 %v3234_v49  ;;  %v3541_v49 = vld [vmem:[#allocation7 + $0x100] sm:$0xf] }
  0x96   : > { %v3542_v62 = vor.u32 %v3848_v55, %v3541_v49 }
  0x97   : > { %1553 = vmatpush.bf16.msra.mxu1 %v3430_v37 }
  0x98   : > { %1603 = vmatpush.bf16.msra.mxu3 %v3542_v62 }
  0x9e   : > { %1135 = vmatmul.bf16.vlgmr.msrb.gmra.mxu1 %v4515_v42  ;;  %3395 = vmatmul.msk.bf16.vlgmr.msrb.gmra.mxu3 %vm906_vm1, %v4619_v23 }
  0xa0   : > { %959 = vmatmul.bf16.gmra.mxu0 %v4627_v32 }
  0xa2   : > { %1057 = vmatmul.bf16.gmra.mxu2 %v4627_v32 }
  0xae   : > { %1140 = vmatmul.bf16.gmra.mxu1 %v4543_v6  ;;  %3396 = vmatmul.msk.bf16.gmra.mxu3 %vm906_vm1, %v4642_v50 }
  0xb0   : > { %964 = vmatmul.bf16.gmra.mxu0 %v4648_v53 }
  0xb2   : > { %1062 = vmatmul.bf16.gmra.mxu2 %v4648_v53 }
  0xbe   : > { %1145 = vmatmul.bf16.gmra.mxu1 %v4569_v46  ;;  %3397 = vmatmul.msk.bf16.gmra.mxu3 %vm906_vm1, %v4661_v1 }
  0xc0   : > { %969 = vmatmul.bf16.gmra.mxu0 %v4667_v10 }
  0xc2   : > { %1067 = vmatmul.bf16.gmra.mxu2 %v4667_v10 }
  0xcb   : > { %v4676_v22 = vpop.f32.mrf.mxu1 }
  0xce   : > { %1150 = vmatmul.bf16.gmra.mxu1 %v4603_v3  ;;  %3398 = vmatmul.msk.bf16.gmra.mxu3 %vm906_vm1, %v4484_v54 }
  0xd0   : > { %974 = vmatmul.bf16.gmra.mxu0 %v4683_v34 }
  0xd1   : > { %v4685_v35 = vpop.f32.mrf.mxu3 }
  0xd2   : > { %1072 = vmatmul.bf16.gmra.mxu2 %v4683_v34 }
  0xd3   : > { %v4689_v45 = vpop.f32.mrf.mxu1 }
  0xd9   : > { %v4691_v57 = vpop.f32.mrf.mxu3 }
  0xdb   : > { %v4693_v12 = vpop.f32.mrf.mxu1 }
  0xdd   : > { %v4698_v5 = vpop.f32.mrf.mxu0 }
  0xde   : > { %1155 = vmatmul.bf16.gmra.mxu1 %v4627_v32  ;;  %3399 = vmatmul.msk.bf16.gmra.mxu3 %vm906_vm1, %v4506_v31 }
  0xe0   : > { %3379 = vmatmul.msk.bf16.vlgmr.msrb.gmra.mxu0 %vm906_vm1, %v4619_v23 }
  0xe1   : > { %v4700_v20 = vpop.f32.mrf.mxu3 }
  0xe2   : > { %3387 = vmatmul.msk.bf16.vlgmr.msrb.gmra.mxu2 %vm906_vm1, %v4619_v23 }
  0xe3   : > { %v4706_v24 = vpop.f32.mrf.mxu1  ;;  %1700 = vmatpush.bf16.msrb.mxu2 %v3562_v11 }
  0xe5   : > { %v4708_v38 = vpop.f32.mrf.mxu2  ;;  %v4710_v48 = vpop.f32.mrf.mxu0 }
  0xe6   : > { %5694 = vst [vmem:[#allocation20_spill] sm:$0xff] %v4708_v38  ;;  %v3842_v38 = vld [vmem:[#allocation7 + $0xe4] sm:$0xf] }
  0xe9   : > { %v4712_v56 = vpop.f32.mrf.mxu3 }
  0xeb   : > { %v4714_v0 = vpop.f32.mrf.mxu1 }
  0xed   : > { %v4716_v15 = vpop.f32.mrf.mxu2  ;;  %v4721_v27 = vpop.f32.mrf.mxu0 }
  0xee   : > { %5695 = vst [vmem:[#allocation21_spill] sm:$0xff] %v4716_v15  ;;  %1160 = vmatmul.bf16.gmra.mxu1 %v4648_v53  ;;  %3400 = vmatmul.msk.bf16.gmra.mxu3 %vm906_vm1, %v4534_v60  ;;  %v3414_v15 = vor.u32 %v3816_v51, %v3413_v36  ;;  %v3511_v36 = vld [vmem:[#allocation7 + $0xd0] sm:$0xf0] }
  0xef   : > { %5696 = vst [vmem:[#allocation22_spill] sm:$0xff] %v4721_v27  ;;  %v3527_v27 = vld [vmem:[#allocation7 + $0xf0] sm:$0xf0]  ;;  %v3514_v51 = vor.u32 %v3838_v29, %v3511_v36 }
  0xf0   : > { %3380 = vmatmul.msk.bf16.gmra.mxu0 %vm906_vm1, %v4642_v50  ;;  %1554 = vmatpush.bf16.msra.mxu1 %v3414_v15  ;;  %v3530_v9 = vor.u32 %v3842_v38, %v3527_v27 }
  0xf1   : > { %v4723_v41 = vpop.f32.mrf.mxu3 }
  0xf2   : > { %3388 = vmatmul.msk.bf16.gmra.mxu2 %vm906_vm1, %v4642_v50  ;;  %1645 = vmatpush.bf16.msrb.mxu0 %v3530_v9 }
  0xf3   : > { %v4729_v58 = vpop.f32.mrf.mxu1 }
  0xf5   : > { %v4731_v26 = vpop.f32.mrf.mxu2  ;;  %v4733_v14 = vpop.f32.mrf.mxu0 }
  0xf6   : > { %5697 = vst [vmem:[#allocation23_spill] sm:$0xff] %v4731_v26  ;;  %1646 = vmatpush.bf16.msrb.mxu0 %v3514_v51  ;;  %v3495_v26 = vld [vmem:[#allocation7 + $0xb0] sm:$0xf0] }
  0xf9   : > { %v4735_v47 = vpop.f32.mrf.mxu3 }
  0xfb   : > { %v4737_v17 = vpop.f32.mrf.mxu1 }
  0xfd   : > { %v4739_v11 = vpop.f32.mrf.mxu2  ;;  %v4744_v43 = vpop.f32.mrf.mxu0 }
  0xfe   : > { %5698 = vst [vmem:[#allocation24_spill] sm:$0xff] %v4739_v11  ;;  %1165 = vmatmul.bf16.gmra.mxu1 %v4667_v10  ;;  %3401 = vmatmul.msk.bf16.gmra.mxu3 %vm906_vm1, %v4561_v39 }
 0x100   : > { %3381 = vmatmul.msk.bf16.gmra.mxu0 %vm906_vm1, %v4661_v1 }
 0x101   : > { %v4746_v18 = vpop.f32.mrf.mxu3 }
 0x102   : > { %3389 = vmatmul.msk.bf16.gmra.mxu2 %vm906_vm1, %v4661_v1 }
 0x103   : > { %v4752_v15 = vpop.f32.mrf.mxu1 }
 0x105   : > { %v4754_v38 = vpop.f32.mrf.mxu2  ;;  %v4756_v27 = vpop.f32.mrf.mxu0 }
 0x106   : > { %5699 = vst [vmem:[#allocation25_spill] sm:$0xff] %v4754_v38 }
 0x109   : > { %v4758_v21 = vpop.f32.mrf.mxu3 }
 0x10b   : > { %v4760_v37 = vpop.f32.mrf.mxu1 }
 0x10d   : > { %v4762_v49 = vpop.f32.mrf.mxu2  ;;  %v955_v55 = vpop.f32.mrf.mxu0 }
 0x10e   : > { %5700 = vst [vmem:[#allocation26_spill] sm:$0xff] %v4762_v49  ;;  %1170 = vmatmul.bf16.gmra.mxu1 %v4683_v34  ;;  %3402 = vmatmul.msk.bf16.gmra.mxu3 %vm906_vm1, %v4592_v25  ;;  %v4768_v62 = vadd.f32 %v4676_v22, %v955_v55  ;;  %v3834_v55 = vld [vmem:[#allocation7 + $0xa4] sm:$0xf] }
 0x110   : > { %5701 = vst [vmem:[#allocation27_spill] sm:$0xff] %v4768_v62  ;;  %1233 = vmatmul.bf16.vlgmr.msra.gmra.mxu0 %v4515_v42  ;;  %v3498_v62 = vor.u32 %v3834_v55, %v3495_v26 }
 0x111   : > { %v4770_v9 = vpop.f32.mrf.mxu3 }
 0x112   : > { %3403 = vmatmul.msk.bf16.vlgmr.msra.gmra.mxu2 %vm906_vm1, %v4619_v23  ;;  %1647 = vmatpush.bf16.msrb.mxu0 %v3498_v62 }
 0x113   : > { %v4775_v29 = vpop.f32.mrf.mxu1 }
 0x115   : > { %v1053_v36 = vpop.f32.mrf.mxu2  ;;  %v957_v38 = vpop.f32.mrf.mxu0 }
 0x116   : > { %v4778_v49 = vadd.f32 %v4685_v35, %v1053_v36  ;;  %v4781_v11 = vadd.f32 %v4689_v45, %v957_v38 }
 0x118   : > { %5702 = vst [vmem:[#allocation28_spill] sm:$0xff] %v4778_v49 }
 0x119   : > { %v4783_v51 = vpop.f32.mrf.mxu3 }
 0x11b   : > { %v1136_v22 = vpop.f32.mrf.mxu1 }
 0x11d   : > { %v1055_v42 = vpop.f32.mrf.mxu2  ;;  %v960_v35 = vpop.f32.mrf.mxu0 }
 0x11e   : > { %1555 = vmatmul.bf16.vlgmr.msra.gmra.mxu1 %v4496_v2  ;;  %3571 = vmatmul.msk.bf16.vlgmr.msra.gmra.mxu3 %vm906_vm1, %v4594_v63  ;;  %v4789_v23 = vadd.f32 %v4691_v57, %v1055_v42  ;;  %v4792_v45 = vadd.f32 %v4693_v12, %v960_v35 }
 0x120   : > { %5703 = vst [vmem:[#allocation29_spill] sm:$0xff] %v4789_v23  ;;  %1238 = vmatmul.bf16.gmra.mxu0 %v4543_v6 }
 0x121   : > { %v1185_v38 = vpop.f32.mrf.mxu3 }
 0x122   : > { %v4794_v36 = vadd.f32 %v1185_v38, %v1136_v22  ;;  %3404 = vmatmul.msk.bf16.gmra.mxu2 %vm906_vm1, %v4642_v50  ;;  %v3830_v22 = vld [vmem:[#allocation7 + $0x84] sm:$0xf]  ;;  %v3479_v38 = vld [vmem:[#allocation7 + $0x90] sm:$0xf0] }
 0x123   : > { %v1138_v26 = vpop.f32.mrf.mxu1  ;;  %v3482_v23 = vor.u32 %v3830_v22, %v3479_v38  ;;  %v3543_v22 = vld [vmem:[#allocation7 + $0x110] sm:$0xf0] }
 0x125   : > { %v1058_v55 = vpop.f32.mrf.mxu2  ;;  %v962_v57 = vpop.f32.mrf.mxu0  ;;  %1648 = vmatpush.bf16.msrb.mxu0 %v3482_v23 }
 0x126   : > { %v4800_v49 = vadd.f32 %v4700_v20, %v1058_v55  ;;  %v4803_v42 = vadd.f32 %v4706_v24, %v962_v57 }
 0x128   : > { %5704 = vst [vmem:[#allocation30_spill] sm:$0xff] %v4800_v49 }
 0x129   : > { %v1187_v62 = vpop.f32.mrf.mxu3 }
 0x12a   : > { %v4805_v12 = vadd.f32 %v1187_v62, %v1138_v26  ;;  %v3846_v62 = vld [vmem:[#allocation7 + $0x104] sm:$0xf] }
 0x12b   : > { %v1141_v35 = vpop.f32.mrf.mxu1  ;;  %v3546_v38 = vor.u32 %v3846_v62, %v3543_v22 }
 0x12d   : > { %v1060_v6 = vpop.f32.mrf.mxu2  ;;  %v965_v20 = vpop.f32.mrf.mxu0  ;;  %1701 = vmatpush.bf16.msrb.mxu2 %v3546_v38 }
 0x12e   : > { %1560 = vmatmul.bf16.gmra.mxu1 %v4500_v13  ;;  %3572 = vmatmul.msk.bf16.gmra.mxu3 %vm906_vm1, %v4605_v4  ;;  %v4811_v50 = vadd.f32 %v4712_v56, %v1060_v6  ;;  %v4814_v24 = vadd.f32 %v4714_v0, %v965_v20  ;;  %v3826_v20 = vld [vmem:[#allocation7 + $0x64] sm:$0xf] }
 0x130   : > { %5705 = vst [vmem:[#allocation31_spill] sm:$0xff] %v4811_v50  ;;  %1243 = vmatmul.bf16.gmra.mxu0 %v4569_v46 }
 0x131   : > { %v1190_v26 = vpop.f32.mrf.mxu3 }
 0x132   : > { %v4816_v55 = vadd.f32 %v1190_v26, %v1141_v35  ;;  %3405 = vmatmul.msk.bf16.gmra.mxu2 %vm906_vm1, %v4661_v1  ;;  %v3463_v26 = vld [vmem:[#allocation7 + $0x70] sm:$0xf0] }
 0x133   : > { %v1143_v57 = vpop.f32.mrf.mxu1  ;;  %v3466_v1 = vor.u32 %v3826_v20, %v3463_v26  ;;  %v3447_v26 = vld [vmem:[#allocation7 + $0x50] sm:$0xf0] }
 0x135   : > { %v1063_v49 = vpop.f32.mrf.mxu2  ;;  %v967_v23 = vpop.f32.mrf.mxu0  ;;  %1649 = vmatpush.bf16.msrb.mxu0 %v3466_v1 }
 0x136   : > { %v4822_v56 = vadd.f32 %v4723_v41, %v1063_v49  ;;  %v4825_v0 = vadd.f32 %v4729_v58, %v967_v23 }
 0x138   : > { %5706 = vst [vmem:[#allocation32_spill] sm:$0xff] %v4822_v56 }
 0x139   : > { %v1192_v35 = vpop.f32.mrf.mxu3 }
 0x13a   : > { %v4827_v6 = vadd.f32 %v1192_v35, %v1143_v57 }
 0x13b   : > { %v1146_v46 = vpop.f32.mrf.mxu1 }
 0x13d   : > { %v1065_v50 = vpop.f32.mrf.mxu2  ;;  %v970_v49 = vpop.f32.mrf.mxu0 }
 0x13e   : > { %1565 = vmatmul.bf16.gmra.mxu1 %v4527_v52  ;;  %3573 = vmatmul.msk.bf16.gmra.mxu3 %vm906_vm1, %v4629_v33  ;;  %v4833_v41 = vadd.f32 %v4735_v47, %v1065_v50  ;;  %v4836_v58 = vadd.f32 %v4737_v17, %v970_v49 }
 0x140   : > { %5707 = vst [vmem:[#allocation33_spill] sm:$0xff] %v4833_v41  ;;  %1248 = vmatmul.bf16.gmra.mxu0 %v4603_v3  ;;  %v3821_v41 = vld [vmem:[#allocation7 + $0x34] sm:$0xf0] }
 0x141   : > { %v1195_v57 = vpop.f32.mrf.mxu3 }
 0x142   : > { %v4838_v62 = vadd.f32 %v1195_v57, %v1146_v46  ;;  %3406 = vmatmul.msk.bf16.gmra.mxu2 %vm906_vm1, %v4484_v54  ;;  %v3822_v46 = vld [vmem:[#allocation7 + $0x44] sm:$0xf] }
 0x143   : > { %v1148_v22 = vpop.f32.mrf.mxu1  ;;  %v3450_v1 = vor.u32 %v3822_v46, %v3447_v26 }
 0x145   : > { %v1068_v38 = vpop.f32.mrf.mxu2  ;;  %v972_v47 = vpop.f32.mrf.mxu0  ;;  %1650 = vmatpush.bf16.msrb.mxu0 %v3450_v1  ;;  %v3431_v1 = vld [vmem:[#allocation7 + $0x30] sm:$0xf0] }
 0x146   : > { %v4844_v23 = vadd.f32 %v4746_v18, %v1068_v38  ;;  %v4847_v50 = vadd.f32 %v4752_v15, %v972_v47 }
 0x148   : > { %5708 = vst [vmem:[#allocation34_spill] sm:$0xff] %v4844_v23 }
 0x149   : > { %v1197_v35 = vpop.f32.mrf.mxu3 }
 0x14a   : > { %v4849_v17 = vadd.f32 %v1197_v35, %v1148_v22 }
 0x14b   : > { %v1151_v20 = vpop.f32.mrf.mxu1 }
 0x14d   : > { %v1070_v3 = vpop.f32.mrf.mxu2  ;;  %v975_v18 = vpop.f32.mrf.mxu0 }
 0x14e   : > { %1570 = vmatmul.bf16.gmra.mxu1 %v4553_v19  ;;  %3574 = vmatmul.msk.bf16.gmra.mxu3 %vm906_vm1, %v4469_v28  ;;  %v4855_v54 = vadd.f32 %v4758_v21, %v1070_v3  ;;  %v4858_v15 = vadd.f32 %v4760_v37, %v975_v18  ;;  %v3845_v18 = vld [vmem:[#allocation7 + $0xf4] sm:$0xf0] }
 0x150   : > { %5709 = vst [vmem:[#allocation35_spill] sm:$0xff] %v4855_v54  ;;  %1253 = vmatmul.bf16.gmra.mxu0 %v4627_v32  ;;  %v3533_v32 = vld [vmem:[#allocation7 + $0xe8] sm:$0xf]  ;;  %v3829_v54 = vld [vmem:[#allocation7 + $0x74] sm:$0xf0] }
 0x151   : > { %v1200_v49 = vpop.f32.mrf.mxu3 }
 0x152   : > { %v4860_v57 = vadd.f32 %v1200_v49, %v1151_v20  ;;  %3407 = vmatmul.msk.bf16.gmra.mxu2 %vm906_vm1, %v4506_v31  ;;  %v3818_v20 = vld [vmem:[#allocation7 + $0x24] sm:$0xf]  ;;  %v3534_v31 = vor.u32 %v3845_v18, %v3533_v32  ;;  %v3501_v32 = vld [vmem:[#allocation7 + $0xa8] sm:$0xf] }
 0x153   : > { %v1153_v22 = vpop.f32.mrf.mxu1  ;;  %v3434_v3 = vor.u32 %v3818_v20, %v3431_v1 }
 0x154   : > { %1743 = vmatpush.bf16.msrb.mxu1 %v3534_v31  ;;  %v3485_v31 = vld [vmem:[#allocation7 + $0x88] sm:$0xf] }
 0x155   : > { %v1073_v38 = vpop.f32.mrf.mxu2  ;;  %v977_v21 = vpop.f32.mrf.mxu0  ;;  %1651 = vmatpush.bf16.msrb.mxu0 %v3434_v3 }
 0x156   : > { %v4866_v47 = vadd.f32 %v4770_v9, %v1073_v38  ;;  %v4869_v35 = vadd.f32 %v4775_v29, %v977_v21  ;;  %v3841_v38 = vld [vmem:[#allocation7 + $0xd4] sm:$0xf0] }
 0x158   : > { %5710 = vst [vmem:[#allocation36_spill] sm:$0xff] %v4866_v47 }
 0x159   : > { %v1202_v46 = vpop.f32.mrf.mxu3 }
 0x15a   : > { %v4871_v37 = vadd.f32 %v1202_v46, %v1153_v22  ;;  %v3517_v22 = vld [vmem:[#allocation7 + $0xc8] sm:$0xf] }
 0x15b   : > { %v1156_v26 = vpop.f32.mrf.mxu1  ;;  %v3518_v46 = vor.u32 %v3841_v38, %v3517_v22 }
 0x15c   : > { %5711 = vst [vmem:[#allocation37_spill] sm:$0xff] %v4871_v37  ;;  %v3843_v37 = vld [vmem:[#allocation7 + $0xec] sm:$0xf] }
 0x15d   : > { %v1075_v49 = vpop.f32.mrf.mxu2  ;;  %v4879_v29 = vpop.f32.mrf.mxu0  ;;  %1744 = vmatpush.bf16.msrb.mxu1 %v3518_v46  ;;  %v3469_v46 = vld [vmem:[#allocation7 + $0x68] sm:$0xf] }
 0x15e   : > { %1575 = vmatmul.bf16.gmra.mxu1 %v4579_v7  ;;  %3575 = vmatmul.msk.bf16.gmra.mxu3 %vm906_vm1, %v4471_v30  ;;  %v4877_v9 = vadd.f32 %v4783_v51, %v1075_v49  ;;  %v3837_v51 = vld [vmem:[#allocation7 + $0xb4] sm:$0xf0] }
 0x15f   : > { %v3502_v18 = vor.u32 %v3837_v51, %v3501_v32  ;;  %v3470_v32 = vor.u32 %v3829_v54, %v3469_v46 }
 0x160   : > { %5712 = vst [vmem:[#allocation38_spill] sm:$0xff] %v4877_v9  ;;  %1258 = vmatmul.bf16.gmra.mxu0 %v4648_v53  ;;  %v3833_v9 = vld [vmem:[#allocation7 + $0x94] sm:$0xf0] }
 0x161   : > { %v1205_v21 = vpop.f32.mrf.mxu3  ;;  %1745 = vmatpush.bf16.msrb.mxu1 %v3502_v18 }
 0x162   : > { %v4881_v20 = vadd.f32 %v1205_v21, %v1156_v26  ;;  %3408 = vmatmul.msk.bf16.gmra.mxu2 %vm906_vm1, %v4534_v60  ;;  %v3486_v26 = vor.u32 %v3833_v9, %v3485_v31  ;;  %v3814_v21 = vld [vmem:[#allocation7 + $0x4] sm:$0xf]  ;;  %v3415_v60 = vld [vmem:[#allocation7 + $0x10] sm:$0xf0]  ;;  %v3453_v9 = vld [vmem:[#allocation7 + $0x48] sm:$0xf] }
 0x163   : > { %v1158_v1 = vpop.f32.mrf.mxu1  ;;  %v3418_v47 = vor.u32 %v3814_v21, %v3415_v60  ;;  %v3567_v21 = vld [vmem:[#allocation7 + $0x138] sm:$0xf0]  ;;  %v3437_v60 = vld [vmem:[#allocation7 + $0x28] sm:$0xf] }
 0x164   : > { %5713 = vst [vmem:[#allocation39_spill] sm:$0xff] %v4881_v20  ;;  %v3438_v56 = vor.u32 %v3821_v41, %v3437_v60  ;;  %v3535_v41 = vld [vmem:[#allocation7 + $0xf8] sm:$0xf0] }
 0x165   : > { %v4886_v49 = vpop.f32.mrf.mxu2  ;;  %v4888_v3 = vpop.f32.mrf.mxu0  ;;  %1746 = vmatpush.bf16.msrb.mxu1 %v3486_v26  ;;  %1652 = vmatpush.bf16.msrb.mxu0 %v3418_v47  ;;  %v3851_v26 = vld [vmem:[#allocation7 + $0x12c] sm:$0xf]  ;;  %v3565_v47 = vld [vmem:[#allocation7 + $0x128] sm:$0xf] }
 0x166   : > { %v3570_v46 = vor.u32 %v3851_v26, %v3567_v21 }
 0x168   : > { %1896 = vmatpush.bf16.msra.mxu2 %v3570_v46  ;;  %v3538_v46 = vor.u32 %v3843_v37, %v3535_v41 }
 0x169   : > { %v1207_v22 = vpop.f32.mrf.mxu3  ;;  %1747 = vmatpush.bf16.msrb.mxu1 %v3470_v32  ;;  %v3853_v32 = vld [vmem:[#allocation7 + $0x134] sm:$0xf0] }
 0x16a   : > { %v4890_v38 = vadd.f32 %v1207_v22, %v1158_v1  ;;  %v3825_v1 = vld [vmem:[#allocation7 + $0x54] sm:$0xf0]  ;;  %1841 = vmatpush.bf16.msra.mxu0 %v3538_v46 }
 0x16b   : > { %v1161_v53 = vpop.f32.mrf.mxu1  ;;  %v3454_v31 = vor.u32 %v3825_v1, %v3453_v9  ;;  %v3566_v9 = vor.u32 %v3853_v32, %v3565_v47  ;;  %v3549_v1 = vld [vmem:[#allocation7 + $0x108] sm:$0xf] }
 0x16c   : > { %5714 = vst [vmem:[#allocation40_spill] sm:$0xff] %v4890_v38 }
 0x16d   : > { %v4892_v23 = vpop.f32.mrf.mxu2  ;;  %v4897_v51 = vpop.f32.mrf.mxu0  ;;  %1748 = vmatpush.bf16.msrb.mxu1 %v3454_v31  ;;  %1798 = vmatpush.bf16.msrb.mxu3 %v3566_v9 }
 0x16e   : > { %1580 = vmatmul.bf16.gmra.mxu1 %v4614_v16  ;;  %3576 = vmatmul.msk.bf16.gmra.mxu3 %vm906_vm1, %v4490_v61 }
 0x170   : > { %1263 = vmatmul.bf16.gmra.mxu0 %v4667_v10  ;;  %v3421_v10 = vld [vmem:[#allocation7 + $0x8] sm:$0xf] }
 0x171   : > { %v1210_v18 = vpop.f32.mrf.mxu3  ;;  %1749 = vmatpush.bf16.msrb.mxu1 %v3438_v56 }
 0x172   : > { %v4899_v22 = vadd.f32 %v1210_v18, %v1161_v53  ;;  %3409 = vmatmul.msk.bf16.gmra.mxu2 %vm906_vm1, %v4561_v39  ;;  %v3817_v39 = vld [vmem:[#allocation7 + $0x14] sm:$0xf0] }
 0x173   : > { %v1163_v54 = vpop.f32.mrf.mxu1  ;;  %v3422_v31 = vor.u32 %v3817_v39, %v3421_v10 }
 0x174   : > { %5715 = vst [vmem:[#allocation41_spill] sm:$0xff] %v4899_v22  ;;  %v3849_v22 = vld [vmem:[#allocation7 + $0x114] sm:$0xf0] }
 0x175   : > { %v4904_v38 = vpop.f32.mrf.mxu2  ;;  %v4906_v53 = vpop.f32.mrf.mxu0  ;;  %v3550_v26 = vor.u32 %v3849_v22, %v3549_v1  ;;  %1750 = vmatpush.bf16.msrb.mxu1 %v3422_v31  ;;  %v3839_v1 = vld [vmem:[#allocation7 + $0xcc] sm:$0xf] }
 0x177   : > { %1799 = vmatpush.bf16.msrb.mxu3 %v3550_v26 }
 0x179   : > { %v1212_v18 = vpop.f32.mrf.mxu3 }
 0x17a   : > { %v4908_v20 = vadd.f32 %v1212_v18, %v1163_v54  ;;  %v3519_v18 = vld [vmem:[#allocation7 + $0xd8] sm:$0xf0] }
 0x17b   : > { %v1166_v21 = vpop.f32.mrf.mxu1  ;;  %v3522_v26 = vor.u32 %v3839_v1, %v3519_v18  ;;  %v990_v1 = vadd.f32 %v4879_v29, %v4698_v5  ;;  %v992_v5 = vadd.f32 %v4888_v3, %v4710_v48 }
 0x17d   : > { %v4910_v60 = vpop.f32.mrf.mxu2  ;;  %v4915_v56 = vpop.f32.mrf.mxu0  ;;  %1842 = vmatpush.bf16.msra.mxu0 %v3522_v26 }
 0x17e   : > { %1585 = vmatmul.bf16.gmra.mxu1 %v4637_v40  ;;  %3577 = vmatmul.msk.bf16.gmra.mxu3 %vm906_vm1, %v4517_v44 }
 0x180   : > { %1268 = vmatmul.bf16.gmra.mxu0 %v4683_v34 }
 0x181   : > { %v1215_v47 = vpop.f32.mrf.mxu3 }
 0x182   : > { %v4917_v54 = vadd.f32 %v1215_v47, %v1166_v21  ;;  %3410 = vmatmul.msk.bf16.gmra.mxu2 %vm906_vm1, %v4592_v25 }
 0x183   : > { %v1168_v22 = vpop.f32.mrf.mxu1 }
 0x184   : > { %5716 = vst [vmem:[#allocation42_spill] sm:$0xff] %v4917_v54 }
 0x185   : > { %v4922_v32 = vpop.f32.mrf.mxu2  ;;  %v4924_v37 = vpop.f32.mrf.mxu0 }
 0x189   : > { %v1217_v9 = vpop.f32.mrf.mxu3 }
 0x18a   : > { %v4926_v10 = vadd.f32 %v1217_v9, %v1168_v22 }
 0x18b   : > { %v1171_v39 = vpop.f32.mrf.mxu1 }
 0x18c   : > { %5717 = vst [vmem:[#allocation43_spill] sm:$0xff] %v4926_v10 }
 0x18d   : > { %v4928_v31 = vpop.f32.mrf.mxu2  ;;  %v1234_v25 = vpop.f32.mrf.mxu0 }
 0x18e   : > { %1590 = vmatmul.bf16.gmra.mxu1 %v4655_v59  ;;  %3578 = vmatmul.msk.bf16.gmra.mxu3 %vm906_vm1, %v4545_v8 }
 0x190   : > { %1653 = vmatmul.bf16.vlgmr.msrb.gmra.mxu0 %v4496_v2 }
 0x191   : > { %v1220_v34 = vpop.f32.mrf.mxu3 }
 0x192   : > { %v4933_v21 = vadd.f32 %v1220_v34, %v1171_v39  ;;  %3579 = vmatmul.msk.bf16.vlgmr.msrb.gmra.mxu2 %vm906_vm1, %v4594_v63  ;;  %v3835_v39 = vld [vmem:[#allocation7 + $0xac] sm:$0xf]  ;;  %v3503_v34 = vld [vmem:[#allocation7 + $0xb8] sm:$0xf0] }
 0x193   : > { %v1173_v41 = vpop.f32.mrf.mxu1  ;;  %v3506_v54 = vor.u32 %v3835_v39, %v3503_v34  ;;  %v5722_v39 = vld [vmem:[#allocation22_spill] sm:$0xff] }
 0x194   : > { %5718 = vst [vmem:[#allocation44_spill] sm:$0xff] %v4933_v21 }
 0x195   : > { %v1283_v46 = vpop.f32.mrf.mxu2  ;;  %v1236_v22 = vpop.f32.mrf.mxu0  ;;  %1843 = vmatpush.bf16.msra.mxu0 %v3506_v54  ;;  %v995_v54 = vadd.f32 %v4897_v51, %v5722_v39  ;;  %v997_v51 = vadd.f32 %v4906_v53, %v4733_v14  ;;  %v3847_v39 = vld [vmem:[#allocation7 + $0x10c] sm:$0xf]  ;;  %v1000_v14 = vadd.f32 %v4915_v56, %v4744_v43  ;;  %v1002_v43 = vadd.f32 %v4924_v37, %v4756_v27  ;;  %v3455_v37 = vld [vmem:[#allocation7 + $0x58] sm:$0xf0] }
 0x196   : > { %v4938_v47 = vadd.f32 %v1283_v46, %v1234_v25  ;;  %v3823_v27 = vld [vmem:[#allocation7 + $0x4c] sm:$0xf] }
 0x198   : > { %5719 = vst [vmem:[#allocation45_spill] sm:$0xff] %v4938_v47 }
 0x199   : > { %v1222_v9 = vpop.f32.mrf.mxu3 }
 0x19a   : > { %v4942_v18 = vadd.f32 %v1222_v9, %v1173_v41 }
 0x19b   : > { %v1556_v26 = vpop.f32.mrf.mxu1 }
 0x19c   : > { %v1557_v10 = vadd.f32 %v1556_v26, %v990_v1 }
 0x19d   : > { %v1285_v21 = vpop.f32.mrf.mxu2  ;;  %v1239_v46 = vpop.f32.mrf.mxu0 }
 0x19e   : > { %1751 = vmatmul.bf16.vlgmr.msrb.gmra.mxu1 %v4496_v2  ;;  %3587 = vmatmul.msk.bf16.vlgmr.msrb.gmra.mxu3 %vm906_vm1, %v4594_v63  ;;  %v4947_v25 = vadd.f32 %v1285_v21, %v1236_v22 }
 0x1a0   : > { %5720 = vst [vmem:[#allocation46_spill] sm:$0xff] %v4947_v25  ;;  %1658 = vmatmul.bf16.gmra.mxu0 %v4500_v13 }
 0x1a1   : > { %v1605_v47 = vpop.f32.mrf.mxu3 }
 0x1a2   : > { %v4951_v29 = vadd.f32 %v1605_v47, %v1557_v10  ;;  %3580 = vmatmul.msk.bf16.gmra.mxu2 %vm906_vm1, %v4605_v4  ;;  %v3831_v10 = vld [vmem:[#allocation7 + $0x8c] sm:$0xf]  ;;  %v3487_v47 = vld [vmem:[#allocation7 + $0x98] sm:$0xf0] }
 0x1a3   : > { %v1558_v41 = vpop.f32.mrf.mxu1  ;;  %v3490_v25 = vor.u32 %v3831_v10, %v3487_v47 }
 0x1a4   : > { %5721 = vst [vmem:[#allocation47_spill] sm:$0xff] %v4951_v29  ;;  %v1559_v9 = vadd.f32 %v1558_v41, %v992_v5 }
 0x1a5   : > { %v1288_v1 = vpop.f32.mrf.mxu2  ;;  %v1241_v21 = vpop.f32.mrf.mxu0  ;;  %1844 = vmatpush.bf16.msra.mxu0 %v3490_v25 }
 0x1a6   : > { %v4956_v26 = vadd.f32 %v1288_v1, %v1239_v46 }
 0x1a9   : > { %v1607_v22 = vpop.f32.mrf.mxu3 }
 0x1aa   : > { %v4960_v34 = vadd.f32 %v1607_v22, %v1559_v9 }
 0x1ab   : > { %v1561_v48 = vpop.f32.mrf.mxu1 }
 0x1ac   : > { %5723 = vst [vmem:[#allocation22_spill] sm:$0xff] %v4960_v34  ;;  %v1562_v3 = vadd.f32 %v1561_v48, %v995_v54  ;;  %v3551_v54 = vld [vmem:[#allocation7 + $0x118] sm:$0xf0] }
 0x1ad   : > { %v1290_v29 = vpop.f32.mrf.mxu2  ;;  %v1244_v5 = vpop.f32.mrf.mxu0 }
 0x1ae   : > { %1756 = vmatmul.bf16.gmra.mxu1 %v4500_v13  ;;  %3588 = vmatmul.msk.bf16.gmra.mxu3 %vm906_vm1, %v4605_v4  ;;  %v4965_v46 = vadd.f32 %v1290_v29, %v1241_v21  ;;  %v3554_v29 = vor.u32 %v3847_v39, %v3551_v54 }
 0x1b0   : > { %1663 = vmatmul.bf16.gmra.mxu0 %v4527_v52  ;;  %1897 = vmatpush.bf16.msra.mxu2 %v3554_v29 }
 0x1b1   : > { %v1610_v41 = vpop.f32.mrf.mxu3 }
 0x1b2   : > { %v4969_v9 = vadd.f32 %v1610_v41, %v1562_v3  ;;  %3581 = vmatmul.msk.bf16.gmra.mxu2 %vm906_vm1, %v4629_v33  ;;  %v3827_v41 = vld [vmem:[#allocation7 + $0x6c] sm:$0xf] }
 0x1b3   : > { %v1563_v1 = vpop.f32.mrf.mxu1 }
 0x1b4   : > { %5724 = vst [vmem:[#allocation48_spill] sm:$0xff] %v4969_v9  ;;  %v1564_v22 = vadd.f32 %v1563_v1, %v997_v51  ;;  %v3471_v9 = vld [vmem:[#allocation7 + $0x78] sm:$0xf0] }
 0x1b5   : > { %v1293_v48 = vpop.f32.mrf.mxu2  ;;  %v1246_v25 = vpop.f32.mrf.mxu0  ;;  %v3474_v51 = vor.u32 %v3827_v41, %v3471_v9  ;;  %v3458_v41 = vor.u32 %v3823_v27, %v3455_v37 }
 0x1b6   : > { %v4974_v21 = vadd.f32 %v1293_v48, %v1244_v5 }
 0x1b7   : > { %1845 = vmatpush.bf16.msra.mxu0 %v3474_v51 }
 0x1b9   : > { %v1612_v10 = vpop.f32.mrf.mxu3 }
 0x1ba   : > { %v4978_v53 = vadd.f32 %v1612_v10, %v1564_v22 }
 0x1bb   : > { %v1566_v3 = vpop.f32.mrf.mxu1  ;;  %1846 = vmatpush.bf16.msra.mxu0 %v3458_v41 }
 0x1bc   : > { %v1567_v47 = vadd.f32 %v1566_v3, %v1000_v14  ;;  %v5726_v14 = vld [vmem:[#allocation27_spill] sm:$0xff] }
 0x1bd   : > { %v1295_v34 = vpop.f32.mrf.mxu2  ;;  %v1249_v1 = vpop.f32.mrf.mxu0 }
 0x1be   : > { %1761 = vmatmul.bf16.gmra.mxu1 %v4527_v52  ;;  %3589 = vmatmul.msk.bf16.gmra.mxu3 %vm906_vm1, %v4629_v33  ;;  %v4983_v5 = vadd.f32 %v1295_v34, %v1246_v25 }
 0x1c0   : > { %1668 = vmatmul.bf16.gmra.mxu0 %v4553_v19 }
 0x1c1   : > { %v1615_v39 = vpop.f32.mrf.mxu3 }
 0x1c2   : > { %v4987_v56 = vadd.f32 %v1615_v39, %v1567_v47  ;;  %3582 = vmatmul.msk.bf16.gmra.mxu2 %vm906_vm1, %v4469_v28 }
 0x1c3   : > { %v1568_v9 = vpop.f32.mrf.mxu1 }
 0x1c4   : > { %v1569_v22 = vadd.f32 %v1568_v9, %v1002_v43 }
 0x1c5   : > { %v1298_v54 = vpop.f32.mrf.mxu2  ;;  %v1251_v34 = vpop.f32.mrf.mxu0 }
 0x1c6   : > { %v4992_v48 = vadd.f32 %v1298_v54, %v1249_v1 }
 0x1c9   : > { %v1617_v29 = vpop.f32.mrf.mxu3 }
 0x1ca   : > { %v4994_v25 = vadd.f32 %v1617_v29, %v1569_v22 }
 0x1cb   : > { %v1571_v10 = vpop.f32.mrf.mxu1 }
 0x1cc   : > { %5725 = vst [vmem:[#allocation49_spill] sm:$0xff] %v4994_v25  ;;  %v1572_v3 = vadd.f32 %v1571_v10, %v5726_v14 }
 0x1cd   : > { %v1300_v47 = vpop.f32.mrf.mxu2  ;;  %v1254_v1 = vpop.f32.mrf.mxu0 }
 0x1ce   : > { %1766 = vmatmul.bf16.gmra.mxu1 %v4553_v19  ;;  %3590 = vmatmul.msk.bf16.gmra.mxu3 %vm906_vm1, %v4469_v28  ;;  %v5000_v51 = vadd.f32 %v1300_v47, %v1251_v34  ;;  %v3439_v47 = vld [vmem:[#allocation7 + $0x38] sm:$0xf0] }
 0x1d0   : > { %1673 = vmatmul.bf16.gmra.mxu0 %v4579_v7 }
 0x1d1   : > { %v1620_v39 = vpop.f32.mrf.mxu3 }
 0x1d2   : > { %v5002_v43 = vadd.f32 %v1620_v39, %v1572_v3  ;;  %3583 = vmatmul.msk.bf16.gmra.mxu2 %vm906_vm1, %v4471_v30  ;;  %v3819_v3 = vld [vmem:[#allocation7 + $0x2c] sm:$0xf] }
 0x1d3   : > { %v1573_v9 = vpop.f32.mrf.mxu1  ;;  %v3442_v39 = vor.u32 %v3819_v3, %v3439_v47 }
 0x1d4   : > { %5727 = vst [vmem:[#allocation27_spill] sm:$0xff] %v5002_v43  ;;  %v1574_v22 = vadd.f32 %v1573_v9, %v4781_v11  ;;  %v3916_v43 = vld [vmem:[#allocation7 + $0x32c] sm:$0xf0] }
 0x1d5   : > { %v1303_v54 = vpop.f32.mrf.mxu2  ;;  %v1256_v10 = vpop.f32.mrf.mxu0  ;;  %1847 = vmatpush.bf16.msra.mxu0 %v3442_v39  ;;  %v3920_v39 = vld [vmem:[#allocation7 + $0x34c] sm:$0xf0] }
 0x1d6   : > { %v5008_v29 = vadd.f32 %v1303_v54, %v1254_v1 }
 0x1d8   : > { %5728 = vst [vmem:[#allocation50_spill] sm:$0xff] %v5008_v29 }
 0x1d9   : > { %v1622_v14 = vpop.f32.mrf.mxu3 }
 0x1da   : > { %v5010_v34 = vadd.f32 %v1622_v14, %v1574_v22  ;;  %v3924_v22 = vld [vmem:[#allocation7 + $0x36c] sm:$0xf0] }
 0x1db   : > { %v1576_v27 = vpop.f32.mrf.mxu1 }
 0x1dc   : > { %5729 = vst [vmem:[#allocation51_spill] sm:$0xff] %v5010_v34  ;;  %v1577_v37 = vadd.f32 %v1576_v27, %v4792_v45  ;;  %v3717_v45 = vld [vmem:[#allocation7 + $0x360] sm:$0xf] }
 0x1dd   : > { %v1305_v41 = vpop.f32.mrf.mxu2  ;;  %v1259_v1 = vpop.f32.mrf.mxu0  ;;  %v3718_v27 = vor.u32 %v3924_v22, %v3717_v45  ;;  %v3815_v22 = vld [vmem:[#allocation7 + $0xc] sm:$0xf] }
 0x1de   : > { %1771 = vmatmul.bf16.gmra.mxu1 %v4579_v7  ;;  %3591 = vmatmul.msk.bf16.gmra.mxu3 %vm906_vm1, %v4471_v30  ;;  %v5016_v11 = vadd.f32 %v1305_v41, %v1256_v10  ;;  %v3701_v41 = vld [vmem:[#allocation7 + $0x340] sm:$0xf] }
 0x1df   : > { %2203 = vmatpush.bf16.msra.mxu1 %v3718_v27 }
 0x1e0   : > { %5730 = vst [vmem:[#allocation52_spill] sm:$0xff] %v5016_v11  ;;  %1678 = vmatmul.bf16.gmra.mxu0 %v4614_v16  ;;  %v3685_v11 = vld [vmem:[#allocation7 + $0x320] sm:$0xf] }
 0x1e1   : > { %v1625_v9 = vpop.f32.mrf.mxu3  ;;  %v3686_v25 = vor.u32 %v3916_v43, %v3685_v11 }
 0x1e2   : > { %v5018_v54 = vadd.f32 %v1625_v9, %v1577_v37  ;;  %3584 = vmatmul.msk.bf16.gmra.mxu2 %vm906_vm1, %v4490_v61  ;;  %v3702_v37 = vor.u32 %v3920_v39, %v3701_v41 }
 0x1e3   : > { %v1578_v14 = vpop.f32.mrf.mxu1 }
 0x1e4   : > { %5731 = vst [vmem:[#allocation53_spill] sm:$0xff] %v5018_v54  ;;  %v1579_v3 = vadd.f32 %v1578_v14, %v4803_v42  ;;  %2204 = vmatpush.bf16.msra.mxu1 %v3702_v37  ;;  %v3423_v42 = vld [vmem:[#allocation7 + $0x18] sm:$0xf0] }
 0x1e5   : > { %v1308_v47 = vpop.f32.mrf.mxu2  ;;  %v1261_v34 = vpop.f32.mrf.mxu0  ;;  %v3426_v27 = vor.u32 %v3815_v22, %v3423_v42  ;;  %v3751_v22 = vld [vmem:[#allocation7 + $0x3b0] sm:$0xf0]  ;;  %v3749_v42 = vld [vmem:[#allocation7 + $0x3a0] sm:$0xf] }
 0x1e6   : > { %v5024_v10 = vadd.f32 %v1308_v47, %v1259_v1  ;;  %v3912_v47 = vld [vmem:[#allocation7 + $0x30c] sm:$0xf0] }
 0x1e7   : > { %1848 = vmatpush.bf16.msra.mxu0 %v3426_v27 }
 0x1e8   : > { %5732 = vst [vmem:[#allocation54_spill] sm:$0xff] %v5024_v10  ;;  %2205 = vmatpush.bf16.msra.mxu1 %v3686_v25  ;;  %v3653_v25 = vld [vmem:[#allocation7 + $0x2e0] sm:$0xf] }
 0x1e9   : > { %v1627_v9 = vpop.f32.mrf.mxu3  ;;  %v3621_v10 = vld [vmem:[#allocation7 + $0x2a0] sm:$0xf] }
 0x1ea   : > { %v5026_v54 = vadd.f32 %v1627_v9, %v1579_v3  ;;  %v3669_v3 = vld [vmem:[#allocation7 + $0x300] sm:$0xf]  ;;  %v3930_v9 = vld [vmem:[#allocation7 + $0x3a4] sm:$0xf] }
 0x1eb   : > { %v1581_v29 = vpop.f32.mrf.mxu1  ;;  %v3670_v39 = vor.u32 %v3912_v47, %v3669_v3  ;;  %v3754_v27 = vor.u32 %v3930_v9, %v3751_v22  ;;  %v3932_v3 = vld [vmem:[#allocation7 + $0x3ac] sm:$0xf0] }
 0x1ec   : > { %5733 = vst [vmem:[#allocation55_spill] sm:$0xff] %v5026_v54  ;;  %v1582_v45 = vadd.f32 %v1581_v29, %v4814_v24  ;;  %v3908_v29 = vld [vmem:[#allocation7 + $0x2ec] sm:$0xf0]  ;;  %v3750_v47 = vor.u32 %v3932_v3, %v3749_v42  ;;  %v3922_v42 = vld [vmem:[#allocation7 + $0x364] sm:$0xf] }
 0x1ed   : > { %v1310_v14 = vpop.f32.mrf.mxu2  ;;  %v1264_v41 = vpop.f32.mrf.mxu0  ;;  %2206 = vmatpush.bf16.msra.mxu1 %v3670_v39  ;;  %v3654_v37 = vor.u32 %v3908_v29, %v3653_v25  ;;  %v3637_v39 = vld [vmem:[#allocation7 + $0x2c0] sm:$0xf]  ;;  %2356 = vmatpush.bf16.msrb.mxu2 %v3754_v27  ;;  %v3928_v25 = vld [vmem:[#allocation7 + $0x38c] sm:$0xf0] }
 0x1ee   : > { %1776 = vmatmul.bf16.gmra.mxu1 %v4614_v16  ;;  %3592 = vmatmul.msk.bf16.gmra.mxu3 %vm906_vm1, %v4490_v61  ;;  %v5032_v1 = vadd.f32 %v1310_v14, %v1261_v34 }
 0x1ef   : > { %2258 = vmatpush.bf16.msra.mxu3 %v3750_v47 }
 0x1f0   : > { %5734 = vst [vmem:[#allocation56_spill] sm:$0xff] %v5032_v1  ;;  %1683 = vmatmul.bf16.gmra.mxu0 %v4637_v40  ;;  %v3733_v1 = vld [vmem:[#allocation7 + $0x380] sm:$0xf] }
 0x1f1   : > { %v1630_v43 = vpop.f32.mrf.mxu3  ;;  %2207 = vmatpush.bf16.msra.mxu1 %v3654_v37  ;;  %v3900_v37 = vld [vmem:[#allocation7 + $0x2ac] sm:$0xf0] }
 0x1f2   : > { %v5034_v24 = vadd.f32 %v1630_v43, %v1582_v45  ;;  %3585 = vmatmul.msk.bf16.gmra.mxu2 %vm906_vm1, %v4517_v44  ;;  %v3904_v43 = vld [vmem:[#allocation7 + $0x2cc] sm:$0xf0]  ;;  %v3622_v22 = vor.u32 %v3900_v37, %v3621_v10 }
 0x1f3   : > { %v1583_v11 = vpop.f32.mrf.mxu1  ;;  %v3638_v54 = vor.u32 %v3904_v43, %v3637_v39 }
 0x1f4   : > { %5735 = vst [vmem:[#allocation57_spill] sm:$0xff] %v5034_v24  ;;  %v1584_v34 = vadd.f32 %v1583_v11, %v4825_v0  ;;  %v3734_v0 = vor.u32 %v3928_v25, %v3733_v1  ;;  %v3605_v1 = vld [vmem:[#allocation7 + $0x280] sm:$0xf] }
 0x1f5   : > { %v1313_v14 = vpop.f32.mrf.mxu2  ;;  %v1266_v24 = vpop.f32.mrf.mxu0  ;;  %2208 = vmatpush.bf16.msra.mxu1 %v3638_v54 }
 0x1f6   : > { %v5040_v45 = vadd.f32 %v1313_v14, %v1264_v41  ;;  %2259 = vmatpush.bf16.msra.mxu3 %v3734_v0  ;;  %v3719_v14 = vld [vmem:[#allocation7 + $0x370] sm:$0xf0] }
 0x1f7   : > { %v3722_v27 = vor.u32 %v3922_v42, %v3719_v14  ;;  %v3703_v14 = vld [vmem:[#allocation7 + $0x350] sm:$0xf0] }
 0x1f9   : > { %v1632_v29 = vpop.f32.mrf.mxu3  ;;  %2209 = vmatpush.bf16.msra.mxu1 %v3622_v22  ;;  %2301 = vmatpush.bf16.msrb.mxu0 %v3722_v27 }
 0x1fa   : > { %v5042_v11 = vadd.f32 %v1632_v29, %v1584_v34  ;;  %v3896_v34 = vld [vmem:[#allocation7 + $0x28c] sm:$0xf0] }
 0x1fb   : > { %v1586_v9 = vpop.f32.mrf.mxu1  ;;  %v3606_v10 = vor.u32 %v3896_v34, %v3605_v1  ;;  %v5739_v1 = vld [vmem:[#allocation20_spill] sm:$0xff] }
 0x1fc   : > { %5736 = vst [vmem:[#allocation58_spill] sm:$0xff] %v5042_v11  ;;  %v1587_v41 = vadd.f32 %v1586_v9, %v4836_v58  ;;  %v1088_v34 = vadd.f32 %v4886_v49, %v5739_v1 }
 0x1fd   : > { %v1315_v3 = vpop.f32.mrf.mxu2  ;;  %v1269_v47 = vpop.f32.mrf.mxu0  ;;  %2210 = vmatpush.bf16.msra.mxu1 %v3606_v10 }
 0x1fe   : > { %1781 = vmatmul.bf16.gmra.mxu1 %v4637_v40  ;;  %3593 = vmatmul.msk.bf16.gmra.mxu3 %vm906_vm1, %v4517_v44  ;;  %v5048_v54 = vadd.f32 %v1315_v3, %v1266_v24 }
 0x200   : > { %1688 = vmatmul.bf16.gmra.mxu0 %v4655_v59 }
 0x201   : > { %v1635_v39 = vpop.f32.mrf.mxu3 }
 0x202   : > { %v5050_v58 = vadd.f32 %v1635_v39, %v1587_v41  ;;  %3586 = vmatmul.msk.bf16.gmra.mxu2 %vm906_vm1, %v4545_v8  ;;  %v3918_v41 = vld [vmem:[#allocation7 + $0x344] sm:$0xf] }
 0x203   : > { %v1588_v43 = vpop.f32.mrf.mxu1  ;;  %v3706_v27 = vor.u32 %v3918_v41, %v3703_v14  ;;  %v581_v41 = vrot.slane %v4594_v63, 1  ;;  %v578_v14 = vrot.slane %v4496_v2, 1 }
 0x204   : > { %5737 = vst [vmem:[#allocation59_spill] sm:$0xff] %v5050_v58  ;;  %v1589_v25 = vadd.f32 %v1588_v43, %v4847_v50 }
 0x205   : > { %v1318_v29 = vpop.f32.mrf.mxu2  ;;  %v1271_v0 = vpop.f32.mrf.mxu0  ;;  %2302 = vmatpush.bf16.msrb.mxu0 %v3706_v27 }
 0x206   : > { %v5056_v24 = vadd.f32 %v1318_v29, %v1269_v47  ;;  %v5741_v29 = vld [vmem:[#allocation21_spill] sm:$0xff] }
 0x209   : > { %v1637_v37 = vpop.f32.mrf.mxu3 }
 0x20a   : > { %v5058_v9 = vadd.f32 %v1637_v37, %v1589_v25  ;;  %v1090_v37 = vadd.f32 %v4892_v23, %v5741_v29 }
 0x20b   : > { %v1591_v22 = vpop.f32.mrf.mxu1 }
 0x20c   : > { %5738 = vst [vmem:[#allocation60_spill] sm:$0xff] %v5058_v9  ;;  %v1592_v42 = vadd.f32 %v1591_v22, %v4858_v15 }
 0x20d   : > { %v1320_v3 = vpop.f32.mrf.mxu2  ;;  %v1654_v47 = vpop.f32.mrf.mxu0 }
 0x20e   : > { %1786 = vmatmul.bf16.gmra.mxu1 %v4655_v59  ;;  %3594 = vmatmul.msk.bf16.gmra.mxu3 %vm906_vm1, %v4545_v8  ;;  %v5066_v50 = vadd.f32 %v1320_v3, %v1271_v0  ;;  %v1655_v10 = vadd.f32 %v1654_v47, %v1088_v34  ;;  %v579_v3 = vrot.slane %v4500_v13, 1 }
 0x210   : > { %1849 = vmatmul.bf16.vlgmr.msra.gmra.mxu0 %v4496_v2  ;;  %v5088_v23 = vsel %vm577_vm4, %v578_v14, %v579_v3 }
 0x211   : > { %v1640_v39 = vpop.f32.mrf.mxu3 }
 0x212   : > { %v5068_v43 = vadd.f32 %v1640_v39, %v1592_v42  ;;  %3595 = vmatmul.msk.bf16.vlgmr.msra.gmra.mxu2 %vm906_vm1, %v4594_v63  ;;  %v582_v42 = vrot.slane %v4605_v4, 1  ;;  %v3687_v39 = vld [vmem:[#allocation7 + $0x330] sm:$0xf0] }
 0x213   : > { %v1593_v15 = vpop.f32.mrf.mxu1 }
 0x214   : > { %5740 = vst [vmem:[#allocation20_spill] sm:$0xff] %v5068_v43  ;;  %v1594_v49 = vadd.f32 %v1593_v15, %v4869_v35  ;;  %v5085_v47 = vsel %vm577_vm4, %v581_v41, %v582_v42 }
 0x215   : > { %v1703_v25 = vpop.f32.mrf.mxu2  ;;  %v1656_v22 = vpop.f32.mrf.mxu0 }
 0x216   : > { %v5076_v0 = vadd.f32 %v1703_v25, %v1655_v10  ;;  %v1657_v27 = vadd.f32 %v1656_v22, %v1090_v37  ;;  %v3914_v10 = vld [vmem:[#allocation7 + $0x324] sm:$0xf]  ;;  %v5743_v25 = vld [vmem:[#allocation23_spill] sm:$0xff] }
 0x217   : > { %v3690_v2 = vor.u32 %v3914_v10, %v3687_v39  ;;  %v1093_v29 = vadd.f32 %v4904_v38, %v5743_v25 }
 0x219   : > { %v1642_v1 = vpop.f32.mrf.mxu3  ;;  %2303 = vmatpush.bf16.msrb.mxu0 %v3690_v2 }
 0x21a   : > { %v5082_v34 = vadd.f32 %v1642_v1, %v1594_v49 }
 0x21b   : > { %v1752_v35 = vpop.f32.mrf.mxu1 }
 0x21c   : > { %5742 = vst [vmem:[#allocation21_spill] sm:$0xff] %v5082_v34  ;;  %v1753_v63 = vadd.f32 %v1752_v35, %v4794_v36  ;;  %v5744_v35 = vld [vmem:[#allocation24_spill] sm:$0xff]  ;;  %v598_v34 = vrot.slane %v4490_v61, 1 }
 0x21d   : > { %v1705_v15 = vpop.f32.mrf.mxu2  ;;  %v1659_v37 = vpop.f32.mrf.mxu0 }
 0x21e   : > { %3763 = vmatmul.msk.bf16.vlgmr.msra.gmra.mxu3 %vm906_vm1, %v5085_v47  ;;  %v5095_v49 = vadd.f32 %v1705_v15, %v1657_v27  ;;  %2211 = vmatmul.bf16.vlgmr.msra.gmra.mxu1 %v5088_v23  ;;  %v1660_v22 = vadd.f32 %v1659_v37, %v1093_v29  ;;  %v1095_v27 = vadd.f32 %v4910_v60, %v5744_v35  ;;  %v586_v15 = vrot.slane %v4629_v33, 1  ;;  %v3910_v37 = vld [vmem:[#allocation7 + $0x304] sm:$0xf] }
 0x220   : > { %1854 = vmatmul.bf16.gmra.mxu0 %v4500_v13 }
 0x221   : > { %v1801_v41 = vpop.f32.mrf.mxu3 }
 0x222   : > { %v5098_v14 = vadd.f32 %v1801_v41, %v1753_v63  ;;  %3596 = vmatmul.msk.bf16.gmra.mxu2 %vm906_vm1, %v4605_v4  ;;  %v584_v63 = vrot.slane %v4527_v52, 1  ;;  %v5113_v4 = vsel %vm577_vm4, %v582_v42, %v586_v15 }
 0x223   : > { %v1754_v36 = vpop.f32.mrf.mxu1 }
 0x224   : > { %v1755_v38 = vadd.f32 %v1754_v36, %v4805_v12  ;;  %v5116_v12 = vsel %vm577_vm4, %v579_v3, %v584_v63 }
 0x225   : > { %v1708_v1 = vpop.f32.mrf.mxu2  ;;  %v1661_v39 = vpop.f32.mrf.mxu0 }
 0x226   : > { %v5106_v10 = vadd.f32 %v1708_v1, %v1660_v22  ;;  %v1662_v2 = vadd.f32 %v1661_v39, %v1095_v27  ;;  %v3671_v22 = vld [vmem:[#allocation7 + $0x310] sm:$0xf0]  ;;  %v5745_v1 = vld [vmem:[#allocation25_spill] sm:$0xff] }
 0x227   : > { %v3674_v36 = vor.u32 %v3910_v37, %v3671_v22  ;;  %v1098_v35 = vadd.f32 %v4922_v32, %v5745_v1  ;;  %v5746_v22 = vld [vmem:[#allocation26_spill] sm:$0xff] }
 0x229   : > { %v1803_v25 = vpop.f32.mrf.mxu3  ;;  %2304 = vmatpush.bf16.msrb.mxu0 %v3674_v36 }
 0x22a   : > { %v5110_v13 = vadd.f32 %v1803_v25, %v1755_v38  ;;  %v3926_v25 = vld [vmem:[#allocation7 + $0x384] sm:$0xf] }
 0x22b   : > { %v1757_v29 = vpop.f32.mrf.mxu1 }
 0x22c   : > { %v1758_v60 = vadd.f32 %v1757_v29, %v4816_v55  ;;  %v3735_v29 = vld [vmem:[#allocation7 + $0x390] sm:$0xf0] }
 0x22d   : > { %v1710_v41 = vpop.f32.mrf.mxu2  ;;  %v1664_v42 = vpop.f32.mrf.mxu0  ;;  %v3738_v37 = vor.u32 %v3926_v25, %v3735_v29  ;;  %v3655_v25 = vld [vmem:[#allocation7 + $0x2f0] sm:$0xf0] }
 0x22e   : > { %3764 = vmatmul.msk.bf16.gmra.mxu3 %vm906_vm1, %v5113_v4  ;;  %v5123_v38 = vadd.f32 %v1710_v41, %v1662_v2  ;;  %2216 = vmatmul.bf16.gmra.mxu1 %v5116_v12  ;;  %v1665_v3 = vadd.f32 %v1664_v42, %v1098_v35  ;;  %v1100_v41 = vadd.f32 %v4928_v31, %v5746_v22 }
 0x22f   : > { %2357 = vmatpush.bf16.msrb.mxu2 %v3738_v37 }
 0x230   : > { %1859 = vmatmul.bf16.gmra.mxu0 %v4527_v52  ;;  %v588_v52 = vrot.slane %v4553_v19, 1 }
 0x231   : > { %v1806_v27 = vpop.f32.mrf.mxu3 }
 0x232   : > { %v5126_v39 = vadd.f32 %v1806_v27, %v1758_v60  ;;  %3597 = vmatmul.msk.bf16.gmra.mxu2 %vm906_vm1, %v4629_v33  ;;  %v590_v60 = vrot.slane %v4469_v28, 1 }
 0x233   : > { %v1759_v55 = vpop.f32.mrf.mxu1 }
 0x234   : > { %v1760_v32 = vadd.f32 %v1759_v55, %v4827_v6  ;;  %v5141_v27 = vsel %vm577_vm4, %v586_v15, %v590_v60  ;;  %v5144_v55 = vsel %vm577_vm4, %v584_v63, %v588_v52  ;;  %v5747_v15 = vld [vmem:[#allocation28_spill] sm:$0xff] }
 0x235   : > { %v1713_v2 = vpop.f32.mrf.mxu2  ;;  %v1666_v1 = vpop.f32.mrf.mxu0 }
 0x236   : > { %v5134_v36 = vadd.f32 %v1713_v2, %v1665_v3  ;;  %v1667_v35 = vadd.f32 %v1666_v1, %v1100_v41  ;;  %v3906_v3 = vld [vmem:[#allocation7 + $0x2e4] sm:$0xf] }
 0x237   : > { %v3658_v2 = vor.u32 %v3906_v3, %v3655_v25  ;;  %v594_v3 = vrot.slane %v4471_v30, 1  ;;  %v592_v25 = vrot.slane %v4579_v7, 1 }
 0x239   : > { %v1808_v33 = vpop.f32.mrf.mxu3  ;;  %2305 = vmatpush.bf16.msrb.mxu0 %v3658_v2  ;;  %v5193_v43 = vsel %vm577_vm4, %v594_v3, %v598_v34 }
 0x23a   : > { %v5138_v42 = vadd.f32 %v1808_v33, %v1760_v32 }
 0x23b   : > { %v1762_v6 = vpop.f32.mrf.mxu1 }
 0x23c   : > { %v1763_v31 = vadd.f32 %v1762_v6, %v4838_v62 }
 0x23d   : > { %v1715_v29 = vpop.f32.mrf.mxu2  ;;  %v1669_v32 = vpop.f32.mrf.mxu0 }
 0x23e   : > { %3765 = vmatmul.msk.bf16.gmra.mxu3 %vm906_vm1, %v5141_v27  ;;  %v5149_v37 = vadd.f32 %v1715_v29, %v1667_v35  ;;  %2221 = vmatmul.bf16.gmra.mxu1 %v5144_v55  ;;  %v1670_v22 = vadd.f32 %v1669_v32, %v5747_v15  ;;  %v5748_v29 = vld [vmem:[#allocation29_spill] sm:$0xff]  ;;  %v5167_v15 = vsel %vm577_vm4, %v590_v60, %v594_v3  ;;  %v5750_v60 = vld [vmem:[#allocation30_spill] sm:$0xff]  ;;  %v5758_v3 = vld [vmem:[#allocation32_spill] sm:$0xff] }
 0x240   : > { %1864 = vmatmul.bf16.gmra.mxu0 %v4553_v19 }
 0x241   : > { %v1811_v41 = vpop.f32.mrf.mxu3 }
 0x242   : > { %v5153_v63 = vadd.f32 %v1811_v41, %v1763_v31  ;;  %3598 = vmatmul.msk.bf16.gmra.mxu2 %vm906_vm1, %v4469_v28  ;;  %v5170_v28 = vsel %vm577_vm4, %v588_v52, %v592_v25  ;;  %v3639_v41 = vld [vmem:[#allocation7 + $0x2d0] sm:$0xf0] }
 0x243   : > { %v1764_v62 = vpop.f32.mrf.mxu1 }
 0x244   : > { %v1765_v1 = vadd.f32 %v1764_v62, %v4849_v17 }
 0x245   : > { %v1718_v33 = vpop.f32.mrf.mxu2  ;;  %v1671_v6 = vpop.f32.mrf.mxu0 }
 0x246   : > { %v5159_v35 = vadd.f32 %v1718_v33, %v1670_v22  ;;  %v1672_v2 = vadd.f32 %v1671_v6, %v5748_v29  ;;  %v3902_v22 = vld [vmem:[#allocation7 + $0x2c4] sm:$0xf] }
 0x247   : > { %v3642_v33 = vor.u32 %v3902_v22, %v3639_v41 }
 0x249   : > { %v1813_v31 = vpop.f32.mrf.mxu3  ;;  %2306 = vmatpush.bf16.msrb.mxu0 %v3642_v33  ;;  %v596_v33 = vrot.slane %v4614_v16, 1 }
 0x24a   : > { %v5164_v32 = vadd.f32 %v1813_v31, %v1765_v1 }
 0x24b   : > { %v1767_v19 = vpop.f32.mrf.mxu1 }
 0x24c   : > { %v1768_v17 = vadd.f32 %v1767_v19, %v4860_v57  ;;  %v5752_v19 = vld [vmem:[#allocation37_spill] sm:$0xff] }
 0x24d   : > { %v1720_v62 = vpop.f32.mrf.mxu2  ;;  %v1674_v1 = vpop.f32.mrf.mxu0 }
 0x24e   : > { %3766 = vmatmul.msk.bf16.gmra.mxu3 %vm906_vm1, %v5167_v15  ;;  %v5175_v6 = vadd.f32 %v1720_v62, %v1672_v2  ;;  %2226 = vmatmul.bf16.gmra.mxu1 %v5170_v28  ;;  %v1675_v29 = vadd.f32 %v1674_v1, %v5750_v60  ;;  %v5754_v1 = vld [vmem:[#allocation31_spill] sm:$0xff] }
 0x250   : > { %5749 = vst [vmem:[#allocation23_spill] sm:$0xff] %v5175_v6  ;;  %1869 = vmatmul.bf16.gmra.mxu0 %v4579_v7 }
 0x251   : > { %v1816_v31 = vpop.f32.mrf.mxu3 }
 0x252   : > { %v5179_v52 = vadd.f32 %v1816_v31, %v1768_v17  ;;  %3599 = vmatmul.msk.bf16.gmra.mxu2 %vm906_vm1, %v4471_v30  ;;  %v5196_v30 = vsel %vm577_vm4, %v592_v25, %v596_v33 }
 0x253   : > { %v1769_v57 = vpop.f32.mrf.mxu1 }
 0x254   : > { %5751 = vst [vmem:[#allocation24_spill] sm:$0xff] %v5179_v52  ;;  %v1770_v22 = vadd.f32 %v1769_v57, %v5752_v19  ;;  %v5756_v57 = vld [vmem:[#allocation39_spill] sm:$0xff]  ;;  %v3898_v19 = vld [vmem:[#allocation7 + $0x2a4] sm:$0xf]  ;;  %v3929_v52 = vld [vmem:[#allocation7 + $0x394] sm:$0xf0] }
 0x255   : > { %v1723_v41 = vpop.f32.mrf.mxu2  ;;  %v1676_v62 = vpop.f32.mrf.mxu0 }
 0x256   : > { %v5185_v2 = vadd.f32 %v1723_v41, %v1675_v29  ;;  %v1677_v60 = vadd.f32 %v1676_v62, %v5754_v1  ;;  %v3623_v41 = vld [vmem:[#allocation7 + $0x2b0] sm:$0xf0] }
 0x257   : > { %v3626_v58 = vor.u32 %v3898_v19, %v3623_v41 }
 0x258   : > { %5753 = vst [vmem:[#allocation25_spill] sm:$0xff] %v5185_v2 }
 0x259   : > { %v1818_v17 = vpop.f32.mrf.mxu3  ;;  %2307 = vmatpush.bf16.msrb.mxu0 %v3626_v58  ;;  %v3709_v58 = vld [vmem:[#allocation7 + $0x348] sm:$0xf] }
 0x25a   : > { %v5190_v31 = vadd.f32 %v1818_v17, %v1770_v22 }
 0x25b   : > { %v1772_v7 = vpop.f32.mrf.mxu1 }
 0x25c   : > { %5755 = vst [vmem:[#allocation26_spill] sm:$0xff] %v5190_v31  ;;  %v1773_v29 = vadd.f32 %v1772_v7, %v5756_v57  ;;  %v3725_v7 = vld [vmem:[#allocation7 + $0x368] sm:$0xf]  ;;  %v3925_v57 = vld [vmem:[#allocation7 + $0x374] sm:$0xf0] }
 0x25d   : > { %v1725_v9 = vpop.f32.mrf.mxu2  ;;  %v1679_v22 = vpop.f32.mrf.mxu0  ;;  %v3726_v41 = vor.u32 %v3925_v57, %v3725_v7  ;;  %v3693_v7 = vld [vmem:[#allocation7 + $0x328] sm:$0xf]  ;;  %v3917_v57 = vld [vmem:[#allocation7 + $0x334] sm:$0xf0] }
 0x25e   : > { %3767 = vmatmul.msk.bf16.gmra.mxu3 %vm906_vm1, %v5193_v43  ;;  %v5201_v62 = vadd.f32 %v1725_v9, %v1677_v60  ;;  %2231 = vmatmul.bf16.gmra.mxu1 %v5196_v30  ;;  %v1680_v1 = vadd.f32 %v1679_v22, %v5758_v3  ;;  %v5760_v9 = vld [vmem:[#allocation40_spill] sm:$0xff]  ;;  %v3921_v22 = vld [vmem:[#allocation7 + $0x354] sm:$0xf0] }
 0x25f   : > { %2399 = vmatpush.bf16.msrb.mxu1 %v3726_v41  ;;  %v3694_v41 = vor.u32 %v3917_v57, %v3693_v7  ;;  %v5766_v7 = vld [vmem:[#allocation34_spill] sm:$0xff] }
 0x260   : > { %5757 = vst [vmem:[#allocation28_spill] sm:$0xff] %v5201_v62  ;;  %1874 = vmatmul.bf16.gmra.mxu0 %v4614_v16  ;;  %v5676_v16 = vrot.slane %v4637_v40, 1 }
 0x261   : > { %v1821_v17 = vpop.f32.mrf.mxu3 }
 0x262   : > { %v5205_v25 = vadd.f32 %v1821_v17, %v1773_v29  ;;  %3600 = vmatmul.msk.bf16.gmra.mxu2 %vm906_vm1, %v4490_v61  ;;  %v5675_v29 = vrot.slane %v4517_v44, 1  ;;  %v3710_v17 = vor.u32 %v3921_v22, %v3709_v58  ;;  %v3894_v58 = vld [vmem:[#allocation7 + $0x284] sm:$0xf]  ;;  %v3607_v22 = vld [vmem:[#allocation7 + $0x290] sm:$0xf0] }
 0x263   : > { %v1774_v19 = vpop.f32.mrf.mxu1 }
 0x264   : > { %5759 = vst [vmem:[#allocation29_spill] sm:$0xff] %v5205_v25  ;;  %v1775_v60 = vadd.f32 %v1774_v19, %v5760_v9  ;;  %v5762_v25 = vld [vmem:[#allocation33_spill] sm:$0xff]  ;;  %2400 = vmatpush.bf16.msrb.mxu1 %v3710_v17 }
 0x265   : > { %v1728_v11 = vpop.f32.mrf.mxu2  ;;  %v1681_v3 = vpop.f32.mrf.mxu0  ;;  %v5764_v9 = vld [vmem:[#allocation41_spill] sm:$0xff] }
 0x266   : > { %v5211_v62 = vadd.f32 %v1728_v11, %v1680_v1  ;;  %v1682_v61 = vadd.f32 %v1681_v3, %v5762_v25  ;;  %v5221_v11 = vsel %vm577_vm4, %v598_v34, %v5675_v29  ;;  %v5226_v1 = vsel %vm577_vm4, %v596_v33, %v5676_v16  ;;  %v3677_v34 = vld [vmem:[#allocation7 + $0x308] sm:$0xf]  ;;  %v3913_v17 = vld [vmem:[#allocation7 + $0x314] sm:$0xf0]  ;;  %v3931_v16 = vld [vmem:[#allocation7 + $0x3ac] sm:$0xf] }
 0x267   : > { %v3678_v33 = vor.u32 %v3913_v17, %v3677_v34  ;;  %v3757_v34 = vld [vmem:[#allocation7 + $0x3a8] sm:$0xf] }
 0x268   : > { %5761 = vst [vmem:[#allocation30_spill] sm:$0xff] %v5211_v62  ;;  %2401 = vmatpush.bf16.msrb.mxu1 %v3694_v41  ;;  %v3909_v41 = vld [vmem:[#allocation7 + $0x2f4] sm:$0xf0]  ;;  %v604_v62 = vrot.slane %v4655_v59, 1 }
 0x269   : > { %v1823_v31 = vpop.f32.mrf.mxu3 }
 0x26a   : > { %v5216_v2 = vadd.f32 %v1823_v31, %v1775_v60  ;;  %v3610_v60 = vor.u32 %v3894_v58, %v3607_v22 }
 0x26b   : > { %v1777_v19 = vpop.f32.mrf.mxu1 }
 0x26c   : > { %5763 = vst [vmem:[#allocation37_spill] sm:$0xff] %v5216_v2  ;;  %v1778_v25 = vadd.f32 %v1777_v19, %v5764_v9  ;;  %2308 = vmatpush.bf16.msrb.mxu0 %v3610_v60  ;;  %2402 = vmatpush.bf16.msrb.mxu1 %v3678_v33  ;;  %v3759_v60 = vld [vmem:[#allocation7 + $0x3b8] sm:$0xf0]  ;;  %v3933_v33 = vld [vmem:[#allocation7 + $0x3b4] sm:$0xf0]  ;;  %v606_v2 = vrot.slane %v4545_v8, 1 }
 0x26d   : > { %v1730_v31 = vpop.f32.mrf.mxu2  ;;  %v1684_v29 = vpop.f32.mrf.mxu0 }
 0x26e   : > { %3768 = vmatmul.msk.bf16.gmra.mxu3 %vm906_vm1, %v5221_v11  ;;  %v5231_v3 = vadd.f32 %v1730_v31, %v1682_v61  ;;  %2236 = vmatmul.bf16.gmra.mxu1 %v5226_v1  ;;  %v1685_v57 = vadd.f32 %v1684_v29, %v5766_v7  ;;  %v3661_v61 = vld [vmem:[#allocation7 + $0x2e8] sm:$0xf]  ;;  %v3762_v29 = vor.u32 %v3931_v16, %v3759_v60  ;;  %v3923_v60 = vld [vmem:[#allocation7 + $0x36c] sm:$0xf] }
 0x26f   : > { %v3662_v22 = vor.u32 %v3909_v41, %v3661_v61  ;;  %v3758_v7 = vor.u32 %v3933_v33, %v3757_v34  ;;  %v3727_v34 = vld [vmem:[#allocation7 + $0x378] sm:$0xf0] }
 0x270   : > { %5765 = vst [vmem:[#allocation31_spill] sm:$0xff] %v5231_v3  ;;  %1879 = vmatmul.bf16.gmra.mxu0 %v4637_v40  ;;  %2552 = vmatpush.bf16.msra.mxu2 %v3762_v29  ;;  %v3730_v29 = vor.u32 %v3923_v60, %v3727_v34 }
 0x271   : > { %v1826_v19 = vpop.f32.mrf.mxu3  ;;  %2403 = vmatpush.bf16.msrb.mxu1 %v3662_v22  ;;  %2454 = vmatpush.bf16.msrb.mxu3 %v3758_v7  ;;  %v3901_v7 = vld [vmem:[#allocation7 + $0x2b4] sm:$0xf0] }
 0x272   : > { %v5235_v9 = vadd.f32 %v1826_v19, %v1778_v25  ;;  %3601 = vmatmul.msk.bf16.gmra.mxu2 %vm906_vm1, %v4517_v44  ;;  %v3645_v19 = vld [vmem:[#allocation7 + $0x2c8] sm:$0xf]  ;;  %2497 = vmatpush.bf16.msra.mxu0 %v3730_v29 }
 0x273   : > { %v1779_v58 = vpop.f32.mrf.mxu1 }
 0x274   : > { %5767 = vst [vmem:[#allocation39_spill] sm:$0xff] %v5235_v9  ;;  %v1780_v31 = vadd.f32 %v1779_v58, %v4908_v20  ;;  %v3905_v9 = vld [vmem:[#allocation7 + $0x2d4] sm:$0xf0]  ;;  %v5769_v20 = vld [vmem:[#allocation35_spill] sm:$0xff] }
 0x275   : > { %v1733_v17 = vpop.f32.mrf.mxu2  ;;  %v1686_v3 = vpop.f32.mrf.mxu0  ;;  %v3646_v61 = vor.u32 %v3905_v9, %v3645_v19  ;;  %v3741_v58 = vld [vmem:[#allocation7 + $0x388] sm:$0xf]  ;;  %v5771_v9 = vrot.slane %v4637_v40, 1  ;;  %v5772_v19 = vld [vmem:[#allocation42_spill] sm:$0xff]  ;;  %v3897_v40 = vld [vmem:[#allocation7 + $0x294] sm:$0xf0] }
 0x276   : > { %v5241_v25 = vadd.f32 %v1733_v17, %v1685_v57  ;;  %v1687_v41 = vadd.f32 %v1686_v3, %v5769_v20  ;;  %v3742_v16 = vor.u32 %v3929_v52, %v3741_v58  ;;  %v3629_v17 = vld [vmem:[#allocation7 + $0x2a8] sm:$0xf] }
 0x277   : > { %2404 = vmatpush.bf16.msrb.mxu1 %v3646_v61  ;;  %v5256_v3 = vsel %vm577_vm4, %v5771_v9, %v604_v62 }
 0x278   : > { %5768 = vst [vmem:[#allocation32_spill] sm:$0xff] %v5241_v25  ;;  %v5770_v25 = vrot.slane %v4517_v44, 1  ;;  %2455 = vmatpush.bf16.msrb.mxu3 %v3742_v16 }
 0x279   : > { %v1828_v22 = vpop.f32.mrf.mxu3 }
 0x27a   : > { %v5246_v57 = vadd.f32 %v1828_v22, %v1780_v31  ;;  %v5251_v6 = vsel %vm577_vm4, %v5770_v25, %v606_v2  ;;  %v3630_v31 = vor.u32 %v3901_v7, %v3629_v17  ;;  %v3613_v25 = vld [vmem:[#allocation7 + $0x288] sm:$0xf]  ;;  %v5773_v22 = vld [vmem:[#allocation36_spill] sm:$0xff] }
 0x27b   : > { %v1782_v33 = vpop.f32.mrf.mxu1  ;;  %v3614_v58 = vor.u32 %v3897_v40, %v3613_v25  ;;  %v5778_v40 = vld [vmem:[#allocation38_spill] sm:$0xff] }
 0x27c   : > { %v1783_v52 = vadd.f32 %v1782_v33, %v5772_v19  ;;  %2405 = vmatpush.bf16.msrb.mxu1 %v3630_v31  ;;  %v5776_v19 = vld [vmem:[#allocation18_spill] sm:$0xff] }
 0x27d   : > { %v1735_v61 = vpop.f32.mrf.mxu2  ;;  %v1689_v20 = vpop.f32.mrf.mxu0  ;;  %v616_v31 = vrot.slane %v5776_v19, 1 }
 0x27e   : > { %3769 = vmatmul.msk.bf16.gmra.mxu3 %vm906_vm1, %v5251_v6  ;;  %v5261_v44 = vadd.f32 %v1735_v61, %v1687_v41  ;;  %2241 = vmatmul.bf16.gmra.mxu1 %v5256_v3  ;;  %v1690_v60 = vadd.f32 %v1689_v20, %v5773_v22  ;;  %v5774_v41 = vld [vmem:[#allocation43_spill] sm:$0xff] }
 0x27f   : > { %v5777_v61 = vld [vmem:[#allocation19_spill] sm:$0xff] }
 0x280   : > { %1884 = vmatmul.bf16.gmra.mxu0 %v4655_v59  ;;  %2406 = vmatpush.bf16.msrb.mxu1 %v3614_v58  ;;  %v615_v25 = vrot.slane %v5777_v61, 1  ;;  %v5782_v61 = vld [vmem:[#allocation45_spill] sm:$0xff] }
 0x281   : > { %v1831_v34 = vpop.f32.mrf.mxu3 }
 0x282   : > { %v5265_v33 = vadd.f32 %v1831_v34, %v1783_v52  ;;  %3602 = vmatmul.msk.bf16.gmra.mxu2 %vm906_vm1, %v4545_v8  ;;  %v5279_v8 = vsel %vm577_vm4, %v606_v2, %v616_v31  ;;  %v5282_v58 = vsel %vm577_vm4, %v604_v62, %v615_v25  ;;  %v5780_v34 = vld [vmem:[#allocation44_spill] sm:$0xff] }
 0x283   : > { %v1784_v16 = vpop.f32.mrf.mxu1 }
 0x284   : > { %v1785_v17 = vadd.f32 %v1784_v16, %v5774_v41 }
 0x285   : > { %v1738_v9 = vpop.f32.mrf.mxu2  ;;  %v1691_v7 = vpop.f32.mrf.mxu0 }
 0x286   : > { %v5271_v29 = vadd.f32 %v1738_v9, %v1690_v60  ;;  %v1692_v52 = vadd.f32 %v1691_v7, %v5778_v40  ;;  %v3919_v9 = vld [vmem:[#allocation7 + $0x34c] sm:$0xf] }
 0x288   : > { %5775 = vst [vmem:[#allocation40_spill] sm:$0xff] %v5271_v29 }
 0x289   : > { %v1833_v20 = vpop.f32.mrf.mxu3 }
 0x28a   : > { %v5276_v22 = vadd.f32 %v1833_v20, %v1785_v17  ;;  %v3711_v17 = vld [vmem:[#allocation7 + $0x358] sm:$0xf0] }
 0x28b   : > { %v1787_v59 = vpop.f32.mrf.mxu1  ;;  %v3714_v19 = vor.u32 %v3919_v9, %v3711_v17 }
 0x28c   : > { %5779 = vst [vmem:[#allocation33_spill] sm:$0xff] %v5276_v22  ;;  %v1788_v60 = vadd.f32 %v1787_v59, %v5780_v34  ;;  %v5785_v34 = vld [vmem:[#allocation46_spill] sm:$0xff]  ;;  %v2761_v22 = vld [vmem:[#allocation8 + $0x30] sm:$0xff] }
 0x28d   : > { %v1740_v16 = vpop.f32.mrf.mxu2  ;;  %v1850_v7 = vpop.f32.mrf.mxu0  ;;  %2498 = vmatpush.bf16.msra.mxu0 %v3714_v19 }
 0x28e   : > { %3770 = vmatmul.msk.bf16.gmra.mxu3 %vm906_vm1, %v5279_v8  ;;  %v5287_v41 = vadd.f32 %v1740_v16, %v1692_v52  ;;  %2246 = vmatmul.bf16.gmra.mxu1 %v5282_v58  ;;  %v1851_v2 = vadd.f32 %v1850_v7, %v5782_v61  ;;  %v3915_v61 = vld [vmem:[#allocation7 + $0x32c] sm:$0xf] }
 0x290   : > { %5781 = vst [vmem:[#allocation41_spill] sm:$0xff] %v5287_v41  ;;  %2309 = vmatmul.bf16.vlgmr.msrb.gmra.mxu0 %v5088_v23 }
 0x291   : > { %v1836_v31 = vpop.f32.mrf.mxu3 }
 0x292   : > { %v5291_v62 = vadd.f32 %v1836_v31, %v1788_v60  ;;  %3771 = vmatmul.msk.bf16.vlgmr.msrb.gmra.mxu2 %vm906_vm1, %v5085_v47 }
 0x293   : > { %v1789_v25 = vpop.f32.mrf.mxu1 }
 0x294   : > { %5783 = vst [vmem:[#allocation34_spill] sm:$0xff] %v5291_v62  ;;  %v1790_v40 = vadd.f32 %v1789_v25, %v4942_v18  ;;  %v3695_v18 = vld [vmem:[#allocation7 + $0x338] sm:$0xf0]  ;;  %v2767_v62 = vld [vmem:[#allocation8 + $0x60] sm:$0xff] }
 0x295   : > { %v1899_v52 = vpop.f32.mrf.mxu2  ;;  %v1852_v59 = vpop.f32.mrf.mxu0 }
 0x296   : > { %v5297_v20 = vadd.f32 %v1899_v52, %v1851_v2  ;;  %v1853_v16 = vadd.f32 %v1852_v59, %v5785_v34  ;;  %v3698_v2 = vor.u32 %v3915_v61, %v3695_v18  ;;  %v5788_v34 = vld [vmem:[#allocation47_spill] sm:$0xff] }
 0x298   : > { %5784 = vst [vmem:[#allocation35_spill] sm:$0xff] %v5297_v20  ;;  %2499 = vmatpush.bf16.msra.mxu0 %v3698_v2  ;;  %v5790_v2 = vld [vmem:[#allocation22_spill] sm:$0xff] }
 0x299   : > { %v1838_v9 = vpop.f32.mrf.mxu3 }
 0x29a   : > { %v5300_v17 = vadd.f32 %v1838_v9, %v1790_v40 }
 0x29b   : > { %v2212_v7 = vpop.f32.mrf.mxu1 }
 0x29c   : > { %5786 = vst [vmem:[#allocation42_spill] sm:$0xff] %v5300_v17 }
 0x29d   : > { %v1901_v60 = vpop.f32.mrf.mxu2  ;;  %v1855_v31 = vpop.f32.mrf.mxu0 }
 0x29e   : > { %3779 = vmatmul.msk.bf16.vlgmr.msrb.gmra.mxu3 %vm906_vm1, %v5085_v47  ;;  %v5304_v19 = vadd.f32 %v1901_v60, %v1853_v16  ;;  %2407 = vmatmul.bf16.vlgmr.msrb.gmra.mxu1 %v5088_v23  ;;  %v1856_v25 = vadd.f32 %v1855_v31, %v4956_v26 }
 0x2a0   : > { %5787 = vst [vmem:[#allocation36_spill] sm:$0xff] %v5304_v19  ;;  %2314 = vmatmul.bf16.gmra.mxu0 %v5116_v12 }
 0x2a1   : > { %v2261_v52 = vpop.f32.mrf.mxu3 }
 0x2a2   : > { %v2262_v59 = vadd.f32 %v2261_v52, %v2212_v7  ;;  %3772 = vmatmul.msk.bf16.gmra.mxu2 %vm906_vm1, %v5113_v4 }
 0x2a3   : > { %v2214_v40 = vpop.f32.mrf.mxu1 }
 0x2a4   : > { %v5312_v16 = vadd.f32 %v2262_v59, %v5788_v34  ;;  %v3911_v59 = vld [vmem:[#allocation7 + $0x30c] sm:$0xf] }
 0x2a5   : > { %v1904_v9 = vpop.f32.mrf.mxu2  ;;  %v1857_v19 = vpop.f32.mrf.mxu0 }
 0x2a6   : > { %v5314_v60 = vadd.f32 %v1904_v9, %v1856_v25  ;;  %v1858_v61 = vadd.f32 %v1857_v19, %v4965_v46  ;;  %v3679_v25 = vld [vmem:[#allocation7 + $0x318] sm:$0xf0] }
 0x2a7   : > { %v3682_v9 = vor.u32 %v3911_v59, %v3679_v25 }
 0x2a8   : > { %5789 = vst [vmem:[#allocation43_spill] sm:$0xff] %v5314_v60  ;;  %v3743_v60 = vld [vmem:[#allocation7 + $0x398] sm:$0xf0] }
 0x2a9   : > { %v2263_v18 = vpop.f32.mrf.mxu3  ;;  %2500 = vmatpush.bf16.msra.mxu0 %v3682_v9 }
 0x2aa   : > { %v2264_v26 = vadd.f32 %v2263_v18, %v2214_v40 }
 0x2ab   : > { %v2217_v31 = vpop.f32.mrf.mxu1 }
 0x2ac   : > { %v5318_v7 = vadd.f32 %v2264_v26, %v5790_v2  ;;  %v5792_v26 = vld [vmem:[#allocation48_spill] sm:$0xff] }
 0x2ad   : > { %v1906_v52 = vpop.f32.mrf.mxu2  ;;  %v1860_v34 = vpop.f32.mrf.mxu0 }
 0x2ae   : > { %3780 = vmatmul.msk.bf16.gmra.mxu3 %vm906_vm1, %v5113_v4  ;;  %v5322_v17 = vadd.f32 %v1906_v52, %v1858_v61  ;;  %2412 = vmatmul.bf16.gmra.mxu1 %v5116_v12  ;;  %v1861_v46 = vadd.f32 %v1860_v34, %v4974_v21 }
 0x2b0   : > { %5791 = vst [vmem:[#allocation18_spill] sm:$0xff] %v5322_v17  ;;  %2319 = vmatmul.bf16.gmra.mxu0 %v5144_v55  ;;  %v3927_v17 = vld [vmem:[#allocation7 + $0x38c] sm:$0xf] }
 0x2b1   : > { %v2266_v19 = vpop.f32.mrf.mxu3  ;;  %v3746_v25 = vor.u32 %v3927_v17, %v3743_v60 }
 0x2b2   : > { %v2267_v40 = vadd.f32 %v2266_v19, %v2217_v31  ;;  %3773 = vmatmul.msk.bf16.gmra.mxu2 %vm906_vm1, %v5141_v27 }
 0x2b3   : > { %v2219_v18 = vpop.f32.mrf.mxu1  ;;  %2553 = vmatpush.bf16.msra.mxu2 %v3746_v25 }
 0x2b4   : > { %v5330_v61 = vadd.f32 %v2267_v40, %v5792_v26  ;;  %v3663_v26 = vld [vmem:[#allocation7 + $0x2f8] sm:$0xf0] }
 0x2b5   : > { %v1909_v2 = vpop.f32.mrf.mxu2  ;;  %v1862_v59 = vpop.f32.mrf.mxu0 }
 0x2b6   : > { %v5332_v52 = vadd.f32 %v1909_v2, %v1861_v46  ;;  %v1863_v21 = vadd.f32 %v1862_v59, %v4983_v5  ;;  %v3907_v46 = vld [vmem:[#allocation7 + $0x2ec] sm:$0xf] }
 0x2b7   : > { %v3666_v60 = vor.u32 %v3907_v46, %v3663_v26  ;;  %v5796_v26 = vld [vmem:[#allocation49_spill] sm:$0xff] }
 0x2b8   : > { %5793 = vst [vmem:[#allocation19_spill] sm:$0xff] %v5332_v52 }
 0x2b9   : > { %v2268_v34 = vpop.f32.mrf.mxu3  ;;  %2501 = vmatpush.bf16.msra.mxu0 %v3666_v60 }
 0x2ba   : > { %v2269_v31 = vadd.f32 %v2268_v34, %v2219_v18 }
 0x2bb   : > { %v2222_v9 = vpop.f32.mrf.mxu1 }
 0x2bc   : > { %v5336_v19 = vadd.f32 %v2269_v31, %v4978_v53 }
 0x2bd   : > { %v1911_v20 = vpop.f32.mrf.mxu2  ;;  %v1865_v17 = vpop.f32.mrf.mxu0 }
 0x2be   : > { %3781 = vmatmul.msk.bf16.gmra.mxu3 %vm906_vm1, %v5141_v27  ;;  %v5340_v40 = vadd.f32 %v1911_v20, %v1863_v21  ;;  %2417 = vmatmul.bf16.gmra.mxu1 %v5144_v55  ;;  %v1866_v5 = vadd.f32 %v1865_v17, %v4992_v48 }
 0x2c0   : > { %5794 = vst [vmem:[#allocation38_spill] sm:$0xff] %v5340_v40  ;;  %2324 = vmatmul.bf16.gmra.mxu0 %v5170_v28 }
 0x2c1   : > { %v2271_v2 = vpop.f32.mrf.mxu3 }
 0x2c2   : > { %v2272_v18 = vadd.f32 %v2271_v2, %v2222_v9  ;;  %3774 = vmatmul.msk.bf16.gmra.mxu2 %vm906_vm1, %v5167_v15 }
 0x2c3   : > { %v2224_v53 = vpop.f32.mrf.mxu1 }
 0x2c4   : > { %v5348_v20 = vadd.f32 %v2272_v18, %v4987_v56  ;;  %v3903_v56 = vld [vmem:[#allocation7 + $0x2cc] sm:$0xf] }
 0x2c5   : > { %v1914_v59 = vpop.f32.mrf.mxu2  ;;  %v1867_v21 = vpop.f32.mrf.mxu0 }
 0x2c6   : > { %v5350_v25 = vadd.f32 %v1914_v59, %v1866_v5  ;;  %v1868_v34 = vadd.f32 %v1867_v21, %v5000_v51  ;;  %v3647_v5 = vld [vmem:[#allocation7 + $0x2d8] sm:$0xf0]  ;;  %v5798_v59 = vld [vmem:[#allocation50_spill] sm:$0xff] }
 0x2c7   : > { %v3650_v18 = vor.u32 %v3903_v56, %v3647_v5 }
 0x2c8   : > { %5795 = vst [vmem:[#allocation44_spill] sm:$0xff] %v5350_v25  ;;  %v5801_v25 = vld [vmem:[#allocation52_spill] sm:$0xff] }
 0x2c9   : > { %v2273_v31 = vpop.f32.mrf.mxu3  ;;  %2502 = vmatpush.bf16.msra.mxu0 %v3650_v18 }
 0x2ca   : > { %v2274_v48 = vadd.f32 %v2273_v31, %v2224_v53 }
 0x2cb   : > { %v2227_v46 = vpop.f32.mrf.mxu1 }
 0x2cc   : > { %v5354_v9 = vadd.f32 %v2274_v48, %v5796_v26  ;;  %v5799_v48 = vld [vmem:[#allocation27_spill] sm:$0xff] }
 0x2cd   : > { %v1916_v17 = vpop.f32.mrf.mxu2  ;;  %v1870_v2 = vpop.f32.mrf.mxu0 }
 0x2ce   : > { %3782 = vmatmul.msk.bf16.gmra.mxu3 %vm906_vm1, %v5167_v15  ;;  %v5358_v60 = vadd.f32 %v1916_v17, %v1868_v34  ;;  %2422 = vmatmul.bf16.gmra.mxu1 %v5170_v28  ;;  %v1871_v51 = vadd.f32 %v1870_v2, %v5798_v59 }
 0x2d0   : > { %5797 = vst [vmem:[#allocation45_spill] sm:$0xff] %v5358_v60  ;;  %2329 = vmatmul.bf16.gmra.mxu0 %v5196_v30 }
 0x2d1   : > { %v2276_v21 = vpop.f32.mrf.mxu3 }
 0x2d2   : > { %v2277_v53 = vadd.f32 %v2276_v21, %v2227_v46  ;;  %3775 = vmatmul.msk.bf16.gmra.mxu2 %vm906_vm1, %v5193_v43  ;;  %v5802_v46 = vld [vmem:[#allocation51_spill] sm:$0xff] }
 0x2d3   : > { %v2229_v31 = vpop.f32.mrf.mxu1 }
 0x2d4   : > { %v5366_v34 = vadd.f32 %v2277_v53, %v5799_v48  ;;  %v3631_v53 = vld [vmem:[#allocation7 + $0x2b8] sm:$0xf0] }
 0x2d5   : > { %v1919_v26 = vpop.f32.mrf.mxu2  ;;  %v1872_v60 = vpop.f32.mrf.mxu0 }
 0x2d6   : > { %v5368_v17 = vadd.f32 %v1919_v26, %v1871_v51  ;;  %v1873_v56 = vadd.f32 %v1872_v60, %v5801_v25  ;;  %v3899_v51 = vld [vmem:[#allocation7 + $0x2ac] sm:$0xf]  ;;  %v5804_v25 = vld [vmem:[#allocation54_spill] sm:$0xff] }
 0x2d7   : > { %v3634_v26 = vor.u32 %v3899_v51, %v3631_v53  ;;  %v2770_v51 = vld [vmem:[#allocation8 + $0x78] sm:$0xff] }
 0x2d8   : > { %5800 = vst [vmem:[#allocation46_spill] sm:$0xff] %v5368_v17  ;;  %2787 = vmatpush.msra.mxu1 %v2770_v51 }
 0x2d9   : > { %v2278_v5 = vpop.f32.mrf.mxu3  ;;  %2503 = vmatpush.bf16.msra.mxu0 %v3634_v26 }
 0x2da   : > { %v2279_v2 = vadd.f32 %v2278_v5, %v2229_v31 }
 0x2db   : > { %v5371_v59 = vpop.f32.mrf.mxu1 }
 0x2dc   : > { %v5374_v18 = vadd.f32 %v2279_v2, %v5802_v46 }
 0x2dd   : > { %v1921_v21 = vpop.f32.mrf.mxu2  ;;  %v1875_v48 = vpop.f32.mrf.mxu0 }
 0x2de   : > { %3783 = vmatmul.msk.bf16.gmra.mxu3 %vm906_vm1, %v5193_v43  ;;  %v5378_v40 = vadd.f32 %v1921_v21, %v1873_v56  ;;  %2427 = vmatmul.bf16.gmra.mxu1 %v5196_v30  ;;  %v1876_v60 = vadd.f32 %v1875_v48, %v5804_v25  ;;  %v5806_v21 = vld [vmem:[#allocation56_spill] sm:$0xff] }
 0x2df   : > { %v2769_v48 = vld [vmem:[#allocation8 + $0x70] sm:$0xff] }
 0x2e0   : > { %5803 = vst [vmem:[#allocation47_spill] sm:$0xff] %v5378_v40  ;;  %2334 = vmatmul.bf16.gmra.mxu0 %v5226_v1  ;;  %2788 = vmatpush.msra.mxu1 %v2769_v48 }
 0x2e1   : > { %v5382_v31 = vpop.f32.mrf.mxu3 }
 0x2e2   : > { %3776 = vmatmul.msk.bf16.gmra.mxu2 %vm906_vm1, %v5221_v11 }
 0x2e3   : > { %v5387_v5 = vpop.f32.mrf.mxu1 }
 0x2e5   : > { %v1924_v56 = vpop.f32.mrf.mxu2  ;;  %v1877_v46 = vpop.f32.mrf.mxu0 }
 0x2e6   : > { %v5389_v2 = vadd.f32 %v1924_v56, %v1876_v60  ;;  %v1878_v40 = vadd.f32 %v1877_v46, %v5806_v21  ;;  %v3895_v60 = vld [vmem:[#allocation7 + $0x28c] sm:$0xf]  ;;  %v3615_v56 = vld [vmem:[#allocation7 + $0x298] sm:$0xf0] }
 0x2e7   : > { %v3618_v21 = vor.u32 %v3895_v60, %v3615_v56 }
 0x2e8   : > { %5805 = vst [vmem:[#allocation22_spill] sm:$0xff] %v5389_v2  ;;  %v2768_v2 = vld [vmem:[#allocation8 + $0x68] sm:$0xff] }
 0x2e9   : > { %v5392_v17 = vpop.f32.mrf.mxu3  ;;  %2789 = vmatpush.msra.mxu1 %v2768_v2  ;;  %2504 = vmatpush.bf16.msra.mxu0 %v3618_v21  ;;  %v2762_v21 = vld [vmem:[#allocation8 + $0x38] sm:$0xff] }
 0x2eb   : > { %v5394_v53 = vpop.f32.mrf.mxu1  ;;  %2790 = vmatpush.msra.mxu1 %v2767_v62  ;;  %v2763_v62 = vld [vmem:[#allocation8 + $0x40] sm:$0xff] }
 0x2ed   : > { %v1926_v26 = vpop.f32.mrf.mxu2  ;;  %v1880_v46 = vpop.f32.mrf.mxu0 }
 0x2ee   : > { %3784 = vmatmul.msk.bf16.gmra.mxu3 %vm906_vm1, %v5221_v11  ;;  %v5398_v25 = vadd.f32 %v1926_v26, %v1878_v40  ;;  %2432 = vmatmul.bf16.gmra.mxu1 %v5226_v1  ;;  %v1881_v52 = vadd.f32 %v1880_v46, %v5040_v45  ;;  %v2766_v40 = vld [vmem:[#allocation8 + $0x58] sm:$0xff]  ;;  %v2765_v26 = vld [vmem:[#allocation8 + $0x50] sm:$0xff]  ;;  %v2764_v45 = vld [vmem:[#allocation8 + $0x48] sm:$0xff] }
 0x2ef   : > { %2791 = vmatpush.msra.mxu1 %v2766_v40 }
 0x2f0   : > { %5807 = vst [vmem:[#allocation48_spill] sm:$0xff] %v5398_v25  ;;  %2339 = vmatmul.bf16.gmra.mxu0 %v5256_v3 }
 0x2f1   : > { %v5402_v51 = vpop.f32.mrf.mxu3  ;;  %2792 = vmatpush.msra.mxu1 %v2765_v26 }
 0x2f2   : > { %3777 = vmatmul.msk.bf16.gmra.mxu2 %vm906_vm1, %v5251_v6 }
 0x2f3   : > { %v5407_v48 = vpop.f32.mrf.mxu1  ;;  %2793 = vmatpush.msra.mxu1 %v2764_v45  ;;  %v2759_v45 = vld [vmem:[#allocation8 + $0x20] sm:$0xff] }
 0x2f5   : > { %v1929_v25 = vpop.f32.mrf.mxu2  ;;  %v1882_v60 = vpop.f32.mrf.mxu0  ;;  %2794 = vmatpush.msra.mxu1 %v2763_v62 }
 0x2f6   : > { %v5409_v2 = vadd.f32 %v1929_v25, %v1881_v52  ;;  %v1883_v56 = vadd.f32 %v1882_v60, %v5048_v54  ;;  %v2760_v25 = vld [vmem:[#allocation8 + $0x28] sm:$0xff] }
 0x2f7   : > { %2795 = vmatpush.msra.mxu1 %v2762_v21 }
 0x2f8   : > { %5808 = vst [vmem:[#allocation49_spill] sm:$0xff] %v5409_v2 }
 0x2f9   : > { %v5412_v46 = vpop.f32.mrf.mxu3  ;;  %2796 = vmatpush.msra.mxu1 %v2761_v22  ;;  %v2758_v22 = vld [vmem:[#allocation8 + $0x18] sm:$0xff] }
 0x2fb   : > { %v5414_v41 = vpop.f32.mrf.mxu1  ;;  %2797 = vmatpush.msra.mxu1 %v2760_v25  ;;  %v2756_v25 = vld [vmem:[#allocation8 + $0x8] sm:$0xff] }
 0x2fd   : > { %v1931_v40 = vpop.f32.mrf.mxu2  ;;  %v1885_v54 = vpop.f32.mrf.mxu0  ;;  %2798 = vmatpush.msra.mxu1 %v2759_v45  ;;  %v2786_v45 = vld [vmem:[#allocation8 + $0xf8] sm:$0xff] }
 0x2fe   : > { %3785 = vmatmul.msk.bf16.gmra.mxu3 %vm906_vm1, %v5251_v6  ;;  %v5418_v52 = vadd.f32 %v1931_v40, %v1883_v56  ;;  %2437 = vmatmul.bf16.gmra.mxu1 %v5256_v3  ;;  %v1886_v26 = vadd.f32 %v1885_v54, %v5056_v24  ;;  %v2757_v56 = vld [vmem:[#allocation8 + $0x10] sm:$0xff] }
 0x2ff   : > { %2799 = vmatpush.msra.mxu1 %v2758_v22  ;;  %2852 = vmatpush.msra.mxu3 %v2786_v45 }
 0x300   : > { %5809 = vst [vmem:[#allocation50_spill] sm:$0xff] %v5418_v52  ;;  %2344 = vmatmul.bf16.gmra.mxu0 %v5282_v58  ;;  %v2755_v52 = vld [vmem:[#allocation8] sm:$0xff] }
 0x301   : > { %v5422_v60 = vpop.f32.mrf.mxu3  ;;  %2800 = vmatpush.msra.mxu1 %v2757_v56 }
 0x302   : > { %3778 = vmatmul.msk.bf16.gmra.mxu2 %vm906_vm1, %v5279_v8 }
 0x303   : > { %v5427_v62 = vpop.f32.mrf.mxu1  ;;  %2801 = vmatpush.msra.mxu1 %v2756_v25 }
 0x304   : > { %5810 = vst [vmem:[#allocation27_spill] sm:$0xff] %v5427_v62 }
 0x305   : > { %v1934_v21 = vpop.f32.mrf.mxu2  ;;  %v1887_v24 = vpop.f32.mrf.mxu0  ;;  %2802 = vmatpush.msra.mxu1 %v2755_v52 }
 0x306   : > { %v5429_v40 = vadd.f32 %v1934_v21, %v1886_v26  ;;  %v1888_v54 = vadd.f32 %v1887_v24, %v5066_v50  ;;  %v2785_v26 = vld [vmem:[#allocation8 + $0xf0] sm:$0xff]  ;;  %v2784_v24 = vld [vmem:[#allocation8 + $0xe8] sm:$0xff] }
 0x307   : > { %2853 = vmatpush.msra.mxu3 %v2785_v26 }
 0x308   : > { %5811 = vst [vmem:[#allocation52_spill] sm:$0xff] %v5429_v40 }
 0x309   : > { %v5432_v2 = vpop.f32.mrf.mxu3  ;;  %2854 = vmatpush.msra.mxu3 %v2784_v24 }
 0x30b   : > { %v5434_v29 = vpop.f32.mrf.mxu1 }
 0x30c   : > { %5812 = vst [vmem:[#allocation51_spill] sm:$0xff] %v5434_v29 }
 0x30d   : > { %v1936_v62 = vpop.f32.mrf.mxu2  ;;  %v2310_v56 = vpop.f32.mrf.mxu0 }
 0x30e   : > { %3786 = vmatmul.msk.bf16.gmra.mxu3 %vm906_vm1, %v5279_v8  ;;  %v5438_v22 = vadd.f32 %v1936_v62, %v1888_v54  ;;  %2442 = vmatmul.bf16.gmra.mxu1 %v5282_v58 }
 0x310   : > { %5813 = vst [vmem:[#allocation54_spill] sm:$0xff] %v5438_v22  ;;  %2505 = vmatmul.bf16.vlgmr.msra.gmra.mxu0 %v5088_v23 }
 0x311   : > { %v5441_v50 = vpop.f32.mrf.mxu3 }
 0x312   : > { %5814 = vst [vmem:[#allocation56_spill] sm:$0xff] %v5441_v50  ;;  %3787 = vmatmul.msk.bf16.vlgmr.msra.gmra.mxu2 %vm906_vm1, %v5085_v47  ;;  %v2783_v50 = vld [vmem:[#allocation8 + $0xe0] sm:$0xff] }
 0x313   : > { %v5446_v52 = vpop.f32.mrf.mxu1  ;;  %2855 = vmatpush.msra.mxu3 %v2783_v50  ;;  %v2782_v50 = vld [vmem:[#allocation8 + $0xd8] sm:$0xff] }
 0x314   : > { %5815 = vst [vmem:[#allocation61_spill] sm:$0xff] %v5446_v52 }
 0x315   : > { %v2359_v21 = vpop.f32.mrf.mxu2  ;;  %v2312_v45 = vpop.f32.mrf.mxu0  ;;  %2856 = vmatpush.msra.mxu3 %v2782_v50  ;;  %v2663_v50 = vmul.f32 %v5330_v61, %v5330_v61 }
 0x316   : > { %v2360_v25 = vadd.f32 %v2359_v21, %v2310_v56 }
 0x318   : > { %v5449_v62 = vadd.f32 %v2360_v25, %v5076_v0 }
 0x319   : > { %v5451_v54 = vpop.f32.mrf.mxu3 }
 0x31b   : > { %v2408_v26 = vpop.f32.mrf.mxu1 }
 0x31d   : > { %v2361_v22 = vpop.f32.mrf.mxu2  ;;  %v2315_v23 = vpop.f32.mrf.mxu0 }
 0x31e   : > { %v2362_v40 = vadd.f32 %v2361_v22, %v2312_v45  ;;  %v2659_v22 = vmul.f32 %v5312_v16, %v5312_v16 }
 0x320   : > { %v5454_v47 = vadd.f32 %v2362_v40, %v5095_v49  ;;  %2510 = vmatmul.bf16.gmra.mxu0 %v5116_v12 }
 0x321   : > { %v2457_v52 = vpop.f32.mrf.mxu3 }
 0x322   : > { %v2458_v29 = vadd.f32 %v2457_v52, %v2408_v26  ;;  %3788 = vmatmul.msk.bf16.gmra.mxu2 %vm906_vm1, %v5113_v4 }
 0x323   : > { %v2410_v0 = vpop.f32.mrf.mxu1 }
 0x324   : > { %v2597_v56 = vadd.f32 %v2458_v29, %v5098_v14  ;;  %v2661_v29 = vmul.f32 %v5318_v7, %v5318_v7 }
 0x325   : > { %v2364_v21 = vpop.f32.mrf.mxu2  ;;  %v2317_v45 = vpop.f32.mrf.mxu0 }
 0x326   : > { %v2691_v25 = vmul.f32 %v2597_v56, %v2597_v56  ;;  %v2365_v24 = vadd.f32 %v2364_v21, %v2315_v23  ;;  %v2781_v23 = vld [vmem:[#allocation8 + $0xd0] sm:$0xff] }
 0x327   : > { %2857 = vmatpush.msra.mxu3 %v2781_v23 }
 0x328   : > { %v2723_v49 = vadd.f32 %v2691_v25, %v2659_v22  ;;  %v5463_v40 = vadd.f32 %v2365_v24, %v5106_v10 }
 0x329   : > { %v2459_v12 = vpop.f32.mrf.mxu3 }
 0x32a   : > { %v2460_v52 = vadd.f32 %v2459_v12, %v2410_v0  ;;  %2803 = vmatmul.f32.vlgmr.msra.gmra.mxu1 %v2723_v49 }
 0x32b   : > { %v2413_v4 = vpop.f32.mrf.mxu1 }
 0x32c   : > { %v2601_v26 = vadd.f32 %v2460_v52, %v5110_v13 }
 0x32d   : > { %v2366_v14 = vpop.f32.mrf.mxu2  ;;  %v2320_v21 = vpop.f32.mrf.mxu0 }
 0x32e   : > { %v2693_v16 = vmul.f32 %v2601_v26, %v2601_v26  ;;  %v2367_v56 = vadd.f32 %v2366_v14, %v2317_v45 }
 0x330   : > { %v5469_v22 = vadd.f32 %v2367_v56, %v5123_v38  ;;  %v2725_v10 = vadd.f32 %v2693_v16, %v2661_v29  ;;  %2515 = vmatmul.bf16.gmra.mxu0 %v5144_v55  ;;  %v2780_v38 = vld [vmem:[#allocation8 + $0xc8] sm:$0xff]  ;;  %v2665_v29 = vmul.f32 %v5336_v19, %v5336_v19  ;;  %v2779_v56 = vld [vmem:[#allocation8 + $0xc0] sm:$0xff] }
 0x331   : > { %v2462_v25 = vpop.f32.mrf.mxu3  ;;  %2858 = vmatpush.msra.mxu3 %v2780_v38 }
 0x332   : > { %v2463_v24 = vadd.f32 %v2462_v25, %v2413_v4  ;;  %2806 = vmatmul.f32.gmra.mxu1 %v2725_v10  ;;  %3789 = vmatmul.msk.bf16.gmra.mxu2 %vm906_vm1, %v5141_v27 }
 0x333   : > { %v2415_v13 = vpop.f32.mrf.mxu1  ;;  %2859 = vmatpush.msra.mxu3 %v2779_v56 }
 0x334   : > { %v2605_v7 = vadd.f32 %v2463_v24, %v5126_v39 }
 0x335   : > { %v2369_v0 = vpop.f32.mrf.mxu2  ;;  %v2322_v12 = vpop.f32.mrf.mxu0 }
 0x336   : > { %v2695_v45 = vmul.f32 %v2605_v7, %v2605_v7  ;;  %v2370_v49 = vadd.f32 %v2369_v0, %v2320_v21 }
 0x338   : > { %v5478_v52 = vadd.f32 %v2370_v49, %v5134_v36  ;;  %v2727_v4 = vadd.f32 %v2695_v45, %v2663_v50 }
 0x339   : > { %v2464_v55 = vpop.f32.mrf.mxu3 }
 0x33a   : > { %v2465_v26 = vadd.f32 %v2464_v55, %v2415_v13  ;;  %2809 = vmatmul.f32.gmra.mxu1 %v2727_v4  ;;  %v2667_v13 = vmul.f32 %v5348_v20, %v5348_v20  ;;  %v2669_v4 = vmul.f32 %v5354_v9, %v5354_v9 }
 0x33b   : > { %v2418_v27 = vpop.f32.mrf.mxu1 }
 0x33c   : > { %v2609_v14 = vadd.f32 %v2465_v26, %v5138_v42  ;;  %v2777_v26 = vld [vmem:[#allocation8 + $0xb0] sm:$0xff] }
 0x33d   : > { %v2371_v39 = vpop.f32.mrf.mxu2  ;;  %v2325_v23 = vpop.f32.mrf.mxu0 }
 0x33e   : > { %v2697_v61 = vmul.f32 %v2609_v14, %v2609_v14  ;;  %v2372_v16 = vadd.f32 %v2371_v39, %v2322_v12  ;;  %v5816_v14 = vld [vmem:[#allocation23_spill] sm:$0xff] }
 0x340   : > { %v5484_v21 = vadd.f32 %v2372_v16, %v5149_v37  ;;  %v2729_v36 = vadd.f32 %v2697_v61, %v2665_v29  ;;  %2520 = vmatmul.bf16.gmra.mxu0 %v5170_v28  ;;  %v2778_v37 = vld [vmem:[#allocation8 + $0xb8] sm:$0xff]  ;;  %v5817_v16 = vld [vmem:[#allocation24_spill] sm:$0xff] }
 0x341   : > { %v2467_v10 = vpop.f32.mrf.mxu3  ;;  %2860 = vmatpush.msra.mxu3 %v2778_v37 }
 0x342   : > { %v2468_v25 = vadd.f32 %v2467_v10, %v2418_v27  ;;  %2812 = vmatmul.f32.gmra.mxu1 %v2729_v36  ;;  %3790 = vmatmul.msk.bf16.gmra.mxu2 %vm906_vm1, %v5167_v15 }
 0x343   : > { %v2420_v42 = vpop.f32.mrf.mxu1  ;;  %2861 = vmatpush.msra.mxu3 %v2777_v26  ;;  %v5821_v26 = vld [vmem:[#allocation53_spill] sm:$0xff] }
 0x344   : > { %v2613_v19 = vadd.f32 %v2468_v25, %v5153_v63  ;;  %v2776_v25 = vld [vmem:[#allocation8 + $0xa8] sm:$0xff] }
 0x345   : > { %v2374_v24 = vpop.f32.mrf.mxu2  ;;  %v2327_v50 = vpop.f32.mrf.mxu0  ;;  %2862 = vmatpush.msra.mxu3 %v2776_v25  ;;  %v5824_v25 = vld [vmem:[#allocation55_spill] sm:$0xff] }
 0x346   : > { %v2699_v7 = vmul.f32 %v2613_v19, %v2613_v19  ;;  %v2375_v0 = vadd.f32 %v2374_v24, %v2325_v23  ;;  %v2671_v23 = vmul.f32 %v5366_v34, %v5366_v34  ;;  %v5818_v19 = vld [vmem:[#allocation25_spill] sm:$0xff]  ;;  %v2282_v34 = vadd.f32 %v5382_v31, %v5371_v59 }
 0x348   : > { %v5493_v45 = vadd.f32 %v2375_v0, %v5159_v35  ;;  %v2731_v49 = vadd.f32 %v2699_v7, %v2667_v13  ;;  %v5819_v0 = vld [vmem:[#allocation26_spill] sm:$0xff] }
 0x349   : > { %v2469_v28 = vpop.f32.mrf.mxu3 }
 0x34a   : > { %v2470_v38 = vadd.f32 %v2469_v28, %v2420_v42  ;;  %2815 = vmatmul.f32.gmra.mxu1 %v2731_v49  ;;  %v2673_v49 = vmul.f32 %v5374_v18, %v5374_v18  ;;  %v5822_v18 = vld [vmem:[#allocation29_spill] sm:$0xff] }
 0x34b   : > { %v2423_v15 = vpop.f32.mrf.mxu1 }
 0x34c   : > { %v2617_v12 = vadd.f32 %v2470_v38, %v5164_v32 }
 0x34d   : > { %v2376_v63 = vpop.f32.mrf.mxu2  ;;  %v2330_v27 = vpop.f32.mrf.mxu0 }
 0x34e   : > { %v2701_v20 = vmul.f32 %v2617_v12, %v2617_v12  ;;  %v2377_v55 = vadd.f32 %v2376_v63, %v2327_v50  ;;  %v5820_v63 = vld [vmem:[#allocation28_spill] sm:$0xff] }
 0x350   : > { %v5499_v39 = vadd.f32 %v2377_v55, %v5816_v14  ;;  %v2733_v35 = vadd.f32 %v2701_v20, %v2669_v4  ;;  %2525 = vmatmul.bf16.gmra.mxu0 %v5196_v30 }
 0x351   : > { %v2472_v29 = vpop.f32.mrf.mxu3 }
 0x352   : > { %v2473_v61 = vadd.f32 %v2472_v29, %v2423_v15  ;;  %2818 = vmatmul.f32.gmra.mxu1 %v2733_v35  ;;  %3791 = vmatmul.msk.bf16.gmra.mxu2 %vm906_vm1, %v5193_v43  ;;  %v2775_v15 = vld [vmem:[#allocation8 + $0xa0] sm:$0xff] }
 0x353   : > { %v2425_v32 = vpop.f32.mrf.mxu1  ;;  %2863 = vmatpush.msra.mxu3 %v2775_v15  ;;  %v5827_v15 = vld [vmem:[#allocation57_spill] sm:$0xff] }
 0x354   : > { %v2621_v9 = vadd.f32 %v2473_v61, %v5817_v16  ;;  %v2284_v61 = vadd.f32 %v5392_v17, %v5387_v5  ;;  %v2287_v17 = vadd.f32 %v5402_v51, %v5394_v53  ;;  %v5828_v51 = vld [vmem:[#allocation39_spill] sm:$0xff] }
 0x355   : > { %v2379_v56 = vpop.f32.mrf.mxu2  ;;  %v2332_v42 = vpop.f32.mrf.mxu0 }
 0x356   : > { %v2703_v36 = vmul.f32 %v2621_v9, %v2621_v9  ;;  %v2380_v10 = vadd.f32 %v2379_v56, %v2330_v27  ;;  %v2627_v27 = vadd.f32 %v2282_v34, %v5821_v26  ;;  %v2774_v9 = vld [vmem:[#allocation8 + $0x98] sm:$0xff] }
 0x357   : > { %2864 = vmatpush.msra.mxu3 %v2774_v9 }
 0x358   : > { %v5508_v24 = vadd.f32 %v2380_v10, %v5818_v19  ;;  %v2735_v13 = vadd.f32 %v2703_v36, %v2671_v23  ;;  %v2675_v29 = vmul.f32 %v2627_v27, %v2627_v27  ;;  %v5823_v23 = vld [vmem:[#allocation30_spill] sm:$0xff]  ;;  %v2289_v27 = vadd.f32 %v5412_v46, %v5407_v48 }
 0x359   : > { %v2474_v30 = vpop.f32.mrf.mxu3  ;;  %v2292_v48 = vadd.f32 %v5422_v60, %v5414_v41 }
 0x35a   : > { %v2475_v7 = vadd.f32 %v2474_v30, %v2425_v32  ;;  %2821 = vmatmul.f32.gmra.mxu1 %v2735_v13  ;;  %v5825_v13 = vld [vmem:[#allocation37_spill] sm:$0xff] }
 0x35b   : > { %v2428_v43 = vpop.f32.mrf.mxu1 }
 0x35c   : > { %v2625_v37 = vadd.f32 %v2475_v7, %v5819_v0 }
 0x35d   : > { %v2381_v50 = vpop.f32.mrf.mxu2  ;;  %v2335_v12 = vpop.f32.mrf.mxu0 }
 0x35e   : > { %v2705_v28 = vmul.f32 %v2625_v37, %v2625_v37  ;;  %v2382_v38 = vadd.f32 %v2381_v50, %v2332_v42  ;;  %v2773_v37 = vld [vmem:[#allocation8 + $0x90] sm:$0xff] }
 0x35f   : > { %2865 = vmatpush.msra.mxu3 %v2773_v37 }
 0x360   : > { %v5516_v4 = vadd.f32 %v2382_v38, %v5820_v63  ;;  %v2737_v20 = vadd.f32 %v2705_v28, %v2673_v49  ;;  %2530 = vmatmul.bf16.gmra.mxu0 %v5226_v1  ;;  %v5826_v49 = vld [vmem:[#allocation31_spill] sm:$0xff] }
 0x361   : > { %v2477_v55 = vpop.f32.mrf.mxu3 }
 0x362   : > { %v2478_v14 = vadd.f32 %v2477_v55, %v2428_v43  ;;  %2824 = vmatmul.f32.gmra.mxu1 %v2737_v20  ;;  %3792 = vmatmul.msk.bf16.gmra.mxu2 %vm906_vm1, %v5221_v11  ;;  %v2631_v11 = vadd.f32 %v2284_v61, %v5824_v25  ;;  %v2771_v25 = vld [vmem:[#allocation8 + $0x80] sm:$0xff] }
 0x363   : > { %v2430_v59 = vpop.f32.mrf.mxu1 }
 0x364   : > { %v2629_v31 = vadd.f32 %v2478_v14, %v5822_v18  ;;  %v2677_v43 = vmul.f32 %v2631_v11, %v2631_v11  ;;  %v2772_v18 = vld [vmem:[#allocation8 + $0x88] sm:$0xff] }
 0x365   : > { %v2384_v35 = vpop.f32.mrf.mxu2  ;;  %v2337_v56 = vpop.f32.mrf.mxu0  ;;  %2866 = vmatpush.msra.mxu3 %v2772_v18  ;;  %v5838_v18 = vld [vmem:[#allocation41_spill] sm:$0xff] }
 0x366   : > { %v2707_v32 = vmul.f32 %v2629_v31, %v2629_v31  ;;  %v2385_v16 = vadd.f32 %v2384_v35, %v2335_v12  ;;  %v2635_v12 = vadd.f32 %v2287_v17, %v5827_v15  ;;  %v5829_v35 = vld [vmem:[#allocation32_spill] sm:$0xff] }
 0x367   : > { %2867 = vmatpush.msra.mxu3 %v2771_v25 }
 0x368   : > { %v5526_v36 = vadd.f32 %v2385_v16, %v5823_v23  ;;  %v2739_v1 = vadd.f32 %v2707_v32, %v2675_v29  ;;  %v2679_v26 = vmul.f32 %v2635_v12, %v2635_v12  ;;  %v5830_v32 = vld [vmem:[#allocation58_spill] sm:$0xff] }
 0x369   : > { %v2479_v10 = vpop.f32.mrf.mxu3 }
 0x36a   : > { %v2480_v42 = vadd.f32 %v2479_v10, %v2430_v59  ;;  %2827 = vmatmul.f32.gmra.mxu1 %v2739_v1 }
 0x36b   : > { %v2433_v19 = vpop.f32.mrf.mxu1 }
 0x36c   : > { %v2633_v30 = vadd.f32 %v2480_v42, %v5825_v13 }
 0x36d   : > { %v2386_v7 = vpop.f32.mrf.mxu2  ;;  %v2340_v50 = vpop.f32.mrf.mxu0 }
 0x36e   : > { %v2709_v5 = vmul.f32 %v2633_v30, %v2633_v30  ;;  %v2387_v0 = vadd.f32 %v2386_v7, %v2337_v56  ;;  %v5831_v30 = vld [vmem:[#allocation59_spill] sm:$0xff] }
 0x36f   : > { %v2643_v7 = vadd.f32 %v2292_v48, %v5831_v30 }
 0x370   : > { %v5533_v34 = vadd.f32 %v2387_v0, %v5826_v49  ;;  %v2741_v28 = vadd.f32 %v2709_v5, %v2677_v43  ;;  %2535 = vmatmul.bf16.gmra.mxu0 %v5256_v3  ;;  %v5832_v5 = vld [vmem:[#allocation27_spill] sm:$0xff]  ;;  %v5833_v49 = vld [vmem:[#allocation40_spill] sm:$0xff] }
 0x371   : > { %v2482_v38 = vpop.f32.mrf.mxu3  ;;  %v2683_v17 = vmul.f32 %v2643_v7, %v2643_v7 }
 0x372   : > { %v2483_v63 = vadd.f32 %v2482_v38, %v2433_v19  ;;  %2830 = vmatmul.f32.gmra.mxu1 %v2741_v28  ;;  %3793 = vmatmul.msk.bf16.gmra.mxu2 %vm906_vm1, %v5251_v6  ;;  %v2639_v6 = vadd.f32 %v2289_v27, %v5830_v32 }
 0x373   : > { %v2435_v53 = vpop.f32.mrf.mxu1 }
 0x374   : > { %v2637_v20 = vadd.f32 %v2483_v63, %v5828_v51  ;;  %v2681_v1 = vmul.f32 %v2639_v6, %v2639_v6 }
 0x375   : > { %v2389_v55 = vpop.f32.mrf.mxu2  ;;  %v2342_v31 = vpop.f32.mrf.mxu0 }
 0x376   : > { %v2711_v14 = vmul.f32 %v2637_v20, %v2637_v20  ;;  %v2390_v59 = vadd.f32 %v2389_v55, %v2340_v50  ;;  %v5836_v55 = vld [vmem:[#allocation51_spill] sm:$0xff] }
 0x378   : > { %v5543_v29 = vadd.f32 %v2390_v59, %v5829_v35  ;;  %v2743_v3 = vadd.f32 %v2711_v14, %v2679_v26  ;;  %v5837_v26 = vld [vmem:[#allocation56_spill] sm:$0xff] }
 0x379   : > { %v2484_v61 = vpop.f32.mrf.mxu3 }
 0x37a   : > { %v2485_v16 = vadd.f32 %v2484_v61, %v2435_v53  ;;  %2833 = vmatmul.f32.gmra.mxu1 %v2743_v3  ;;  %v5839_v61 = vld [vmem:[#allocation20_spill] sm:$0xff] }
 0x37b   : > { %v2438_v9 = vpop.f32.mrf.mxu1 }
 0x37c   : > { %v2641_v56 = vadd.f32 %v2485_v16, %v5246_v57  ;;  %v5840_v16 = vld [vmem:[#allocation34_spill] sm:$0xff] }
 0x37d   : > { %v2391_v23 = vpop.f32.mrf.mxu2  ;;  %v2345_v11 = vpop.f32.mrf.mxu0 }
 0x37e   : > { %v2713_v46 = vmul.f32 %v2641_v56, %v2641_v56  ;;  %v2392_v10 = vadd.f32 %v2391_v23, %v2342_v31 }
 0x380   : > { %v5550_v42 = vadd.f32 %v2392_v10, %v5261_v44  ;;  %v2745_v19 = vadd.f32 %v2713_v46, %v2681_v1  ;;  %2540 = vmatmul.bf16.gmra.mxu0 %v5282_v58  ;;  %v2294_v44 = vadd.f32 %v5432_v2, %v5832_v5  ;;  %v5834_v58 = vld [vmem:[#allocation60_spill] sm:$0xff]  ;;  %v2297_v2 = vadd.f32 %v5837_v26, %v5836_v55  ;;  %v5841_v1 = vld [vmem:[#allocation61_spill] sm:$0xff]  ;;  %v5844_v5 = vld [vmem:[#allocation42_spill] sm:$0xff] }
 0x381   : > { %v2487_v13 = vpop.f32.mrf.mxu3  ;;  %v2299_v48 = vadd.f32 %v5451_v54, %v5841_v1  ;;  %v2664_v26 = vmul.f32 %v5463_v40, %v5463_v40  ;;  %v2668_v40 = vmul.f32 %v5478_v52, %v5478_v52  ;;  %v2672_v52 = vmul.f32 %v5493_v45, %v5493_v45 }
 0x382   : > { %v2488_v43 = vadd.f32 %v2487_v13, %v2438_v9  ;;  %2836 = vmatmul.f32.gmra.mxu1 %v2745_v19  ;;  %3794 = vmatmul.msk.bf16.gmra.mxu2 %vm906_vm1, %v5279_v8  ;;  %v2647_v12 = vadd.f32 %v2294_v44, %v5834_v58  ;;  %v5835_v8 = vld [vmem:[#allocation33_spill] sm:$0xff]  ;;  %v2651_v32 = vadd.f32 %v2297_v2, %v5839_v61  ;;  %v5842_v19 = vld [vmem:[#allocation35_spill] sm:$0xff] }
 0x383   : > { %v2440_v57 = vpop.f32.mrf.mxu1  ;;  %v2676_v45 = vmul.f32 %v5508_v24, %v5508_v24  ;;  %v2680_v24 = vmul.f32 %v5526_v36, %v5526_v36  ;;  %v2684_v36 = vmul.f32 %v5543_v29, %v5543_v29 }
 0x384   : > { %v2645_v41 = vadd.f32 %v2488_v43, %v5265_v33  ;;  %v2685_v20 = vmul.f32 %v2647_v12, %v2647_v12  ;;  %v2687_v23 = vmul.f32 %v2651_v32, %v2651_v32  ;;  %v5843_v43 = vld [vmem:[#allocation21_spill] sm:$0xff] }
 0x385   : > { %v2394_v60 = vpop.f32.mrf.mxu2  ;;  %v2347_v50 = vpop.f32.mrf.mxu0 }
 0x386   : > { %v2715_v0 = vmul.f32 %v2645_v41, %v2645_v41  ;;  %v2395_v37 = vadd.f32 %v2394_v60, %v2345_v11  ;;  %v2660_v41 = vmul.f32 %v5449_v62, %v5449_v62 }
 0x388   : > { %v5560_v28 = vadd.f32 %v2395_v37, %v5833_v49  ;;  %v2747_v38 = vadd.f32 %v2715_v0, %v2683_v17 }
 0x389   : > { %v2489_v15 = vpop.f32.mrf.mxu3 }
 0x38a   : > { %v2490_v63 = vadd.f32 %v2489_v15, %v2440_v57  ;;  %2839 = vmatmul.f32.gmra.mxu1 %v2747_v38  ;;  %v2655_v57 = vadd.f32 %v2299_v48, %v5843_v43  ;;  %v5845_v15 = vld [vmem:[#allocation36_spill] sm:$0xff] }
 0x38b   : > { %v2443_v51 = vpop.f32.mrf.mxu1 }
 0x38c   : > { %v2649_v53 = vadd.f32 %v2490_v63, %v5835_v8  ;;  %v2689_v37 = vmul.f32 %v2655_v57, %v2655_v57  ;;  %v2662_v63 = vmul.f32 %v5454_v47, %v5454_v47 }
 0x38d   : > { %v2396_v33 = vpop.f32.mrf.mxu2  ;;  %v2506_v59 = vpop.f32.mrf.mxu0 }
 0x38e   : > { %v2717_v27 = vmul.f32 %v2649_v53, %v2649_v53  ;;  %v2397_v14 = vadd.f32 %v2396_v33, %v2347_v50 }
 0x390   : > { %v5567_v31 = vadd.f32 %v2397_v14, %v5838_v18  ;;  %v2749_v35 = vadd.f32 %v2717_v27, %v2685_v20  ;;  %v5846_v20 = vld [vmem:[#allocation43_spill] sm:$0xff] }
 0x391   : > { %v2492_v3 = vpop.f32.mrf.mxu3 }
 0x392   : > { %v2493_v6 = vadd.f32 %v2492_v3, %v2443_v51  ;;  %2842 = vmatmul.f32.gmra.mxu1 %v2749_v35  ;;  %v5847_v35 = vld [vmem:[#allocation18_spill] sm:$0xff]  ;;  %v2666_v3 = vmul.f32 %v5469_v22, %v5469_v22  ;;  %v2670_v22 = vmul.f32 %v5484_v21, %v5484_v21  ;;  %v2674_v21 = vmul.f32 %v5499_v39, %v5499_v39 }
 0x393   : > { %v2445_v25 = vpop.f32.mrf.mxu1  ;;  %v2678_v39 = vmul.f32 %v5516_v4, %v5516_v4  ;;  %v2682_v4 = vmul.f32 %v5533_v34, %v5533_v34  ;;  %v2686_v34 = vmul.f32 %v5550_v42, %v5550_v42 }
 0x394   : > { %v2653_v9 = vadd.f32 %v2493_v6, %v5840_v16 }
 0x395   : > { %v2555_v56 = vpop.f32.mrf.mxu2  ;;  %v2508_v11 = vpop.f32.mrf.mxu0 }
 0x396   : > { %v2719_v46 = vmul.f32 %v2653_v9, %v2653_v9  ;;  %v2556_v10 = vadd.f32 %v2555_v56, %v2506_v59  ;;  %v5848_v56 = vld [vmem:[#allocation19_spill] sm:$0xff] }
 0x398   : > { %v2598_v13 = vadd.f32 %v2556_v10, %v5842_v19  ;;  %v2751_v30 = vadd.f32 %v2719_v46, %v2687_v23 }
 0x399   : > { %v2494_v7 = vpop.f32.mrf.mxu3 }
 0x39a   : > { %v2495_v60 = vadd.f32 %v2494_v7, %v2445_v25  ;;  %v2692_v17 = vmul.f32 %v2598_v13, %v2598_v13  ;;  %2845 = vmatmul.f32.gmra.mxu1 %v2751_v30 }
 0x39c   : > { %v2657_v44 = vadd.f32 %v2495_v60, %v5844_v5  ;;  %v2724_v0 = vadd.f32 %v2692_v17, %v2660_v41  ;;  %v5850_v41 = vld [vmem:[#allocation44_spill] sm:$0xff] }
 0x39d   : > { %v2557_v54 = vpop.f32.mrf.mxu2  ;;  %v2511_v38 = vpop.f32.mrf.mxu0 }
 0x39e   : > { %v2721_v50 = vmul.f32 %v2657_v44, %v2657_v44  ;;  %v2558_v49 = vadd.f32 %v2557_v54, %v2508_v11  ;;  %2868 = vmatmul.f32.vlgmr.msra.gmra.mxu3 %v2724_v0  ;;  %v5849_v11 = vld [vmem:[#allocation38_spill] sm:$0xff] }
 0x3a0   : > { %v2602_v58 = vadd.f32 %v2558_v49, %v5845_v15  ;;  %v2753_v12 = vadd.f32 %v2721_v50, %v2689_v37  ;;  %v5851_v37 = vld [vmem:[#allocation45_spill] sm:$0xff] }
 0x3a2   : > { %v2694_v8 = vmul.f32 %v2602_v58, %v2602_v58  ;;  %2848 = vmatmul.f32.gmra.mxu1 %v2753_v12 }
 0x3a4   : > { %v2726_v62 = vadd.f32 %v2694_v8, %v2662_v63  ;;  %v5852_v63 = vld [vmem:[#allocation46_spill] sm:$0xff] }
 0x3a5   : > { %v2560_v53 = vpop.f32.mrf.mxu2  ;;  %v2513_v51 = vpop.f32.mrf.mxu0 }
 0x3a6   : > { %v2561_v33 = vadd.f32 %v2560_v53, %v2511_v38  ;;  %2871 = vmatmul.f32.gmra.mxu3 %v2726_v62 }
 0x3a8   : > { %v2606_v55 = vadd.f32 %v2561_v33, %v5846_v20 }
 0x3aa   : > { %v2696_v2 = vmul.f32 %v2606_v55, %v2606_v55  ;;  %v5853_v55 = vld [vmem:[#allocation47_spill] sm:$0xff] }
 0x3ac   : > { %v2728_v27 = vadd.f32 %v2696_v2, %v2664_v26 }
 0x3ad   : > { %v2562_v14 = vpop.f32.mrf.mxu2  ;;  %v2516_v18 = vpop.f32.mrf.mxu0 }
 0x3ae   : > { %v2563_v59 = vadd.f32 %v2562_v14, %v2513_v51  ;;  %2874 = vmatmul.f32.gmra.mxu3 %v2728_v27 }
 0x3b0   : > { %v2610_v47 = vadd.f32 %v2563_v59, %v5847_v35  ;;  %v5854_v35 = vld [vmem:[#allocation22_spill] sm:$0xff] }
 0x3b2   : > { %v2698_v61 = vmul.f32 %v2610_v47, %v2610_v47 }
 0x3b4   : > { %v2730_v32 = vadd.f32 %v2698_v61, %v2666_v3 }
 0x3b5   : > { %v2565_v6 = vpop.f32.mrf.mxu2  ;;  %v2518_v9 = vpop.f32.mrf.mxu0 }
 0x3b6   : > { %2877 = vmatmul.f32.gmra.mxu3 %v2730_v32  ;;  %v2566_v16 = vadd.f32 %v2565_v6, %v2516_v18 }
 0x3b8   : > { %v2614_v23 = vadd.f32 %v2566_v16, %v5848_v56 }
 0x3ba   : > { %v2700_v1 = vmul.f32 %v2614_v23, %v2614_v23 }
 0x3bc   : > { %v2732_v48 = vadd.f32 %v2700_v1, %v2668_v40 }
 0x3bd   : > { %v2567_v46 = vpop.f32.mrf.mxu2  ;;  %v2521_v25 = vpop.f32.mrf.mxu0 }
 0x3be   : > { %v2568_v10 = vadd.f32 %v2567_v46, %v2518_v9  ;;  %2880 = vmatmul.f32.gmra.mxu3 %v2732_v48  ;;  %v5855_v9 = vld [vmem:[#allocation48_spill] sm:$0xff]  ;;  %v5856_v46 = vld [vmem:[#allocation49_spill] sm:$0xff] }
 0x3c0   : > { %v2618_v19 = vadd.f32 %v2568_v10, %v5849_v11 }
 0x3c2   : > { %v2702_v13 = vmul.f32 %v2618_v19, %v2618_v19 }
 0x3c4   : > { %v2734_v30 = vadd.f32 %v2702_v13, %v2670_v22 }
 0x3c5   : > { %v2570_v7 = vpop.f32.mrf.mxu2  ;;  %v2523_v57 = vpop.f32.mrf.mxu0 }
 0x3c6   : > { %v2571_v43 = vadd.f32 %v2570_v7, %v2521_v25  ;;  %2883 = vmatmul.f32.gmra.mxu3 %v2734_v30  ;;  %v2804_v30 = vpop.f32.mrf.mxu1  ;;  %v5857_v7 = vld [vmem:[#allocation50_spill] sm:$0xff] }
 0x3c8   : > { %v2622_v60 = vadd.f32 %v2571_v43, %v5850_v41 }
 0x3ca   : > { %v2704_v17 = vmul.f32 %v2622_v60, %v2622_v60 }
 0x3cc   : > { %v2736_v5 = vadd.f32 %v2704_v17, %v2672_v52 }
 0x3cd   : > { %v2572_v44 = vpop.f32.mrf.mxu2  ;;  %v2526_v54 = vpop.f32.mrf.mxu0 }
 0x3ce   : > { %v2573_v0 = vadd.f32 %v2572_v44, %v2523_v57  ;;  %2886 = vmatmul.f32.gmra.mxu3 %v2736_v5  ;;  %v5858_v5 = vld [vmem:[#allocation52_spill] sm:$0xff]  ;;  %v2807_v29 = vpop.f32.mrf.mxu1 }
 0x3d0   : > { %v2626_v50 = vadd.f32 %v2573_v0, %v5851_v37  ;;  %v2688_v0 = vmul.f32 %v5560_v28, %v5560_v28  ;;  %v2808_v28 = vadd.f32 1e-06, %v2807_v29 }
 0x3d2   : > { %v2706_v49 = vmul.f32 %v2626_v50, %v2626_v50 }
 0x3d4   : > { %v2738_v38 = vadd.f32 %v2706_v49, %v2674_v21 }
 0x3d5   : > { %v2575_v15 = vpop.f32.mrf.mxu2  ;;  %v2528_v12 = vpop.f32.mrf.mxu0 }
 0x3d6   : > { %v2576_v58 = vadd.f32 %v2575_v15, %v2526_v54  ;;  %2889 = vmatmul.f32.gmra.mxu3 %v2738_v38  ;;  %v5859_v38 = vld [vmem:[#allocation54_spill] sm:$0xff]  ;;  %v2690_v15 = vmul.f32 %v5567_v31, %v5567_v31 }
 0x3d8   : > { %v2630_v8 = vadd.f32 %v2576_v58, %v5852_v63 }
 0x3da   : > { %v2708_v62 = vmul.f32 %v2630_v8, %v2630_v8 }
 0x3dc   : > { %v2740_v53 = vadd.f32 %v2708_v62, %v2676_v45  ;;  %v2805_v45 = vadd.f32 1e-06, %v2804_v30 }
 0x3dd   : > { %v2577_v33 = vpop.f32.mrf.mxu2  ;;  %v2531_v20 = vpop.f32.mrf.mxu0 }
 0x3de   : > { %v2578_v51 = vadd.f32 %v2577_v33, %v2528_v12  ;;  %2892 = vmatmul.f32.gmra.mxu3 %v2740_v53  ;;  %v2810_v12 = vpop.f32.mrf.mxu1 }
 0x3e0   : > { %v2634_v26 = vadd.f32 %v2578_v51, %v5853_v55 }
 0x3e2   : > { %v2710_v2 = vmul.f32 %v2634_v26, %v2634_v26 }
 0x3e4   : > { %v2742_v27 = vadd.f32 %v2710_v2, %v2678_v39  ;;  %v2811_v39 = vadd.f32 1e-06, %v2810_v12 }
 0x3e5   : > { %v2580_v14 = vpop.f32.mrf.mxu2  ;;  %v2533_v18 = vpop.f32.mrf.mxu0 }
 0x3e6   : > { %v2581_v59 = vadd.f32 %v2580_v14, %v2531_v20  ;;  %2895 = vmatmul.f32.gmra.mxu3 %v2742_v27  ;;  %v2813_v8 = vpop.f32.mrf.mxu1 }
 0x3e8   : > { %v2638_v47 = vadd.f32 %v2581_v59, %v5854_v35 }
 0x3ea   : > { %v2712_v3 = vmul.f32 %v2638_v47, %v2638_v47 }
 0x3ec   : > { %v2744_v61 = vadd.f32 %v2712_v3, %v2680_v24 }
 0x3ed   : > { %v2582_v32 = vpop.f32.mrf.mxu2  ;;  %v2536_v16 = vpop.f32.mrf.mxu0 }
 0x3ee   : > { %v2583_v6 = vadd.f32 %v2582_v32, %v2533_v18  ;;  %2898 = vmatmul.f32.gmra.mxu3 %v2744_v61  ;;  %v2816_v33 = vpop.f32.mrf.mxu1  ;;  %v2814_v18 = vadd.f32 1e-06, %v2813_v8 }
 0x3ef   : > { %v2817_v32 = vadd.f32 1e-06, %v2816_v33 }
 0x3f0   : > { %v2642_v56 = vadd.f32 %v2583_v6, %v5855_v9 }
 0x3f2   : > { %v2714_v23 = vmul.f32 %v2642_v56, %v2642_v56 }
 0x3f4   : > { %v2746_v40 = vadd.f32 %v2714_v23, %v2682_v4 }
 0x3f5   : > { %v2585_v1 = vpop.f32.mrf.mxu2  ;;  %v2538_v25 = vpop.f32.mrf.mxu0 }
 0x3f6   : > { %v2586_v48 = vadd.f32 %v2585_v1, %v2536_v16  ;;  %2901 = vmatmul.f32.gmra.mxu3 %v2746_v40  ;;  %v2819_v27 = vpop.f32.mrf.mxu1 }
 0x3f7   : > { %v2820_v23 = vadd.f32 1e-06, %v2819_v27 }
 0x3f8   : > { %v2646_v10 = vadd.f32 %v2586_v48, %v5856_v46 }
 0x3fa   : > { %v2716_v11 = vmul.f32 %v2646_v10, %v2646_v10 }
 0x3fc   : > { %v2748_v19 = vadd.f32 %v2716_v11, %v2684_v36 }
 0x3fd   : > { %v2587_v22 = vpop.f32.mrf.mxu2  ;;  %v2541_v41 = vpop.f32.mrf.mxu0 }
 0x3fe   : > { %v2588_v13 = vadd.f32 %v2587_v22, %v2538_v25  ;;  %2904 = vmatmul.f32.gmra.mxu3 %v2748_v19  ;;  %v2822_v61 = vpop.f32.mrf.mxu1 }
 0x3ff   : > { %v2823_v25 = vadd.f32 1e-06, %v2822_v61 }
 0x400   : > { %v2650_v43 = vadd.f32 %v2588_v13, %v5857_v7 }
 0x402   : > { %v2718_v57 = vmul.f32 %v2650_v43, %v2650_v43 }
 0x404   : > { %v2750_v60 = vadd.f32 %v2718_v57, %v2686_v34 }
 0x405   : > { %v2590_v52 = vpop.f32.mrf.mxu2  ;;  %v2543_v50 = vpop.f32.mrf.mxu0 }
 0x406   : > { %v2591_v17 = vadd.f32 %v2590_v52, %v2541_v41  ;;  %2907 = vmatmul.f32.gmra.mxu3 %v2750_v60  ;;  %v2825_v4 = vpop.f32.mrf.mxu1 }
 0x407   : > { %v2826_v13 = vadd.f32 1e-06, %v2825_v4 }
 0x408   : > { %v2654_v44 = vadd.f32 %v2591_v17, %v5858_v5 }
 0x40a   : > { %v2720_v54 = vmul.f32 %v2654_v44, %v2654_v44 }
 0x40c   : > { %v2752_v37 = vadd.f32 %v2720_v54, %v2688_v0 }
 0x40d   : > { %v2592_v21 = vpop.f32.mrf.mxu2 }
 0x40e   : > { %v2593_v49 = vadd.f32 %v2592_v21, %v2543_v50  ;;  %2910 = vmatmul.f32.gmra.mxu3 %v2752_v37  ;;  %v2828_v10 = vpop.f32.mrf.mxu1 }
 0x40f   : > { %v2829_v41 = vadd.f32 1e-06, %v2828_v10 }
 0x410   : > { %v2658_v42 = vadd.f32 %v2593_v49, %v5859_v38 }
 0x412   : > { %v2722_v58 = vmul.f32 %v2658_v42, %v2658_v42 }
 0x414   : > { %v2754_v63 = vadd.f32 %v2722_v58, %v2690_v15 }
 0x416   : > { %2913 = vmatmul.f32.gmra.mxu3 %v2754_v63  ;;  %v2831_v30 = vpop.f32.mrf.mxu1 }
 0x417   : > { %v2832_v29 = vadd.f32 1e-06, %v2831_v30 }
 0x41e   : > { %v2834_v5 = vpop.f32.mrf.mxu1 }
 0x41f   : > { %v2835_v49 = vadd.f32 1e-06, %v2834_v5 }
 0x421   : > { %v2869_v62 = vpop.f32.mrf.mxu3 }
 0x422   : > { %v2870_v53 = vadd.f32 %v2869_v62, %v2805_v45 }
 0x424   : > { %4035 = vlog2.f32 %v2870_v53 }
 0x426   : > { %v2837_v21 = vpop.f32.mrf.mxu1 }
 0x427   : > { %v2838_v63 = vadd.f32 1e-06, %v2837_v21 }
 0x429   : > { %v2872_v51 = vpop.f32.mrf.mxu3 }
 0x42a   : > { %v4036_v20 = vpop.eup %4035  ;;  %v2873_v55 = vadd.f32 %v2872_v51, %v2808_v28 }
 0x42b   : > { %v2918_v26 = vmul.f32 0.6931472, %v4036_v20 }
 0x42c   : > { %4037 = vlog2.f32 %v2873_v55 }
 0x42d   : > { %2949 = vxpose.xlu0.b32.start [1/16] (narrow) %v2918_v26, 80 }
 0x42e   : > { %v2840_v12 = vpop.f32.mrf.mxu1 }
 0x42f   : > { %v2841_v28 = vadd.f32 1e-06, %v2840_v12 }
 0x431   : > { %v2875_v2 = vpop.f32.mrf.mxu3 }
 0x432   : > { %v4038_v31 = vpop.eup %4037  ;;  %v2876_v14 = vadd.f32 %v2875_v2, %v2811_v39 }
 0x433   : > { %v2920_v59 = vmul.f32 0.6931472, %v4038_v31 }
 0x434   : > { %4039 = vlog2.f32 %v2876_v14 }
 0x435   : > { %2950 = vxpose.xlu0.b32.cont [2/16] (narrow) %v2920_v59, 80 }
 0x436   : > { %v2843_v33 = vpop.f32.mrf.mxu1 }
 0x437   : > { %v2844_v39 = vadd.f32 1e-06, %v2843_v33 }
 0x439   : > { %v2878_v35 = vpop.f32.mrf.mxu3 }
 0x43a   : > { %v4040_v47 = vpop.eup %4039  ;;  %v2879_v24 = vadd.f32 %v2878_v35, %v2814_v18 }
 0x43b   : > { %v2922_v3 = vmul.f32 0.6931472, %v4040_v47 }
 0x43c   : > { %4041 = vlog2.f32 %v2879_v24 }
 0x43d   : > { %2951 = vxpose.xlu0.b32.cont [3/16] (narrow) %v2922_v3, 80 }
 0x43e   : > { %v2846_v14 = vpop.f32.mrf.mxu1 }
 0x43f   : > { %v2847_v18 = vadd.f32 1e-06, %v2846_v14 }
 0x441   : > { %v2881_v16 = vpop.f32.mrf.mxu3 }
 0x442   : > { %v4042_v6 = vpop.eup %4041  ;;  %v2882_v9 = vadd.f32 %v2881_v16, %v2817_v32 }
 0x443   : > { %v2924_v56 = vmul.f32 0.6931472, %v4042_v6 }
 0x444   : > { %4043 = vlog2.f32 %v2882_v9 }
 0x445   : > { %2952 = vxpose.xlu0.b32.cont [4/16] (narrow) %v2924_v56, 80 }
 0x446   : > { %v2849_v61 = vpop.f32.mrf.mxu1 }
 0x447   : > { %v2850_v32 = vadd.f32 1e-06, %v2849_v61 }
 0x449   : > { %v2884_v40 = vpop.f32.mrf.mxu3 }
 0x44a   : > { %v4044_v1 = vpop.eup %4043  ;;  %v2885_v48 = vadd.f32 %v2884_v40, %v2820_v23 }
 0x44b   : > { %v2926_v46 = vmul.f32 0.6931472, %v4044_v1 }
 0x44c   : > { %4045 = vlog2.f32 %v2885_v48 }
 0x44d   : > { %2953 = vxpose.xlu0.b32.cont [5/16] (narrow) %v2926_v46, 80 }
 0x451   : > { %v2887_v36 = vpop.f32.mrf.mxu3 }
 0x452   : > { %v4046_v11 = vpop.eup %4045  ;;  %v2888_v19 = vadd.f32 %v2887_v36, %v2823_v25 }
 0x453   : > { %v2928_v22 = vmul.f32 0.6931472, %v4046_v11 }
 0x454   : > { %4047 = vlog2.f32 %v2888_v19 }
 0x455   : > { %2954 = vxpose.xlu0.b32.cont [6/16] (narrow) %v2928_v22, 80 }
 0x459   : > { %v2890_v7 = vpop.f32.mrf.mxu3 }
 0x45a   : > { %v4048_v43 = vpop.eup %4047  ;;  %v2891_v34 = vadd.f32 %v2890_v7, %v2826_v13 }
 0x45b   : > { %v2930_v57 = vmul.f32 0.6931472, %v4048_v43 }
 0x45c   : > { %4049 = vlog2.f32 %v2891_v34 }
 0x45d   : > { %2955 = vxpose.xlu0.b32.cont [7/16] (narrow) %v2930_v57, 80 }
 0x461   : > { %v2893_v60 = vpop.f32.mrf.mxu3 }
 0x462   : > { %v4050_v52 = vpop.eup %4049  ;;  %v2894_v17 = vadd.f32 %v2893_v60, %v2829_v41 }
 0x463   : > { %v2932_v44 = vmul.f32 0.6931472, %v4050_v52 }
 0x464   : > { %4051 = vlog2.f32 %v2894_v17 }
 0x465   : > { %2956 = vxpose.xlu0.b32.cont [8/16] (narrow) %v2932_v44, 80 }
 0x469   : > { %v2896_v0 = vpop.f32.mrf.mxu3 }
 0x46a   : > { %v4052_v54 = vpop.eup %4051  ;;  %v2897_v37 = vadd.f32 %v2896_v0, %v2832_v29 }
 0x46b   : > { %v2934_v50 = vmul.f32 0.6931472, %v4052_v54 }
 0x46c   : > { %4053 = vlog2.f32 %v2897_v37 }
 0x46d   : > { %2957 = vxpose.xlu0.b32.cont [9/16] (narrow) %v2934_v50, 80 }
 0x471   : > { %v2899_v38 = vpop.f32.mrf.mxu3 }
 0x472   : > { %v4054_v42 = vpop.eup %4053  ;;  %v2900_v15 = vadd.f32 %v2899_v38, %v2835_v49 }
 0x473   : > { %v2936_v58 = vmul.f32 0.6931472, %v4054_v42 }
 0x474   : > { %4055 = vlog2.f32 %v2900_v15 }
 0x475   : > { %2958 = vxpose.xlu0.b32.cont [10/16] (narrow) %v2936_v58, 80 }
 0x479   : > { %v2902_v8 = vpop.f32.mrf.mxu3 }
 0x47a   : > { %v4056_v45 = vpop.eup %4055  ;;  %v2903_v62 = vadd.f32 %v2902_v8, %v2838_v63 }
 0x47b   : > { %v2938_v53 = vmul.f32 0.6931472, %v4056_v45 }
 0x47c   : > { %4057 = vlog2.f32 %v2903_v62 }
 0x47d   : > { %2959 = vxpose.xlu0.b32.cont [11/16] (narrow) %v2938_v53, 80 }
 0x481   : > { %v2905_v51 = vpop.f32.mrf.mxu3 }
 0x482   : > { %v4058_v20 = vpop.eup %4057  ;;  %v2906_v55 = vadd.f32 %v2905_v51, %v2841_v28 }
 0x483   : > { %v2940_v26 = vmul.f32 0.6931472, %v4058_v20 }
 0x484   : > { %4059 = vlog2.f32 %v2906_v55 }
 0x485   : > { %2960 = vxpose.xlu0.b32.cont [12/16] (narrow) %v2940_v26, 80 }
 0x489   : > { %v2908_v2 = vpop.f32.mrf.mxu3 }
 0x48a   : > { %v4060_v31 = vpop.eup %4059  ;;  %v2909_v27 = vadd.f32 %v2908_v2, %v2844_v39 }
 0x48b   : > { %v2942_v59 = vmul.f32 0.6931472, %v4060_v31 }
 0x48c   : > { %4061 = vlog2.f32 %v2909_v27 }
 0x48d   : > { %2961 = vxpose.xlu0.b32.cont [13/16] (narrow) %v2942_v59, 80 }
 0x491   : > { %v2911_v35 = vpop.f32.mrf.mxu3 }
 0x492   : > { %v4062_v47 = vpop.eup %4061  ;;  %v2912_v24 = vadd.f32 %v2911_v35, %v2847_v18 }
 0x493   : > { %v2944_v3 = vmul.f32 0.6931472, %v4062_v47 }
 0x494   : > { %4063 = vlog2.f32 %v2912_v24 }
 0x495   : > { %2962 = vxpose.xlu0.b32.cont [14/16] (narrow) %v2944_v3, 80 }
 0x499   : > { %v2914_v6 = vpop.f32.mrf.mxu3 }
 0x49a   : > { %v4064_v16 = vpop.eup %4063  ;;  %v2915_v9 = vadd.f32 %v2914_v6, %v2850_v32 }
 0x49b   : > { %v2946_v56 = vmul.f32 0.6931472, %v4064_v16 }
 0x49c   : > { %4065 = vlog2.f32 %v2915_v9 }
 0x49d   : > { %2963 = vxpose.xlu0.b32.cont [15/16] (narrow) %v2946_v56, 80 }
 0x4a2   : > { %v4066_v4 = vpop.eup %4065 }
 0x4a3   : > { %v2948_v23 = vmul.f32 0.6931472, %v4066_v4 }
 0x4a5   : > { %2964 = vxpose.xlu0.b32.end [16/16] (narrow) %v2948_v23, 80 }
 0x4d1   : > { %v2965_v40 = vpop.trf.xlu0 }
 0x4d2   : > { %2981 = vst [vmem:[%s330_s23] sm:$0xff] %v2965_v40 }
 0x4d9   : > { %v2966_v1 = vpop.trf.xlu0 }
 0x4da   : > { %2982 = vst [vmem:[%s330_s23 + $0x8] sm:$0xff] %v2966_v1 }
 0x4e1   : > { %v2967_v48 = vpop.trf.xlu0 }
 0x4e2   : > { %2983 = vst [vmem:[%s330_s23 + $0x10] sm:$0xff] %v2967_v48 }
 0x4e9   : > { %v2968_v46 = vpop.trf.xlu0 }
 0x4ea   : > { %2984 = vst [vmem:[%s330_s23 + $0x18] sm:$0xff] %v2968_v46 }
 0x4f1   : > { %v2969_v10 = vpop.trf.xlu0 }
 0x4f2   : > { %2985 = vst [vmem:[%s330_s23 + $0x20] sm:$0xff] %v2969_v10 }
 0x4f9   : > { %v2970_v25 = vpop.trf.xlu0 }
 0x4fa   : > { %2986 = vst [vmem:[%s330_s23 + $0x28] sm:$0xff] %v2970_v25 }
 0x501   : > { %v2971_v36 = vpop.trf.xlu0 }
 0x502   : > { %2987 = vst [vmem:[%s330_s23 + $0x30] sm:$0xff] %v2971_v36 }
 0x509   : > { %v2972_v11 = vpop.trf.xlu0 }
 0x50a   : > { %2988 = vst [vmem:[%s330_s23 + $0x38] sm:$0xff] %v2972_v11 }
 0x511   : > { %v2973_v19 = vpop.trf.xlu0 }
 0x512   : > { %2989 = vst [vmem:[%s330_s23 + $0x40] sm:$0xff] %v2973_v19 }
 0x519   : > { %v2974_v22 = vpop.trf.xlu0 }
 0x51a   : > { %2990 = vst [vmem:[%s330_s23 + $0x48] sm:$0xff] %v2974_v22 }
 0x51b   : > { %4214 = shalt.err (!%p4211_p0)
}
 0x51c   : > { %s4289_s3 = smov 128   ;;  %s4290_s28 = smov 8  }
 0x51d   : > { %3953 = dma.vmem_to_hbm [thread:$0]  (%p4398_p7), %s3006_s7, 1280, %s3008_s8, %s2992_s9, %s4289_s3, %s4289_s3, %s4290_s28  }
 0x51e PF: > { %s3022_s13 = sand.u32 1, %s4261_s15   ;;  %p3970_p3 = pnand %p3145_p11, %p4361_p6 }
 0x51f   : > { %s3023_s14 = scalar_lea.sflag [#allocation4], %s3022_s13 }
 0x520   : > { %p3971_p5 = pneg %p3970_p3 }
 0x522   : > { %4256 = dma.done.wait (%p3971_p5), %s3023_s14, 1280  }
 0x523   : > { %4258 = vsyncadd (%p3971_p5), %s3023_s14, 4294966016  ;;  %s24_s20 = sadd.s32 1, %s4281_s20   ;;  %s5860_s18 = sld [smem:[#allocation16_spill]] }
 0x524   : > { %p21_p9 = scmp.ge.s32.totalorder %s24_s20, 4   ;;  %s5861_s19 = sld [smem:[#allocation17_spill]] }
 0x525   : > { %s5862_s15 = smov %s4265_s16  ;;  %s5863_s16 = smov %s4269_s17 }
 0x526   : > { %s5864_s17 = smov %s4407_s6  ;;  %23 = sbr.rel (!%p21_p9) target bundleno = 12 (0xc), region = 104 }
 0x52b   :  { %3029 = vsyncpa [#allocation3], 1 }
 0x52c   :  { %3031 = vsyncpa [#allocation3 + $0x1], 1 }
 0x52d   :  { %3032 = vsyncpa [#allocation6], 1 }
 0x52e   :  { %3034 = vsyncpa [#allocation6 + $0x1], 1 }
 0x52f   :  { %3035 = vsyncpa [#allocation9], 1 }
 0x530   :  { %3036 = vsyncpa [#allocation4], 1 }
 0x531   :  { %3038 = vsyncpa [#allocation4 + $0x1], 1 }

</bundles_post_ra>
